<compile_context>
chip_gen: v7x
topology: tpu7x:2x2x1
jax: 0.10.0
libtpu: 0.0.40
codegen_flags: <defaults>
</compile_context>

<pallas_src>
import functools

import jax
import jax.numpy as jnp
from jax import lax
from jax.experimental import pallas as pl
from jax.experimental.pallas import tpu as pltpu


def _round_up(x, m):
    return (x + m - 1) // m * m


def _largest_divisor_leq(n, target):
    d = max(1, min(n, target))
    while n % d:
        d -= 1
    return d


def _tpu_defaults():
    """Per-generation knobs: v5e/v6e have 128 MiB physical VMEM (raise the
    scoped budget, bigger row bands); v7x has 64 MiB/TC (keep 32 MiB)."""
    kind = ""
    try:
        kind = jax.devices()[0].device_kind.lower()
    except Exception:
        pass
    if ("v5" in kind) or ("v6" in kind):
        return dict(vmem_limit=100 * 1024 * 1024, row_target=16)
    return dict(vmem_limit=32 * 1024 * 1024, row_target=8)


# ----------------------------------------------------------------------------
# Pallas kernels
# ----------------------------------------------------------------------------
def conv_kernel(x_ref, w_ref, shift_ref, o_ref, *, taps_hw, rows, neg_slope):
    """`rows` output rows of a stride-1 (3x3 or phase-packed 2x2) conv
    + folded bias/BN shift + LeakyReLU.

    x_ref     : (Hin, Win, Kin)  bf16  whole padded image of one batch element
                                        (resident across the row-band axis)
    w_ref     : (T, Kin, Cout)   bf16  per-tap weights (BN scale folded in)
    shift_ref : (1, Cout)        f32   folded bias/BN shift
    o_ref     : (rows, Wo, Cout) bf16  output row band
    """
    ty, tx = taps_hw
    wo = o_ref.shape[1]
    cout = o_ref.shape[2]
    row0 = pl.program_id(1) * rows
    for rr in range(rows):                      # short static loop (unrolled)
        acc = jnp.zeros((wo, cout), jnp.float32)
        for dy in range(ty):
            for dx in range(tx):
                # in-kernel tap: shifted 2-D load straight from the resident
                # image (no im2col slab, no reshapes, 2-D MXU matmul).
                slab = x_ref[row0 + rr + dy, pl.ds(dx, wo), :]
                acc = acc + jnp.dot(slab, w_ref[dy * tx + dx],
                                    preferred_element_type=jnp.float32)
        y = acc + shift_ref[...]
        y = jnp.where(y >= 0.0, y, neg_slope * y)
        o_ref[rr, :, :] = y.astype(o_ref.dtype)


def head_kernel(x_ref, w1_ref, b1_ref, w2_ref, b2_ref, o_ref, *, neg_slope, hw):
    """Global average pool + Linear + (Dropout=id) + LeakyReLU + Linear + Sigmoid.

    x_ref : (N, H*W, Cpad) bf16 final conv features (padded channels are zero)
    w1_ref: (Cpad, 512) bf16, b1_ref: (1, 512) f32
    w2_ref: (512, out_pad) bf16, b2_ref: (1, out_pad) f32
    o_ref : (N, out_pad) f32
    """
    x = x_ref[...].astype(jnp.float32)
    feat = jnp.sum(x, axis=1) * (1.0 / float(hw))            # GAP -> (N, Cpad)
    h = jnp.dot(feat.astype(jnp.bfloat16), w1_ref[...],
                preferred_element_type=jnp.float32) + b1_ref[...]
    h = jnp.where(h >= 0.0, h, neg_slope * h)                 # Dropout(eval)=id
    z = jnp.dot(h.astype(jnp.bfloat16), w2_ref[...],
                preferred_element_type=jnp.float32) + b2_ref[...]
    o_ref[...] = 1.0 / (1.0 + jnp.exp(-z))                    # sigmoid


_VMEM_SPEC = pl.BlockSpec(memory_space=pltpu.MemorySpace.VMEM)


# ----------------------------------------------------------------------------
# pallas_call wrappers
# ----------------------------------------------------------------------------
def _conv_layer(x, layer, defaults):
    """x: (N, H, W, Cin_pad) bf16 -> (N, Ho, Wo, Cout_pad) bf16."""
    n, h, w, cin = x.shape
    stride = layer["stride"]
    if stride == 1:
        xin = jnp.pad(x, ((0, 0), (1, 1), (1, 1), (0, 0)))
        ho, wo = h, w
        taps_hw = (3, 3)
    else:
        # space-to-depth: a stride-2 3x3 conv == a stride-1 2x2 conv over the
        # phase-stacked (4*Cin) input (weights re-mapped at build time).
        assert h % 2 == 0 and w % 2 == 0, "stride-2 layers require even H, W"
        xp = jnp.pad(x, ((0, 0), (1, 1), (1, 1), (0, 0)))
        hp, wp = h + 2, w + 2
        xin = xp.reshape(n, hp // 2, 2, wp // 2, 2, cin)
        xin = xin.transpose(0, 1, 3, 2, 4, 5).reshape(n, hp // 2, wp // 2, 4 * cin)
        ho, wo = h // 2, w // 2
        taps_hw = (2, 2)

    wk = layer["w"]                      # (T, Kin, Cout_pad) bf16
    shift = layer["shift"]               # (1, Cout_pad) f32
    t, kin, cout = wk.shape
    hin, win = xin.shape[1], xin.shape[2]
    rows = _largest_divisor_leq(ho, defaults["row_target"])

    flops = 2 * n * ho * wo * t * kin * cout
    bytes_accessed = 2 * (n * hin * win * kin + t * kin * cout + n * ho * wo * cout)

    return pl.pallas_call(
        functools.partial(conv_kernel, taps_hw=taps_hw, rows=rows, neg_slope=0.2),
        out_shape=jax.ShapeDtypeStruct((n, ho, wo, cout), jnp.bfloat16),
        grid=(n, ho // rows),
        in_specs=[
            # whole padded image per batch element; index depends only on the
            # batch axis, so it is DMA'd once and stays resident across bands.
            pl.BlockSpec((None, hin, win, kin), lambda b, r: (b, 0, 0, 0)),
            pl.BlockSpec((t, kin, cout), lambda b, r: (0, 0, 0)),
            pl.BlockSpec((1, cout), lambda b, r: (0, 0)),
        ],
        out_specs=pl.BlockSpec((None, rows, wo, cout), lambda b, r: (b, r, 0, 0)),
        compiler_params=pltpu.CompilerParams(
            # batch axis "parallel": shards across v7x's two TensorCores;
            # no-op on single-TC v5e/v6e.
            dimension_semantics=("parallel", "arbitrary"),
            vmem_limit_bytes=defaults["vmem_limit"],
        ),
        cost_estimate=pl.CostEstimate(flops=flops, transcendentals=0,
                                      bytes_accessed=bytes_accessed),
    )(xin, wk, shift)


def _head_call(x, head, hw, out_pad):
    n = x.shape[0]
    return pl.pallas_call(
        functools.partial(head_kernel, neg_slope=0.2, hw=hw),
        out_shape=jax.ShapeDtypeStruct((n, out_pad), jnp.float32),
        in_specs=[_VMEM_SPEC] * 5,
        out_specs=_VMEM_SPEC,
    )(x, head["w1"], head["b1"], head["w2"], head["b2"])


# ----------------------------------------------------------------------------
# Parameter construction (deterministic, synthetic)
# ----------------------------------------------------------------------------
def make_params(in_nc, base_nf, out_feat, key):
    cfg = [
        # (cin, cout, stride, has_bn)
        (in_nc,       base_nf,     1, False),  # conv0 (no norm)
        (base_nf,     base_nf,     2, True),   # conv1
        (base_nf,     base_nf * 2, 1, True),   # conv2
        (base_nf * 2, base_nf * 2, 2, True),   # conv3
        (base_nf * 2, base_nf * 4, 1, True),   # conv4
        (base_nf * 4, base_nf * 4, 2, True),   # conv5
        (base_nf * 4, base_nf * 8, 1, True),   # conv6
        (base_nf * 8, base_nf * 8, 2, True),   # conv7
    ]
    eps = 1e-5
    in_pad0 = max(8, _round_up(in_nc, 8))            # lane-friendly layer-0 K
    cin_pad_prev = in_pad0
    layers = []
    for (cin, cout, stride, has_bn) in cfg:
        key, kw, kb, kg, kbe, km, kv = jax.random.split(key, 7)
        w = 0.05 * jax.random.normal(kw, (3, 3, cin, cout), jnp.float32)
        b = 0.05 * jax.random.normal(kb, (cout,), jnp.float32)
        if has_bn:
            gamma = 1.0 + 0.1 * jax.random.normal(kg, (cout,), jnp.float32)
            beta = 0.1 * jax.random.normal(kbe, (cout,), jnp.float32)
            mean = 0.1 * jax.random.normal(km, (cout,), jnp.float32)
            var = 0.5 + jax.random.uniform(kv, (cout,), jnp.float32)
            scale = gamma / jnp.sqrt(var + eps)
            shift = beta - mean * scale
        else:
            scale = jnp.ones((cout,), jnp.float32)
            shift = jnp.zeros((cout,), jnp.float32)
        # Fold conv bias and BN scale:  ((x*w)+b)*s + t  ==  x*(w*s) + (t + b*s)
        shift = shift + b * scale
        w_folded = w * scale

        cin_pad = cin_pad_prev
        cout_pad = _round_up(cout, 128)                        # lane-dense out
        wp = jnp.pad(w_folded, ((0, 0), (0, 0),
                                (0, cin_pad - cin), (0, cout_pad - cout)))
        if stride == 1:
            wk = wp.reshape(9, cin_pad, cout_pad)              # tap t = dy*3+dx
        else:
            # stride-2 as 2x2 conv over phase-stacked channels:
            # W2[dy*2+dx, (a*2+b)*cin_pad + c, co] = w[2dy+a, 2dx+b, c, co]
            w2 = jnp.zeros((2, 2, 4, cin_pad, cout_pad), jnp.float32)
            for dy in range(2):
                for dx in range(2):
                    for a in range(2):
                        for bp in range(2):
                            ky, kx = 2 * dy + a, 2 * dx + bp
                            if ky <= 2 and kx <= 2:
                                w2 = w2.at[dy, dx, a * 2 + bp].set(wp[ky, kx])
            wk = w2.reshape(4, 4 * cin_pad, cout_pad)          # tap t = dy*2+dx

        layers.append(dict(
            w=wk.astype(jnp.bfloat16),
            shift=jnp.pad(shift, (0, cout_pad - cout)).reshape(1, cout_pad),
            stride=stride, cout=cout, cout_pad=cout_pad,
            ref_w=w_folded, ref_shift=shift,                   # f32 reference
        ))
        cin_pad_prev = cout_pad

    c8 = base_nf * 8
    c8_pad = _round_up(c8, 128)
    out_pad = _round_up(out_feat, 128)
    key, k1, k2, k3, k4 = jax.random.split(key, 5)
    w1 = 0.05 * jax.random.normal(k1, (c8, 512), jnp.float32)
    b1 = 0.05 * jax.random.normal(k2, (1, 512), jnp.float32)
    w2 = 0.05 * jax.random.normal(k3, (512, out_feat), jnp.float32)
    b2 = 0.05 * jax.random.normal(k4, (1, out_feat), jnp.float32)
    head = dict(
        w1=jnp.pad(w1, ((0, c8_pad - c8), (0, 0))).astype(jnp.bfloat16),
        b1=b1,
        w2=jnp.pad(w2, ((0, 0), (0, out_pad - out_feat))).astype(jnp.bfloat16),
        b2=jnp.pad(b2, ((0, 0), (0, out_pad - out_feat))),
        ref_w1=w1, ref_b1=b1, ref_w2=w2, ref_b2=b2,
    )
    return dict(layers=layers, head=head, out_feat=out_feat, out_pad=out_pad,
                in_pad=in_pad0)


# ----------------------------------------------------------------------------
# Forward pass wrapper
# ----------------------------------------------------------------------------
def discriminator_forward(x_nchw, params):
    defaults = _tpu_defaults()
    n, c, _, _ = x_nchw.shape
    # NCHW -> NHWC (channels on lanes); activations carried in bf16 with
    # zero-padded, lane-dense channels all the way through the conv stack.
    x = jnp.transpose(x_nchw, (0, 2, 3, 1)).astype(jnp.bfloat16)
    if params["in_pad"] > c:
        x = jnp.pad(x, ((0, 0), (0, 0), (0, 0), (0, params["in_pad"] - c)))

    for layer in params["layers"]:
        x = _conv_layer(x, layer, defaults)

    n_, hf, wf, cp = x.shape
    head = params["head"]
    out = _head_call(x.reshape(n_, hf * wf, cp), head, hf * wf, params["out_pad"])
    return out[:, :params["out_feat"]]


# ----------------------------------------------------------------------------
# Pure-JAX f32 reference (same synthetic parameters)
# ----------------------------------------------------------------------------
def reference_forward(x_nchw, params):
    x = jnp.transpose(x_nchw, (0, 2, 3, 1)).astype(jnp.float32)
    for layer in params["layers"]:
        s = layer["stride"]
        y = lax.conv_general_dilated(
            x, layer["ref_w"], window_strides=(s, s), padding=((1, 1), (1, 1)),
            dimension_numbers=("NHWC", "HWIO", "NHWC"))
        y = y + layer["ref_shift"].reshape(1, 1, 1, -1)
        x = jnp.where(y >= 0.0, y, 0.2 * y)
    feat = jnp.mean(x, axis=(1, 2))
    head = params["head"]
    h = feat @ head["ref_w1"] + head["ref_b1"]
    h = jnp.where(h >= 0.0, h, 0.2 * h)
    z = h @ head["ref_w2"] + head["ref_b2"]
    return 1.0 / (1.0 + jnp.exp(-z))


# ----------------------------------------------------------------------------
if __name__ == "__main__":
    # Small, module-consistent shapes.
    batch, in_nc, spatial = 2, 3, 16
    base_nf, out_feat = 8, 16

    params = make_params(in_nc, base_nf, out_feat, jax.random.PRNGKey(42))
    x = jax.random.normal(jax.random.PRNGKey(0),
                          (batch, in_nc, spatial, spatial), jnp.float32)

    out = jax.block_until_ready(discriminator_forward(x, params))
    assert out.shape == (batch, out_feat), out.shape
    assert bool(jnp.all(jnp.isfinite(out)))
    assert bool(jnp.all((out >= 0.0) & (out <= 1.0)))          # sigmoid range

    # Correctness vs. f32 XLA reference (bf16 activations -> loose tolerance).
    ref = jax.block_until_ready(reference_forward(x, params))
    err = float(jnp.max(jnp.abs(out - ref.astype(out.dtype))))
    assert err < 3e-2, f"mismatch vs f32 reference: max abs err = {err}"

    print("KERNEL_OK")
</pallas_src>

<mosaic_0001>
module attributes {stable_mosaic.version = 11 : i64} {
  func.func @conv_kernel(%arg0: i32, %arg1: i32, %arg2: memref<1x18x18x8xbf16, #tpu.memory_space<vmem>>, %arg3: memref<9x8x128xbf16, #tpu.memory_space<vmem>>, %arg4: memref<1x128xf32, #tpu.memory_space<vmem>>, %arg5: memref<1x8x16x128xbf16, #tpu.memory_space<vmem>>) attributes {dimension_semantics = [#tpu.dimension_semantics<parallel>, #tpu.dimension_semantics<arbitrary>], iteration_bounds = array<i64: 2, 2>, scalar_prefetch = 0 : i64, scratch_operands = 0 : i64, tpu.core_type = #tpu.core_type<tc>, window_params = [{transform_indices = @transform_0, window_bounds = array<i64: 1, 18, 18, 8>}, {pipeline_mode = #tpu.pipeline_mode<synchronous>, transform_indices = @transform_1, window_bounds = array<i64: 9, 8, 128>}, {pipeline_mode = #tpu.pipeline_mode<synchronous>, transform_indices = @transform_2, window_bounds = array<i64: 1, 128>}, {transform_indices = @transform_3, window_bounds = array<i64: 1, 8, 16, 128>}]} {
    %c8_i32 = arith.constant 8 : i32
    %0 = arith.muli %arg1, %c8_i32 : i32
    %cst = arith.constant 0.000000e+00 : f32
    %1 = vector.broadcast %cst : f32 to vector<16x128xf32>
    %c0_i32 = arith.constant 0 : i32
    %2 = arith.addi %0, %c0_i32 : i32
    %c0_i32_0 = arith.constant 0 : i32
    %3 = arith.addi %2, %c0_i32_0 : i32
    %c0 = arith.constant 0 : index
    %4 = arith.index_cast %3 : i32 to index
    %c0_1 = arith.constant 0 : index
    %c0_2 = arith.constant 0 : index
    %5 = vector.load %arg2[%c0, %4, %c0_1, %c0_2] : memref<1x18x18x8xbf16, #tpu.memory_space<vmem>>, vector<1x1x16x8xbf16>
    %6 = vector.shape_cast %5 : vector<1x1x16x8xbf16> to vector<16x8xbf16>
    %c0_3 = arith.constant 0 : index
    %c0_4 = arith.constant 0 : index
    %c0_5 = arith.constant 0 : index
    %7 = vector.load %arg3[%c0_3, %c0_4, %c0_5] : memref<9x8x128xbf16, #tpu.memory_space<vmem>>, vector<1x8x128xbf16>
    %8 = vector.shape_cast %7 : vector<1x8x128xbf16> to vector<8x128xbf16>
    %cst_6 = arith.constant dense<0.000000e+00> : vector<16x128xf32>
    %9 = tpu.matmul %6, %8, %cst_6 {dimension_numbers = #tpu.dot_dimension_numbers<[1], [0], [0], [1], [0, 0, 1, 1], [], []>} : vector<16x8xbf16>, vector<8x128xbf16>, vector<16x128xf32> -> vector<16x128xf32>
    %10 = arith.addf %1, %9 : vector<16x128xf32>
    %c0_i32_7 = arith.constant 0 : i32
    %11 = arith.addi %0, %c0_i32_7 : i32
    %c0_i32_8 = arith.constant 0 : i32
    %12 = arith.addi %11, %c0_i32_8 : i32
    %c0_9 = arith.constant 0 : index
    %13 = arith.index_cast %12 : i32 to index
    %c1 = arith.constant 1 : index
    %c0_10 = arith.constant 0 : index
    %14 = vector.load %arg2[%c0_9, %13, %c1, %c0_10] : memref<1x18x18x8xbf16, #tpu.memory_space<vmem>>, vector<1x1x16x8xbf16>
    %15 = vector.shape_cast %14 : vector<1x1x16x8xbf16> to vector<16x8xbf16>
    %c1_11 = arith.constant 1 : index
    %c0_12 = arith.constant 0 : index
    %c0_13 = arith.constant 0 : index
    %16 = vector.load %arg3[%c1_11, %c0_12, %c0_13] : memref<9x8x128xbf16, #tpu.memory_space<vmem>>, vector<1x8x128xbf16>
    %17 = vector.shape_cast %16 : vector<1x8x128xbf16> to vector<8x128xbf16>
    %cst_14 = arith.constant dense<0.000000e+00> : vector<16x128xf32>
    %18 = tpu.matmul %15, %17, %cst_14 {dimension_numbers = #tpu.dot_dimension_numbers<[1], [0], [0], [1], [0, 0, 1, 1], [], []>} : vector<16x8xbf16>, vector<8x128xbf16>, vector<16x128xf32> -> vector<16x128xf32>
    %19 = arith.addf %10, %18 : vector<16x128xf32>
    %c0_i32_15 = arith.constant 0 : i32
    %20 = arith.addi %0, %c0_i32_15 : i32
    %c0_i32_16 = arith.constant 0 : i32
    %21 = arith.addi %20, %c0_i32_16 : i32
    %c0_17 = arith.constant 0 : index
    %22 = arith.index_cast %21 : i32 to index
    %c2 = arith.constant 2 : index
    %c0_18 = arith.constant 0 : index
    %23 = vector.load %arg2[%c0_17, %22, %c2, %c0_18] : memref<1x18x18x8xbf16, #tpu.memory_space<vmem>>, vector<1x1x16x8xbf16>
    %24 = vector.shape_cast %23 : vector<1x1x16x8xbf16> to vector<16x8xbf16>
    %c2_19 = arith.constant 2 : index
    %c0_20 = arith.constant 0 : index
    %c0_21 = arith.constant 0 : index
    %25 = vector.load %arg3[%c2_19, %c0_20, %c0_21] : memref<9x8x128xbf16, #tpu.memory_space<vmem>>, vector<1x8x128xbf16>
    %26 = vector.shape_cast %25 : vector<1x8x128xbf16> to vector<8x128xbf16>
    %cst_22 = arith.constant dense<0.000000e+00> : vector<16x128xf32>
    %27 = tpu.matmul %24, %26, %cst_22 {dimension_numbers = #tpu.dot_dimension_numbers<[1], [0], [0], [1], [0, 0, 1, 1], [], []>} : vector<16x8xbf16>, vector<8x128xbf16>, vector<16x128xf32> -> vector<16x128xf32>
    %28 = arith.addf %19, %27 : vector<16x128xf32>
    %c0_i32_23 = arith.constant 0 : i32
    %29 = arith.addi %0, %c0_i32_23 : i32
    %c1_i32 = arith.constant 1 : i32
    %30 = arith.addi %29, %c1_i32 : i32
    %c0_24 = arith.constant 0 : index
    %31 = arith.index_cast %30 : i32 to index
    %c0_25 = arith.constant 0 : index
    %c0_26 = arith.constant 0 : index
    %32 = vector.load %arg2[%c0_24, %31, %c0_25, %c0_26] : memref<1x18x18x8xbf16, #tpu.memory_space<vmem>>, vector<1x1x16x8xbf16>
    %33 = vector.shape_cast %32 : vector<1x1x16x8xbf16> to vector<16x8xbf16>
    %c3 = arith.constant 3 : index
    %c0_27 = arith.constant 0 : index
    %c0_28 = arith.constant 0 : index
    %34 = vector.load %arg3[%c3, %c0_27, %c0_28] : memref<9x8x128xbf16, #tpu.memory_space<vmem>>, vector<1x8x128xbf16>
    %35 = vector.shape_cast %34 : vector<1x8x128xbf16> to vector<8x128xbf16>
    %cst_29 = arith.constant dense<0.000000e+00> : vector<16x128xf32>
    %36 = tpu.matmul %33, %35, %cst_29 {dimension_numbers = #tpu.dot_dimension_numbers<[1], [0], [0], [1], [0, 0, 1, 1], [], []>} : vector<16x8xbf16>, vector<8x128xbf16>, vector<16x128xf32> -> vector<16x128xf32>
    %37 = arith.addf %28, %36 : vector<16x128xf32>
    %c0_i32_30 = arith.constant 0 : i32
    %38 = arith.addi %0, %c0_i32_30 : i32
    %c1_i32_31 = arith.constant 1 : i32
    %39 = arith.addi %38, %c1_i32_31 : i32
    %c0_32 = arith.constant 0 : index
    %40 = arith.index_cast %39 : i32 to index
    %c1_33 = arith.constant 1 : index
    %c0_34 = arith.constant 0 : index
    %41 = vector.load %arg2[%c0_32, %40, %c1_33, %c0_34] : memref<1x18x18x8xbf16, #tpu.memory_space<vmem>>, vector<1x1x16x8xbf16>
    %42 = vector.shape_cast %41 : vector<1x1x16x8xbf16> to vector<16x8xbf16>
    %c4 = arith.constant 4 : index
    %c0_35 = arith.constant 0 : index
    %c0_36 = arith.constant 0 : index
    %43 = vector.load %arg3[%c4, %c0_35, %c0_36] : memref<9x8x128xbf16, #tpu.memory_space<vmem>>, vector<1x8x128xbf16>
    %44 = vector.shape_cast %43 : vector<1x8x128xbf16> to vector<8x128xbf16>
    %cst_37 = arith.constant dense<0.000000e+00> : vector<16x128xf32>
    %45 = tpu.matmul %42, %44, %cst_37 {dimension_numbers = #tpu.dot_dimension_numbers<[1], [0], [0], [1], [0, 0, 1, 1], [], []>} : vector<16x8xbf16>, vector<8x128xbf16>, vector<16x128xf32> -> vector<16x128xf32>
    %46 = arith.addf %37, %45 : vector<16x128xf32>
    %c0_i32_38 = arith.constant 0 : i32
    %47 = arith.addi %0, %c0_i32_38 : i32
    %c1_i32_39 = arith.constant 1 : i32
    %48 = arith.addi %47, %c1_i32_39 : i32
    %c0_40 = arith.constant 0 : index
    %49 = arith.index_cast %48 : i32 to index
    %c2_41 = arith.constant 2 : index
    %c0_42 = arith.constant 0 : index
    %50 = vector.load %arg2[%c0_40, %49, %c2_41, %c0_42] : memref<1x18x18x8xbf16, #tpu.memory_space<vmem>>, vector<1x1x16x8xbf16>
    %51 = vector.shape_cast %50 : vector<1x1x16x8xbf16> to vector<16x8xbf16>
    %c5 = arith.constant 5 : index
    %c0_43 = arith.constant 0 : index
    %c0_44 = arith.constant 0 : index
    %52 = vector.load %arg3[%c5, %c0_43, %c0_44] : memref<9x8x128xbf16, #tpu.memory_space<vmem>>, vector<1x8x128xbf16>
    %53 = vector.shape_cast %52 : vector<1x8x128xbf16> to vector<8x128xbf16>
    %cst_45 = arith.constant dense<0.000000e+00> : vector<16x128xf32>
    %54 = tpu.matmul %51, %53, %cst_45 {dimension_numbers = #tpu.dot_dimension_numbers<[1], [0], [0], [1], [0, 0, 1, 1], [], []>} : vector<16x8xbf16>, vector<8x128xbf16>, vector<16x128xf32> -> vector<16x128xf32>
    %55 = arith.addf %46, %54 : vector<16x128xf32>
    %c0_i32_46 = arith.constant 0 : i32
    %56 = arith.addi %0, %c0_i32_46 : i32
    %c2_i32 = arith.constant 2 : i32
    %57 = arith.addi %56, %c2_i32 : i32
    %c0_47 = arith.constant 0 : index
    %58 = arith.index_cast %57 : i32 to index
    %c0_48 = arith.constant 0 : index
    %c0_49 = arith.constant 0 : index
    %59 = vector.load %arg2[%c0_47, %58, %c0_48, %c0_49] : memref<1x18x18x8xbf16, #tpu.memory_space<vmem>>, vector<1x1x16x8xbf16>
    %60 = vector.shape_cast %59 : vector<1x1x16x8xbf16> to vector<16x8xbf16>
    %c6 = arith.constant 6 : index
    %c0_50 = arith.constant 0 : index
    %c0_51 = arith.constant 0 : index
    %61 = vector.load %arg3[%c6, %c0_50, %c0_51] : memref<9x8x128xbf16, #tpu.memory_space<vmem>>, vector<1x8x128xbf16>
    %62 = vector.shape_cast %61 : vector<1x8x128xbf16> to vector<8x128xbf16>
    %cst_52 = arith.constant dense<0.000000e+00> : vector<16x128xf32>
    %63 = tpu.matmul %60, %62, %cst_52 {dimension_numbers = #tpu.dot_dimension_numbers<[1], [0], [0], [1], [0, 0, 1, 1], [], []>} : vector<16x8xbf16>, vector<8x128xbf16>, vector<16x128xf32> -> vector<16x128xf32>
    %64 = arith.addf %55, %63 : vector<16x128xf32>
    %c0_i32_53 = arith.constant 0 : i32
    %65 = arith.addi %0, %c0_i32_53 : i32
    %c2_i32_54 = arith.constant 2 : i32
    %66 = arith.addi %65, %c2_i32_54 : i32
    %c0_55 = arith.constant 0 : index
    %67 = arith.index_cast %66 : i32 to index
    %c1_56 = arith.constant 1 : index
    %c0_57 = arith.constant 0 : index
    %68 = vector.load %arg2[%c0_55, %67, %c1_56, %c0_57] : memref<1x18x18x8xbf16, #tpu.memory_space<vmem>>, vector<1x1x16x8xbf16>
    %69 = vector.shape_cast %68 : vector<1x1x16x8xbf16> to vector<16x8xbf16>
    %c7 = arith.constant 7 : index
    %c0_58 = arith.constant 0 : index
    %c0_59 = arith.constant 0 : index
    %70 = vector.load %arg3[%c7, %c0_58, %c0_59] : memref<9x8x128xbf16, #tpu.memory_space<vmem>>, vector<1x8x128xbf16>
    %71 = vector.shape_cast %70 : vector<1x8x128xbf16> to vector<8x128xbf16>
    %cst_60 = arith.constant dense<0.000000e+00> : vector<16x128xf32>
    %72 = tpu.matmul %69, %71, %cst_60 {dimension_numbers = #tpu.dot_dimension_numbers<[1], [0], [0], [1], [0, 0, 1, 1], [], []>} : vector<16x8xbf16>, vector<8x128xbf16>, vector<16x128xf32> -> vector<16x128xf32>
    %73 = arith.addf %64, %72 : vector<16x128xf32>
    %c0_i32_61 = arith.constant 0 : i32
    %74 = arith.addi %0, %c0_i32_61 : i32
    %c2_i32_62 = arith.constant 2 : i32
    %75 = arith.addi %74, %c2_i32_62 : i32
    %c0_63 = arith.constant 0 : index
    %76 = arith.index_cast %75 : i32 to index
    %c2_64 = arith.constant 2 : index
    %c0_65 = arith.constant 0 : index
    %77 = vector.load %arg2[%c0_63, %76, %c2_64, %c0_65] : memref<1x18x18x8xbf16, #tpu.memory_space<vmem>>, vector<1x1x16x8xbf16>
    %78 = vector.shape_cast %77 : vector<1x1x16x8xbf16> to vector<16x8xbf16>
    %c8 = arith.constant 8 : index
    %c0_66 = arith.constant 0 : index
    %c0_67 = arith.constant 0 : index
    %79 = vector.load %arg3[%c8, %c0_66, %c0_67] : memref<9x8x128xbf16, #tpu.memory_space<vmem>>, vector<1x8x128xbf16>
    %80 = vector.shape_cast %79 : vector<1x8x128xbf16> to vector<8x128xbf16>
    %cst_68 = arith.constant dense<0.000000e+00> : vector<16x128xf32>
    %81 = tpu.matmul %78, %80, %cst_68 {dimension_numbers = #tpu.dot_dimension_numbers<[1], [0], [0], [1], [0, 0, 1, 1], [], []>} : vector<16x8xbf16>, vector<8x128xbf16>, vector<16x128xf32> -> vector<16x128xf32>
    %82 = arith.addf %73, %81 : vector<16x128xf32>
    %c0_69 = arith.constant 0 : index
    %c0_70 = arith.constant 0 : index
    %83 = vector.load %arg4[%c0_69, %c0_70] : memref<1x128xf32, #tpu.memory_space<vmem>>, vector<1x128xf32>
    %84 = vector.broadcast %83 : vector<1x128xf32> to vector<16x128xf32>
    %85 = arith.addf %82, %84 : vector<16x128xf32>
    %cst_71 = arith.constant 0.000000e+00 : f32
    %86 = vector.broadcast %cst_71 : f32 to vector<16x128xf32>
    %87 = arith.cmpf oge, %85, %86 : vector<16x128xf32>
    %cst_72 = arith.constant 2.000000e-01 : f32
    %88 = vector.broadcast %cst_72 : f32 to vector<16x128xf32>
    %89 = arith.mulf %88, %85 : vector<16x128xf32>
    %90 = arith.select %87, %85, %89 : vector<16x128xi1>, vector<16x128xf32>
    %91 = arith.truncf %90 : vector<16x128xf32> to vector<16x128xbf16>
    %c0_73 = arith.constant 0 : index
    %c0_74 = arith.constant 0 : index
    %c0_75 = arith.constant 0 : index
    %c0_76 = arith.constant 0 : index
    %92 = vector.load %arg5[%c0_73, %c0_74, %c0_75, %c0_76] : memref<1x8x16x128xbf16, #tpu.memory_space<vmem>>, vector<1x1x16x128xbf16>
    %93 = vector.shape_cast %92 : vector<1x1x16x128xbf16> to vector<16x128xbf16>
    %94 = vector.shape_cast %91 : vector<16x128xbf16> to vector<1x1x16x128xbf16>
    tpu.vector_store %arg5[%c0_73, %c0_74, %c0_75, %c0_76], %94 {strides = array<i32>} : memref<1x8x16x128xbf16, #tpu.memory_space<vmem>>, vector<1x1x16x128xbf16>,
    %cst_77 = arith.constant 0.000000e+00 : f32
    %95 = vector.broadcast %cst_77 : f32 to vector<16x128xf32>
    %c1_i32_78 = arith.constant 1 : i32
    %96 = arith.addi %0, %c1_i32_78 : i32
    %c0_i32_79 = arith.constant 0 : i32
    %97 = arith.addi %96, %c0_i32_79 : i32
    %c0_80 = arith.constant 0 : index
    %98 = arith.index_cast %97 : i32 to index
    %c0_81 = arith.constant 0 : index
    %c0_82 = arith.constant 0 : index
    %99 = vector.load %arg2[%c0_80, %98, %c0_81, %c0_82] : memref<1x18x18x8xbf16, #tpu.memory_space<vmem>>, vector<1x1x16x8xbf16>
    %100 = vector.shape_cast %99 : vector<1x1x16x8xbf16> to vector<16x8xbf16>
    %c0_83 = arith.constant 0 : index
    %c0_84 = arith.constant 0 : index
    %c0_85 = arith.constant 0 : index
    %101 = vector.load %arg3[%c0_83, %c0_84, %c0_85] : memref<9x8x128xbf16, #tpu.memory_space<vmem>>, vector<1x8x128xbf16>
    %102 = vector.shape_cast %101 : vector<1x8x128xbf16> to vector<8x128xbf16>
    %cst_86 = arith.constant dense<0.000000e+00> : vector<16x128xf32>
    %103 = tpu.matmul %100, %102, %cst_86 {dimension_numbers = #tpu.dot_dimension_numbers<[1], [0], [0], [1], [0, 0, 1, 1], [], []>} : vector<16x8xbf16>, vector<8x128xbf16>, vector<16x128xf32> -> vector<16x128xf32>
    %104 = arith.addf %95, %103 : vector<16x128xf32>
    %c1_i32_87 = arith.constant 1 : i32
    %105 = arith.addi %0, %c1_i32_87 : i32
    %c0_i32_88 = arith.constant 0 : i32
    %106 = arith.addi %105, %c0_i32_88 : i32
    %c0_89 = arith.constant 0 : index
    %107 = arith.index_cast %106 : i32 to index
    %c1_90 = arith.constant 1 : index
    %c0_91 = arith.constant 0 : index
    %108 = vector.load %arg2[%c0_89, %107, %c1_90, %c0_91] : memref<1x18x18x8xbf16, #tpu.memory_space<vmem>>, vector<1x1x16x8xbf16>
    %109 = vector.shape_cast %108 : vector<1x1x16x8xbf16> to vector<16x8xbf16>
    %c1_92 = arith.constant 1 : index
    %c0_93 = arith.constant 0 : index
    %c0_94 = arith.constant 0 : index
    %110 = vector.load %arg3[%c1_92, %c0_93, %c0_94] : memref<9x8x128xbf16, #tpu.memory_space<vmem>>, vector<1x8x128xbf16>
    %111 = vector.shape_cast %110 : vector<1x8x128xbf16> to vector<8x128xbf16>
    %cst_95 = arith.constant dense<0.000000e+00> : vector<16x128xf32>
    %112 = tpu.matmul %109, %111, %cst_95 {dimension_numbers = #tpu.dot_dimension_numbers<[1], [0], [0], [1], [0, 0, 1, 1], [], []>} : vector<16x8xbf16>, vector<8x128xbf16>, vector<16x128xf32> -> vector<16x128xf32>
    %113 = arith.addf %104, %112 : vector<16x128xf32>
    %c1_i32_96 = arith.constant 1 : i32
    %114 = arith.addi %0, %c1_i32_96 : i32
    %c0_i32_97 = arith.constant 0 : i32
    %115 = arith.addi %114, %c0_i32_97 : i32
    %c0_98 = arith.constant 0 : index
    %116 = arith.index_cast %115 : i32 to index
    %c2_99 = arith.constant 2 : index
    %c0_100 = arith.constant 0 : index
    %117 = vector.load %arg2[%c0_98, %116, %c2_99, %c0_100] : memref<1x18x18x8xbf16, #tpu.memory_space<vmem>>, vector<1x1x16x8xbf16>
    %118 = vector.shape_cast %117 : vector<1x1x16x8xbf16> to vector<16x8xbf16>
    %c2_101 = arith.constant 2 : index
    %c0_102 = arith.constant 0 : index
    %c0_103 = arith.constant 0 : index
    %119 = vector.load %arg3[%c2_101, %c0_102, %c0_103] : memref<9x8x128xbf16, #tpu.memory_space<vmem>>, vector<1x8x128xbf16>
    %120 = vector.shape_cast %119 : vector<1x8x128xbf16> to vector<8x128xbf16>
    %cst_104 = arith.constant dense<0.000000e+00> : vector<16x128xf32>
    %121 = tpu.matmul %118, %120, %cst_104 {dimension_numbers = #tpu.dot_dimension_numbers<[1], [0], [0], [1], [0, 0, 1, 1], [], []>} : vector<16x8xbf16>, vector<8x128xbf16>, vector<16x128xf32> -> vector<16x128xf32>
    %122 = arith.addf %113, %121 : vector<16x128xf32>
    %c1_i32_105 = arith.constant 1 : i32
    %123 = arith.addi %0, %c1_i32_105 : i32
    %c1_i32_106 = arith.constant 1 : i32
    %124 = arith.addi %123, %c1_i32_106 : i32
    %c0_107 = arith.constant 0 : index
    %125 = arith.index_cast %124 : i32 to index
    %c0_108 = arith.constant 0 : index
    %c0_109 = arith.constant 0 : index
    %126 = vector.load %arg2[%c0_107, %125, %c0_108, %c0_109] : memref<1x18x18x8xbf16, #tpu.memory_space<vmem>>, vector<1x1x16x8xbf16>
    %127 = vector.shape_cast %126 : vector<1x1x16x8xbf16> to vector<16x8xbf16>
    %c3_110 = arith.constant 3 : index
    %c0_111 = arith.constant 0 : index
    %c0_112 = arith.constant 0 : index
    %128 = vector.load %arg3[%c3_110, %c0_111, %c0_112] : memref<9x8x128xbf16, #tpu.memory_space<vmem>>, vector<1x8x128xbf16>
    %129 = vector.shape_cast %128 : vector<1x8x128xbf16> to vector<8x128xbf16>
    %cst_113 = arith.constant dense<0.000000e+00> : vector<16x128xf32>
    %130 = tpu.matmul %127, %129, %cst_113 {dimension_numbers = #tpu.dot_dimension_numbers<[1], [0], [0], [1], [0, 0, 1, 1], [], []>} : vector<16x8xbf16>, vector<8x128xbf16>, vector<16x128xf32> -> vector<16x128xf32>
    %131 = arith.addf %122, %130 : vector<16x128xf32>
    %c1_i32_114 = arith.constant 1 : i32
    %132 = arith.addi %0, %c1_i32_114 : i32
    %c1_i32_115 = arith.constant 1 : i32
    %133 = arith.addi %132, %c1_i32_115 : i32
    %c0_116 = arith.constant 0 : index
    %134 = arith.index_cast %133 : i32 to index
    %c1_117 = arith.constant 1 : index
    %c0_118 = arith.constant 0 : index
    %135 = vector.load %arg2[%c0_116, %134, %c1_117, %c0_118] : memref<1x18x18x8xbf16, #tpu.memory_space<vmem>>, vector<1x1x16x8xbf16>
    %136 = vector.shape_cast %135 : vector<1x1x16x8xbf16> to vector<16x8xbf16>
    %c4_119 = arith.constant 4 : index
    %c0_120 = arith.constant 0 : index
    %c0_121 = arith.constant 0 : index
    %137 = vector.load %arg3[%c4_119, %c0_120, %c0_121] : memref<9x8x128xbf16, #tpu.memory_space<vmem>>, vector<1x8x128xbf16>
    %138 = vector.shape_cast %137 : vector<1x8x128xbf16> to vector<8x128xbf16>
    %cst_122 = arith.constant dense<0.000000e+00> : vector<16x128xf32>
    %139 = tpu.matmul %136, %138, %cst_122 {dimension_numbers = #tpu.dot_dimension_numbers<[1], [0], [0], [1], [0, 0, 1, 1], [], []>} : vector<16x8xbf16>, vector<8x128xbf16>, vector<16x128xf32> -> vector<16x128xf32>
    %140 = arith.addf %131, %139 : vector<16x128xf32>
    %c1_i32_123 = arith.constant 1 : i32
    %141 = arith.addi %0, %c1_i32_123 : i32
    %c1_i32_124 = arith.constant 1 : i32
    %142 = arith.addi %141, %c1_i32_124 : i32
    %c0_125 = arith.constant 0 : index
    %143 = arith.index_cast %142 : i32 to index
    %c2_126 = arith.constant 2 : index
    %c0_127 = arith.constant 0 : index
    %144 = vector.load %arg2[%c0_125, %143, %c2_126, %c0_127] : memref<1x18x18x8xbf16, #tpu.memory_space<vmem>>, vector<1x1x16x8xbf16>
    %145 = vector.shape_cast %144 : vector<1x1x16x8xbf16> to vector<16x8xbf16>
    %c5_128 = arith.constant 5 : index
    %c0_129 = arith.constant 0 : index
    %c0_130 = arith.constant 0 : index
    %146 = vector.load %arg3[%c5_128, %c0_129, %c0_130] : memref<9x8x128xbf16, #tpu.memory_space<vmem>>, vector<1x8x128xbf16>
    %147 = vector.shape_cast %146 : vector<1x8x128xbf16> to vector<8x128xbf16>
    %cst_131 = arith.constant dense<0.000000e+00> : vector<16x128xf32>
    %148 = tpu.matmul %145, %147, %cst_131 {dimension_numbers = #tpu.dot_dimension_numbers<[1], [0], [0], [1], [0, 0, 1, 1], [], []>} : vector<16x8xbf16>, vector<8x128xbf16>, vector<16x128xf32> -> vector<16x128xf32>
    %149 = arith.addf %140, %148 : vector<16x128xf32>
    %c1_i32_132 = arith.constant 1 : i32
    %150 = arith.addi %0, %c1_i32_132 : i32
    %c2_i32_133 = arith.constant 2 : i32
    %151 = arith.addi %150, %c2_i32_133 : i32
    %c0_134 = arith.constant 0 : index
    %152 = arith.index_cast %151 : i32 to index
    %c0_135 = arith.constant 0 : index
    %c0_136 = arith.constant 0 : index
    %153 = vector.load %arg2[%c0_134, %152, %c0_135, %c0_136] : memref<1x18x18x8xbf16, #tpu.memory_space<vmem>>, vector<1x1x16x8xbf16>
    %154 = vector.shape_cast %153 : vector<1x1x16x8xbf16> to vector<16x8xbf16>
    %c6_137 = arith.constant 6 : index
    %c0_138 = arith.constant 0 : index
    %c0_139 = arith.constant 0 : index
    %155 = vector.load %arg3[%c6_137, %c0_138, %c0_139] : memref<9x8x128xbf16, #tpu.memory_space<vmem>>, vector<1x8x128xbf16>
    %156 = vector.shape_cast %155 : vector<1x8x128xbf16> to vector<8x128xbf16>
    %cst_140 = arith.constant dense<0.000000e+00> : vector<16x128xf32>
    %157 = tpu.matmul %154, %156, %cst_140 {dimension_numbers = #tpu.dot_dimension_numbers<[1], [0], [0], [1], [0, 0, 1, 1], [], []>} : vector<16x8xbf16>, vector<8x128xbf16>, vector<16x128xf32> -> vector<16x128xf32>
    %158 = arith.addf %149, %157 : vector<16x128xf32>
    %c1_i32_141 = arith.constant 1 : i32
    %159 = arith.addi %0, %c1_i32_141 : i32
    %c2_i32_142 = arith.constant 2 : i32
    %160 = arith.addi %159, %c2_i32_142 : i32
    %c0_143 = arith.constant 0 : index
    %161 = arith.index_cast %160 : i32 to index
    %c1_144 = arith.constant 1 : index
    %c0_145 = arith.constant 0 : index
    %162 = vector.load %arg2[%c0_143, %161, %c1_144, %c0_145] : memref<1x18x18x8xbf16, #tpu.memory_space<vmem>>, vector<1x1x16x8xbf16>
    %163 = vector.shape_cast %162 : vector<1x1x16x8xbf16> to vector<16x8xbf16>
    %c7_146 = arith.constant 7 : index
    %c0_147 = arith.constant 0 : index
    %c0_148 = arith.constant 0 : index
    %164 = vector.load %arg3[%c7_146, %c0_147, %c0_148] : memref<9x8x128xbf16, #tpu.memory_space<vmem>>, vector<1x8x128xbf16>
    %165 = vector.shape_cast %164 : vector<1x8x128xbf16> to vector<8x128xbf16>
    %cst_149 = arith.constant dense<0.000000e+00> : vector<16x128xf32>
    %166 = tpu.matmul %163, %165, %cst_149 {dimension_numbers = #tpu.dot_dimension_numbers<[1], [0], [0], [1], [0, 0, 1, 1], [], []>} : vector<16x8xbf16>, vector<8x128xbf16>, vector<16x128xf32> -> vector<16x128xf32>
    %167 = arith.addf %158, %166 : vector<16x128xf32>
    %c1_i32_150 = arith.constant 1 : i32
    %168 = arith.addi %0, %c1_i32_150 : i32
    %c2_i32_151 = arith.constant 2 : i32
    %169 = arith.addi %168, %c2_i32_151 : i32
    %c0_152 = arith.constant 0 : index
    %170 = arith.index_cast %169 : i32 to index
    %c2_153 = arith.constant 2 : index
    %c0_154 = arith.constant 0 : index
    %171 = vector.load %arg2[%c0_152, %170, %c2_153, %c0_154] : memref<1x18x18x8xbf16, #tpu.memory_space<vmem>>, vector<1x1x16x8xbf16>
    %172 = vector.shape_cast %171 : vector<1x1x16x8xbf16> to vector<16x8xbf16>
    %c8_155 = arith.constant 8 : index
    %c0_156 = arith.constant 0 : index
    %c0_157 = arith.constant 0 : index
    %173 = vector.load %arg3[%c8_155, %c0_156, %c0_157] : memref<9x8x128xbf16, #tpu.memory_space<vmem>>, vector<1x8x128xbf16>
    %174 = vector.shape_cast %173 : vector<1x8x128xbf16> to vector<8x128xbf16>
    %cst_158 = arith.constant dense<0.000000e+00> : vector<16x128xf32>
    %175 = tpu.matmul %172, %174, %cst_158 {dimension_numbers = #tpu.dot_dimension_numbers<[1], [0], [0], [1], [0, 0, 1, 1], [], []>} : vector<16x8xbf16>, vector<8x128xbf16>, vector<16x128xf32> -> vector<16x128xf32>
    %176 = arith.addf %167, %175 : vector<16x128xf32>
    %c0_159 = arith.constant 0 : index
    %c0_160 = arith.constant 0 : index
    %177 = vector.load %arg4[%c0_159, %c0_160] : memref<1x128xf32, #tpu.memory_space<vmem>>, vector<1x128xf32>
    %178 = vector.broadcast %177 : vector<1x128xf32> to vector<16x128xf32>
    %179 = arith.addf %176, %178 : vector<16x128xf32>
    %cst_161 = arith.constant 0.000000e+00 : f32
    %180 = vector.broadcast %cst_161 : f32 to vector<16x128xf32>
    %181 = arith.cmpf oge, %179, %180 : vector<16x128xf32>
    %cst_162 = arith.constant 2.000000e-01 : f32
    %182 = vector.broadcast %cst_162 : f32 to vector<16x128xf32>
    %183 = arith.mulf %182, %179 : vector<16x128xf32>
    %184 = arith.select %181, %179, %183 : vector<16x128xi1>, vector<16x128xf32>
    %185 = arith.truncf %184 : vector<16x128xf32> to vector<16x128xbf16>
    %c0_163 = arith.constant 0 : index
    %c1_164 = arith.constant 1 : index
    %c0_165 = arith.constant 0 : index
    %c0_166 = arith.constant 0 : index
    %186 = vector.load %arg5[%c0_163, %c1_164, %c0_165, %c0_166] : memref<1x8x16x128xbf16, #tpu.memory_space<vmem>>, vector<1x1x16x128xbf16>
    %187 = vector.shape_cast %186 : vector<1x1x16x128xbf16> to vector<16x128xbf16>
    %188 = vector.shape_cast %185 : vector<16x128xbf16> to vector<1x1x16x128xbf16>
    tpu.vector_store %arg5[%c0_163, %c1_164, %c0_165, %c0_166], %188 {strides = array<i32>} : memref<1x8x16x128xbf16, #tpu.memory_space<vmem>>, vector<1x1x16x128xbf16>,
    %cst_167 = arith.constant 0.000000e+00 : f32
    %189 = vector.broadcast %cst_167 : f32 to vector<16x128xf32>
    %c2_i32_168 = arith.constant 2 : i32
    %190 = arith.addi %0, %c2_i32_168 : i32
    %c0_i32_169 = arith.constant 0 : i32
    %191 = arith.addi %190, %c0_i32_169 : i32
    %c0_170 = arith.constant 0 : index
    %192 = arith.index_cast %191 : i32 to index
    %c0_171 = arith.constant 0 : index
    %c0_172 = arith.constant 0 : index
    %193 = vector.load %arg2[%c0_170, %192, %c0_171, %c0_172] : memref<1x18x18x8xbf16, #tpu.memory_space<vmem>>, vector<1x1x16x8xbf16>
    %194 = vector.shape_cast %193 : vector<1x1x16x8xbf16> to vector<16x8xbf16>
    %c0_173 = arith.constant 0 : index
    %c0_174 = arith.constant 0 : index
    %c0_175 = arith.constant 0 : index
    %195 = vector.load %arg3[%c0_173, %c0_174, %c0_175] : memref<9x8x128xbf16, #tpu.memory_space<vmem>>, vector<1x8x128xbf16>
    %196 = vector.shape_cast %195 : vector<1x8x128xbf16> to vector<8x128xbf16>
    %cst_176 = arith.constant dense<0.000000e+00> : vector<16x128xf32>
    %197 = tpu.matmul %194, %196, %cst_176 {dimension_numbers = #tpu.dot_dimension_numbers<[1], [0], [0], [1], [0, 0, 1, 1], [], []>} : vector<16x8xbf16>, vector<8x128xbf16>, vector<16x128xf32> -> vector<16x128xf32>
    %198 = arith.addf %189, %197 : vector<16x128xf32>
    %c2_i32_177 = arith.constant 2 : i32
    %199 = arith.addi %0, %c2_i32_177 : i32
    %c0_i32_178 = arith.constant 0 : i32
    %200 = arith.addi %199, %c0_i32_178 : i32
    %c0_179 = arith.constant 0 : index
    %201 = arith.index_cast %200 : i32 to index
    %c1_180 = arith.constant 1 : index
    %c0_181 = arith.constant 0 : index
    %202 = vector.load %arg2[%c0_179, %201, %c1_180, %c0_181] : memref<1x18x18x8xbf16, #tpu.memory_space<vmem>>, vector<1x1x16x8xbf16>
    %203 = vector.shape_cast %202 : vector<1x1x16x8xbf16> to vector<16x8xbf16>
    %c1_182 = arith.constant 1 : index
    %c0_183 = arith.constant 0 : index
    %c0_184 = arith.constant 0 : index
    %204 = vector.load %arg3[%c1_182, %c0_183, %c0_184] : memref<9x8x128xbf16, #tpu.memory_space<vmem>>, vector<1x8x128xbf16>
    %205 = vector.shape_cast %204 : vector<1x8x128xbf16> to vector<8x128xbf16>
    %cst_185 = arith.constant dense<0.000000e+00> : vector<16x128xf32>
    %206 = tpu.matmul %203, %205, %cst_185 {dimension_numbers = #tpu.dot_dimension_numbers<[1], [0], [0], [1], [0, 0, 1, 1], [], []>} : vector<16x8xbf16>, vector<8x128xbf16>, vector<16x128xf32> -> vector<16x128xf32>
    %207 = arith.addf %198, %206 : vector<16x128xf32>
    %c2_i32_186 = arith.constant 2 : i32
    %208 = arith.addi %0, %c2_i32_186 : i32
    %c0_i32_187 = arith.constant 0 : i32
    %209 = arith.addi %208, %c0_i32_187 : i32
    %c0_188 = arith.constant 0 : index
    %210 = arith.index_cast %209 : i32 to index
    %c2_189 = arith.constant 2 : index
    %c0_190 = arith.constant 0 : index
    %211 = vector.load %arg2[%c0_188, %210, %c2_189, %c0_190] : memref<1x18x18x8xbf16, #tpu.memory_space<vmem>>, vector<1x1x16x8xbf16>
    %212 = vector.shape_cast %211 : vector<1x1x16x8xbf16> to vector<16x8xbf16>
    %c2_191 = arith.constant 2 : index
    %c0_192 = arith.constant 0 : index
    %c0_193 = arith.constant 0 : index
    %213 = vector.load %arg3[%c2_191, %c0_192, %c0_193] : memref<9x8x128xbf16, #tpu.memory_space<vmem>>, vector<1x8x128xbf16>
    %214 = vector.shape_cast %213 : vector<1x8x128xbf16> to vector<8x128xbf16>
    %cst_194 = arith.constant dense<0.000000e+00> : vector<16x128xf32>
    %215 = tpu.matmul %212, %214, %cst_194 {dimension_numbers = #tpu.dot_dimension_numbers<[1], [0], [0], [1], [0, 0, 1, 1], [], []>} : vector<16x8xbf16>, vector<8x128xbf16>, vector<16x128xf32> -> vector<16x128xf32>
    %216 = arith.addf %207, %215 : vector<16x128xf32>
    %c2_i32_195 = arith.constant 2 : i32
    %217 = arith.addi %0, %c2_i32_195 : i32
    %c1_i32_196 = arith.constant 1 : i32
    %218 = arith.addi %217, %c1_i32_196 : i32
    %c0_197 = arith.constant 0 : index
    %219 = arith.index_cast %218 : i32 to index
    %c0_198 = arith.constant 0 : index
    %c0_199 = arith.constant 0 : index
    %220 = vector.load %arg2[%c0_197, %219, %c0_198, %c0_199] : memref<1x18x18x8xbf16, #tpu.memory_space<vmem>>, vector<1x1x16x8xbf16>
    %221 = vector.shape_cast %220 : vector<1x1x16x8xbf16> to vector<16x8xbf16>
    %c3_200 = arith.constant 3 : index
    %c0_201 = arith.constant 0 : index
    %c0_202 = arith.constant 0 : index
    %222 = vector.load %arg3[%c3_200, %c0_201, %c0_202] : memref<9x8x128xbf16, #tpu.memory_space<vmem>>, vector<1x8x128xbf16>
    %223 = vector.shape_cast %222 : vector<1x8x128xbf16> to vector<8x128xbf16>
    %cst_203 = arith.constant dense<0.000000e+00> : vector<16x128xf32>
    %224 = tpu.matmul %221, %223, %cst_203 {dimension_numbers = #tpu.dot_dimension_numbers<[1], [0], [0], [1], [0, 0, 1, 1], [], []>} : vector<16x8xbf16>, vector<8x128xbf16>, vector<16x128xf32> -> vector<16x128xf32>
    %225 = arith.addf %216, %224 : vector<16x128xf32>
    %c2_i32_204 = arith.constant 2 : i32
    %226 = arith.addi %0, %c2_i32_204 : i32
    %c1_i32_205 = arith.constant 1 : i32
    %227 = arith.addi %226, %c1_i32_205 : i32
    %c0_206 = arith.constant 0 : index
    %228 = arith.index_cast %227 : i32 to index
    %c1_207 = arith.constant 1 : index
    %c0_208 = arith.constant 0 : index
    %229 = vector.load %arg2[%c0_206, %228, %c1_207, %c0_208] : memref<1x18x18x8xbf16, #tpu.memory_space<vmem>>, vector<1x1x16x8xbf16>
    %230 = vector.shape_cast %229 : vector<1x1x16x8xbf16> to vector<16x8xbf16>
    %c4_209 = arith.constant 4 : index
    %c0_210 = arith.constant 0 : index
    %c0_211 = arith.constant 0 : index
    %231 = vector.load %arg3[%c4_209, %c0_210, %c0_211] : memref<9x8x128xbf16, #tpu.memory_space<vmem>>, vector<1x8x128xbf16>
    %232 = vector.shape_cast %231 : vector<1x8x128xbf16> to vector<8x128xbf16>
    %cst_212 = arith.constant dense<0.000000e+00> : vector<16x128xf32>
    %233 = tpu.matmul %230, %232, %cst_212 {dimension_numbers = #tpu.dot_dimension_numbers<[1], [0], [0], [1], [0, 0, 1, 1], [], []>} : vector<16x8xbf16>, vector<8x128xbf16>, vector<16x128xf32> -> vector<16x128xf32>
    %234 = arith.addf %225, %233 : vector<16x128xf32>
    %c2_i32_213 = arith.constant 2 : i32
    %235 = arith.addi %0, %c2_i32_213 : i32
    %c1_i32_214 = arith.constant 1 : i32
    %236 = arith.addi %235, %c1_i32_214 : i32
    %c0_215 = arith.constant 0 : index
    %237 = arith.index_cast %236 : i32 to index
    %c2_216 = arith.constant 2 : index
    %c0_217 = arith.constant 0 : index
    %238 = vector.load %arg2[%c0_215, %237, %c2_216, %c0_217] : memref<1x18x18x8xbf16, #tpu.memory_space<vmem>>, vector<1x1x16x8xbf16>
    %239 = vector.shape_cast %238 : vector<1x1x16x8xbf16> to vector<16x8xbf16>
    %c5_218 = arith.constant 5 : index
    %c0_219 = arith.constant 0 : index
    %c0_220 = arith.constant 0 : index
    %240 = vector.load %arg3[%c5_218, %c0_219, %c0_220] : memref<9x8x128xbf16, #tpu.memory_space<vmem>>, vector<1x8x128xbf16>
    %241 = vector.shape_cast %240 : vector<1x8x128xbf16> to vector<8x128xbf16>
    %cst_221 = arith.constant dense<0.000000e+00> : vector<16x128xf32>
    %242 = tpu.matmul %239, %241, %cst_221 {dimension_numbers = #tpu.dot_dimension_numbers<[1], [0], [0], [1], [0, 0, 1, 1], [], []>} : vector<16x8xbf16>, vector<8x128xbf16>, vector<16x128xf32> -> vector<16x128xf32>
    %243 = arith.addf %234, %242 : vector<16x128xf32>
    %c2_i32_222 = arith.constant 2 : i32
    %244 = arith.addi %0, %c2_i32_222 : i32
    %c2_i32_223 = arith.constant 2 : i32
    %245 = arith.addi %244, %c2_i32_223 : i32
    %c0_224 = arith.constant 0 : index
    %246 = arith.index_cast %245 : i32 to index
    %c0_225 = arith.constant 0 : index
    %c0_226 = arith.constant 0 : index
    %247 = vector.load %arg2[%c0_224, %246, %c0_225, %c0_226] : memref<1x18x18x8xbf16, #tpu.memory_space<vmem>>, vector<1x1x16x8xbf16>
    %248 = vector.shape_cast %247 : vector<1x1x16x8xbf16> to vector<16x8xbf16>
    %c6_227 = arith.constant 6 : index
    %c0_228 = arith.constant 0 : index
    %c0_229 = arith.constant 0 : index
    %249 = vector.load %arg3[%c6_227, %c0_228, %c0_229] : memref<9x8x128xbf16, #tpu.memory_space<vmem>>, vector<1x8x128xbf16>
    %250 = vector.shape_cast %249 : vector<1x8x128xbf16> to vector<8x128xbf16>
    %cst_230 = arith.constant dense<0.000000e+00> : vector<16x128xf32>
    %251 = tpu.matmul %248, %250, %cst_230 {dimension_numbers = #tpu.dot_dimension_numbers<[1], [0], [0], [1], [0, 0, 1, 1], [], []>} : vector<16x8xbf16>, vector<8x128xbf16>, vector<16x128xf32> -> vector<16x128xf32>
    %252 = arith.addf %243, %251 : vector<16x128xf32>
    %c2_i32_231 = arith.constant 2 : i32
    %253 = arith.addi %0, %c2_i32_231 : i32
    %c2_i32_232 = arith.constant 2 : i32
    %254 = arith.addi %253, %c2_i32_232 : i32
    %c0_233 = arith.constant 0 : index
    %255 = arith.index_cast %254 : i32 to index
    %c1_234 = arith.constant 1 : index
    %c0_235 = arith.constant 0 : index
    %256 = vector.load %arg2[%c0_233, %255, %c1_234, %c0_235] : memref<1x18x18x8xbf16, #tpu.memory_space<vmem>>, vector<1x1x16x8xbf16>
    %257 = vector.shape_cast %256 : vector<1x1x16x8xbf16> to vector<16x8xbf16>
    %c7_236 = arith.constant 7 : index
    %c0_237 = arith.constant 0 : index
    %c0_238 = arith.constant 0 : index
    %258 = vector.load %arg3[%c7_236, %c0_237, %c0_238] : memref<9x8x128xbf16, #tpu.memory_space<vmem>>, vector<1x8x128xbf16>
    %259 = vector.shape_cast %258 : vector<1x8x128xbf16> to vector<8x128xbf16>
    %cst_239 = arith.constant dense<0.000000e+00> : vector<16x128xf32>
    %260 = tpu.matmul %257, %259, %cst_239 {dimension_numbers = #tpu.dot_dimension_numbers<[1], [0], [0], [1], [0, 0, 1, 1], [], []>} : vector<16x8xbf16>, vector<8x128xbf16>, vector<16x128xf32> -> vector<16x128xf32>
    %261 = arith.addf %252, %260 : vector<16x128xf32>
    %c2_i32_240 = arith.constant 2 : i32
    %262 = arith.addi %0, %c2_i32_240 : i32
    %c2_i32_241 = arith.constant 2 : i32
    %263 = arith.addi %262, %c2_i32_241 : i32
    %c0_242 = arith.constant 0 : index
    %264 = arith.index_cast %263 : i32 to index
    %c2_243 = arith.constant 2 : index
    %c0_244 = arith.constant 0 : index
    %265 = vector.load %arg2[%c0_242, %264, %c2_243, %c0_244] : memref<1x18x18x8xbf16, #tpu.memory_space<vmem>>, vector<1x1x16x8xbf16>
    %266 = vector.shape_cast %265 : vector<1x1x16x8xbf16> to vector<16x8xbf16>
    %c8_245 = arith.constant 8 : index
    %c0_246 = arith.constant 0 : index
    %c0_247 = arith.constant 0 : index
    %267 = vector.load %arg3[%c8_245, %c0_246, %c0_247] : memref<9x8x128xbf16, #tpu.memory_space<vmem>>, vector<1x8x128xbf16>
    %268 = vector.shape_cast %267 : vector<1x8x128xbf16> to vector<8x128xbf16>
    %cst_248 = arith.constant dense<0.000000e+00> : vector<16x128xf32>
    %269 = tpu.matmul %266, %268, %cst_248 {dimension_numbers = #tpu.dot_dimension_numbers<[1], [0], [0], [1], [0, 0, 1, 1], [], []>} : vector<16x8xbf16>, vector<8x128xbf16>, vector<16x128xf32> -> vector<16x128xf32>
    %270 = arith.addf %261, %269 : vector<16x128xf32>
    %c0_249 = arith.constant 0 : index
    %c0_250 = arith.constant 0 : index
    %271 = vector.load %arg4[%c0_249, %c0_250] : memref<1x128xf32, #tpu.memory_space<vmem>>, vector<1x128xf32>
    %272 = vector.broadcast %271 : vector<1x128xf32> to vector<16x128xf32>
    %273 = arith.addf %270, %272 : vector<16x128xf32>
    %cst_251 = arith.constant 0.000000e+00 : f32
    %274 = vector.broadcast %cst_251 : f32 to vector<16x128xf32>
    %275 = arith.cmpf oge, %273, %274 : vector<16x128xf32>
    %cst_252 = arith.constant 2.000000e-01 : f32
    %276 = vector.broadcast %cst_252 : f32 to vector<16x128xf32>
    %277 = arith.mulf %276, %273 : vector<16x128xf32>
    %278 = arith.select %275, %273, %277 : vector<16x128xi1>, vector<16x128xf32>
    %279 = arith.truncf %278 : vector<16x128xf32> to vector<16x128xbf16>
    %c0_253 = arith.constant 0 : index
    %c2_254 = arith.constant 2 : index
    %c0_255 = arith.constant 0 : index
    %c0_256 = arith.constant 0 : index
    %280 = vector.load %arg5[%c0_253, %c2_254, %c0_255, %c0_256] : memref<1x8x16x128xbf16, #tpu.memory_space<vmem>>, vector<1x1x16x128xbf16>
    %281 = vector.shape_cast %280 : vector<1x1x16x128xbf16> to vector<16x128xbf16>
    %282 = vector.shape_cast %279 : vector<16x128xbf16> to vector<1x1x16x128xbf16>
    tpu.vector_store %arg5[%c0_253, %c2_254, %c0_255, %c0_256], %282 {strides = array<i32>} : memref<1x8x16x128xbf16, #tpu.memory_space<vmem>>, vector<1x1x16x128xbf16>,
    %cst_257 = arith.constant 0.000000e+00 : f32
    %283 = vector.broadcast %cst_257 : f32 to vector<16x128xf32>
    %c3_i32 = arith.constant 3 : i32
    %284 = arith.addi %0, %c3_i32 : i32
    %c0_i32_258 = arith.constant 0 : i32
    %285 = arith.addi %284, %c0_i32_258 : i32
    %c0_259 = arith.constant 0 : index
    %286 = arith.index_cast %285 : i32 to index
    %c0_260 = arith.constant 0 : index
    %c0_261 = arith.constant 0 : index
    %287 = vector.load %arg2[%c0_259, %286, %c0_260, %c0_261] : memref<1x18x18x8xbf16, #tpu.memory_space<vmem>>, vector<1x1x16x8xbf16>
    %288 = vector.shape_cast %287 : vector<1x1x16x8xbf16> to vector<16x8xbf16>
    %c0_262 = arith.constant 0 : index
    %c0_263 = arith.constant 0 : index
    %c0_264 = arith.constant 0 : index
    %289 = vector.load %arg3[%c0_262, %c0_263, %c0_264] : memref<9x8x128xbf16, #tpu.memory_space<vmem>>, vector<1x8x128xbf16>
    %290 = vector.shape_cast %289 : vector<1x8x128xbf16> to vector<8x128xbf16>
    %cst_265 = arith.constant dense<0.000000e+00> : vector<16x128xf32>
    %291 = tpu.matmul %288, %290, %cst_265 {dimension_numbers = #tpu.dot_dimension_numbers<[1], [0], [0], [1], [0, 0, 1, 1], [], []>} : vector<16x8xbf16>, vector<8x128xbf16>, vector<16x128xf32> -> vector<16x128xf32>
    %292 = arith.addf %283, %291 : vector<16x128xf32>
    %c3_i32_266 = arith.constant 3 : i32
    %293 = arith.addi %0, %c3_i32_266 : i32
    %c0_i32_267 = arith.constant 0 : i32
    %294 = arith.addi %293, %c0_i32_267 : i32
    %c0_268 = arith.constant 0 : index
    %295 = arith.index_cast %294 : i32 to index
    %c1_269 = arith.constant 1 : index
    %c0_270 = arith.constant 0 : index
    %296 = vector.load %arg2[%c0_268, %295, %c1_269, %c0_270] : memref<1x18x18x8xbf16, #tpu.memory_space<vmem>>, vector<1x1x16x8xbf16>
    %297 = vector.shape_cast %296 : vector<1x1x16x8xbf16> to vector<16x8xbf16>
    %c1_271 = arith.constant 1 : index
    %c0_272 = arith.constant 0 : index
    %c0_273 = arith.constant 0 : index
    %298 = vector.load %arg3[%c1_271, %c0_272, %c0_273] : memref<9x8x128xbf16, #tpu.memory_space<vmem>>, vector<1x8x128xbf16>
    %299 = vector.shape_cast %298 : vector<1x8x128xbf16> to vector<8x128xbf16>
    %cst_274 = arith.constant dense<0.000000e+00> : vector<16x128xf32>
    %300 = tpu.matmul %297, %299, %cst_274 {dimension_numbers = #tpu.dot_dimension_numbers<[1], [0], [0], [1], [0, 0, 1, 1], [], []>} : vector<16x8xbf16>, vector<8x128xbf16>, vector<16x128xf32> -> vector<16x128xf32>
    %301 = arith.addf %292, %300 : vector<16x128xf32>
    %c3_i32_275 = arith.constant 3 : i32
    %302 = arith.addi %0, %c3_i32_275 : i32
    %c0_i32_276 = arith.constant 0 : i32
    %303 = arith.addi %302, %c0_i32_276 : i32
    %c0_277 = arith.constant 0 : index
    %304 = arith.index_cast %303 : i32 to index
    %c2_278 = arith.constant 2 : index
    %c0_279 = arith.constant 0 : index
    %305 = vector.load %arg2[%c0_277, %304, %c2_278, %c0_279] : memref<1x18x18x8xbf16, #tpu.memory_space<vmem>>, vector<1x1x16x8xbf16>
    %306 = vector.shape_cast %305 : vector<1x1x16x8xbf16> to vector<16x8xbf16>
    %c2_280 = arith.constant 2 : index
    %c0_281 = arith.constant 0 : index
    %c0_282 = arith.constant 0 : index
    %307 = vector.load %arg3[%c2_280, %c0_281, %c0_282] : memref<9x8x128xbf16, #tpu.memory_space<vmem>>, vector<1x8x128xbf16>
    %308 = vector.shape_cast %307 : vector<1x8x128xbf16> to vector<8x128xbf16>
    %cst_283 = arith.constant dense<0.000000e+00> : vector<16x128xf32>
    %309 = tpu.matmul %306, %308, %cst_283 {dimension_numbers = #tpu.dot_dimension_numbers<[1], [0], [0], [1], [0, 0, 1, 1], [], []>} : vector<16x8xbf16>, vector<8x128xbf16>, vector<16x128xf32> -> vector<16x128xf32>
    %310 = arith.addf %301, %309 : vector<16x128xf32>
    %c3_i32_284 = arith.constant 3 : i32
    %311 = arith.addi %0, %c3_i32_284 : i32
    %c1_i32_285 = arith.constant 1 : i32
    %312 = arith.addi %311, %c1_i32_285 : i32
    %c0_286 = arith.constant 0 : index
    %313 = arith.index_cast %312 : i32 to index
    %c0_287 = arith.constant 0 : index
    %c0_288 = arith.constant 0 : index
    %314 = vector.load %arg2[%c0_286, %313, %c0_287, %c0_288] : memref<1x18x18x8xbf16, #tpu.memory_space<vmem>>, vector<1x1x16x8xbf16>
    %315 = vector.shape_cast %314 : vector<1x1x16x8xbf16> to vector<16x8xbf16>
    %c3_289 = arith.constant 3 : index
    %c0_290 = arith.constant 0 : index
    %c0_291 = arith.constant 0 : index
    %316 = vector.load %arg3[%c3_289, %c0_290, %c0_291] : memref<9x8x128xbf16, #tpu.memory_space<vmem>>, vector<1x8x128xbf16>
    %317 = vector.shape_cast %316 : vector<1x8x128xbf16> to vector<8x128xbf16>
    %cst_292 = arith.constant dense<0.000000e+00> : vector<16x128xf32>
    %318 = tpu.matmul %315, %317, %cst_292 {dimension_numbers = #tpu.dot_dimension_numbers<[1], [0], [0], [1], [0, 0, 1, 1], [], []>} : vector<16x8xbf16>, vector<8x128xbf16>, vector<16x128xf32> -> vector<16x128xf32>
    %319 = arith.addf %310, %318 : vector<16x128xf32>
    %c3_i32_293 = arith.constant 3 : i32
    %320 = arith.addi %0, %c3_i32_293 : i32
    %c1_i32_294 = arith.constant 1 : i32
    %321 = arith.addi %320, %c1_i32_294 : i32
    %c0_295 = arith.constant 0 : index
    %322 = arith.index_cast %321 : i32 to index
    %c1_296 = arith.constant 1 : index
    %c0_297 = arith.constant 0 : index
    %323 = vector.load %arg2[%c0_295, %322, %c1_296, %c0_297] : memref<1x18x18x8xbf16, #tpu.memory_space<vmem>>, vector<1x1x16x8xbf16>
    %324 = vector.shape_cast %323 : vector<1x1x16x8xbf16> to vector<16x8xbf16>
    %c4_298 = arith.constant 4 : index
    %c0_299 = arith.constant 0 : index
    %c0_300 = arith.constant 0 : index
    %325 = vector.load %arg3[%c4_298, %c0_299, %c0_300] : memref<9x8x128xbf16, #tpu.memory_space<vmem>>, vector<1x8x128xbf16>
    %326 = vector.shape_cast %325 : vector<1x8x128xbf16> to vector<8x128xbf16>
    %cst_301 = arith.constant dense<0.000000e+00> : vector<16x128xf32>
    %327 = tpu.matmul %324, %326, %cst_301 {dimension_numbers = #tpu.dot_dimension_numbers<[1], [0], [0], [1], [0, 0, 1, 1], [], []>} : vector<16x8xbf16>, vector<8x128xbf16>, vector<16x128xf32> -> vector<16x128xf32>
    %328 = arith.addf %319, %327 : vector<16x128xf32>
    %c3_i32_302 = arith.constant 3 : i32
    %329 = arith.addi %0, %c3_i32_302 : i32
    %c1_i32_303 = arith.constant 1 : i32
    %330 = arith.addi %329, %c1_i32_303 : i32
    %c0_304 = arith.constant 0 : index
    %331 = arith.index_cast %330 : i32 to index
    %c2_305 = arith.constant 2 : index
    %c0_306 = arith.constant 0 : index
    %332 = vector.load %arg2[%c0_304, %331, %c2_305, %c0_306] : memref<1x18x18x8xbf16, #tpu.memory_space<vmem>>, vector<1x1x16x8xbf16>
    %333 = vector.shape_cast %332 : vector<1x1x16x8xbf16> to vector<16x8xbf16>
    %c5_307 = arith.constant 5 : index
    %c0_308 = arith.constant 0 : index
    %c0_309 = arith.constant 0 : index
    %334 = vector.load %arg3[%c5_307, %c0_308, %c0_309] : memref<9x8x128xbf16, #tpu.memory_space<vmem>>, vector<1x8x128xbf16>
    %335 = vector.shape_cast %334 : vector<1x8x128xbf16> to vector<8x128xbf16>
    %cst_310 = arith.constant dense<0.000000e+00> : vector<16x128xf32>
    %336 = tpu.matmul %333, %335, %cst_310 {dimension_numbers = #tpu.dot_dimension_numbers<[1], [0], [0], [1], [0, 0, 1, 1], [], []>} : vector<16x8xbf16>, vector<8x128xbf16>, vector<16x128xf32> -> vector<16x128xf32>
    %337 = arith.addf %328, %336 : vector<16x128xf32>
    %c3_i32_311 = arith.constant 3 : i32
    %338 = arith.addi %0, %c3_i32_311 : i32
    %c2_i32_312 = arith.constant 2 : i32
    %339 = arith.addi %338, %c2_i32_312 : i32
    %c0_313 = arith.constant 0 : index
    %340 = arith.index_cast %339 : i32 to index
    %c0_314 = arith.constant 0 : index
    %c0_315 = arith.constant 0 : index
    %341 = vector.load %arg2[%c0_313, %340, %c0_314, %c0_315] : memref<1x18x18x8xbf16, #tpu.memory_space<vmem>>, vector<1x1x16x8xbf16>
    %342 = vector.shape_cast %341 : vector<1x1x16x8xbf16> to vector<16x8xbf16>
    %c6_316 = arith.constant 6 : index
    %c0_317 = arith.constant 0 : index
    %c0_318 = arith.constant 0 : index
    %343 = vector.load %arg3[%c6_316, %c0_317, %c0_318] : memref<9x8x128xbf16, #tpu.memory_space<vmem>>, vector<1x8x128xbf16>
    %344 = vector.shape_cast %343 : vector<1x8x128xbf16> to vector<8x128xbf16>
    %cst_319 = arith.constant dense<0.000000e+00> : vector<16x128xf32>
    %345 = tpu.matmul %342, %344, %cst_319 {dimension_numbers = #tpu.dot_dimension_numbers<[1], [0], [0], [1], [0, 0, 1, 1], [], []>} : vector<16x8xbf16>, vector<8x128xbf16>, vector<16x128xf32> -> vector<16x128xf32>
    %346 = arith.addf %337, %345 : vector<16x128xf32>
    %c3_i32_320 = arith.constant 3 : i32
    %347 = arith.addi %0, %c3_i32_320 : i32
    %c2_i32_321 = arith.constant 2 : i32
    %348 = arith.addi %347, %c2_i32_321 : i32
    %c0_322 = arith.constant 0 : index
    %349 = arith.index_cast %348 : i32 to index
    %c1_323 = arith.constant 1 : index
    %c0_324 = arith.constant 0 : index
    %350 = vector.load %arg2[%c0_322, %349, %c1_323, %c0_324] : memref<1x18x18x8xbf16, #tpu.memory_space<vmem>>, vector<1x1x16x8xbf16>
    %351 = vector.shape_cast %350 : vector<1x1x16x8xbf16> to vector<16x8xbf16>
    %c7_325 = arith.constant 7 : index
    %c0_326 = arith.constant 0 : index
    %c0_327 = arith.constant 0 : index
    %352 = vector.load %arg3[%c7_325, %c0_326, %c0_327] : memref<9x8x128xbf16, #tpu.memory_space<vmem>>, vector<1x8x128xbf16>
    %353 = vector.shape_cast %352 : vector<1x8x128xbf16> to vector<8x128xbf16>
    %cst_328 = arith.constant dense<0.000000e+00> : vector<16x128xf32>
    %354 = tpu.matmul %351, %353, %cst_328 {dimension_numbers = #tpu.dot_dimension_numbers<[1], [0], [0], [1], [0, 0, 1, 1], [], []>} : vector<16x8xbf16>, vector<8x128xbf16>, vector<16x128xf32> -> vector<16x128xf32>
    %355 = arith.addf %346, %354 : vector<16x128xf32>
    %c3_i32_329 = arith.constant 3 : i32
    %356 = arith.addi %0, %c3_i32_329 : i32
    %c2_i32_330 = arith.constant 2 : i32
    %357 = arith.addi %356, %c2_i32_330 : i32
    %c0_331 = arith.constant 0 : index
    %358 = arith.index_cast %357 : i32 to index
    %c2_332 = arith.constant 2 : index
    %c0_333 = arith.constant 0 : index
    %359 = vector.load %arg2[%c0_331, %358, %c2_332, %c0_333] : memref<1x18x18x8xbf16, #tpu.memory_space<vmem>>, vector<1x1x16x8xbf16>
    %360 = vector.shape_cast %359 : vector<1x1x16x8xbf16> to vector<16x8xbf16>
    %c8_334 = arith.constant 8 : index
    %c0_335 = arith.constant 0 : index
    %c0_336 = arith.constant 0 : index
    %361 = vector.load %arg3[%c8_334, %c0_335, %c0_336] : memref<9x8x128xbf16, #tpu.memory_space<vmem>>, vector<1x8x128xbf16>
    %362 = vector.shape_cast %361 : vector<1x8x128xbf16> to vector<8x128xbf16>
    %cst_337 = arith.constant dense<0.000000e+00> : vector<16x128xf32>
    %363 = tpu.matmul %360, %362, %cst_337 {dimension_numbers = #tpu.dot_dimension_numbers<[1], [0], [0], [1], [0, 0, 1, 1], [], []>} : vector<16x8xbf16>, vector<8x128xbf16>, vector<16x128xf32> -> vector<16x128xf32>
    %364 = arith.addf %355, %363 : vector<16x128xf32>
    %c0_338 = arith.constant 0 : index
    %c0_339 = arith.constant 0 : index
    %365 = vector.load %arg4[%c0_338, %c0_339] : memref<1x128xf32, #tpu.memory_space<vmem>>, vector<1x128xf32>
    %366 = vector.broadcast %365 : vector<1x128xf32> to vector<16x128xf32>
    %367 = arith.addf %364, %366 : vector<16x128xf32>
    %cst_340 = arith.constant 0.000000e+00 : f32
    %368 = vector.broadcast %cst_340 : f32 to vector<16x128xf32>
    %369 = arith.cmpf oge, %367, %368 : vector<16x128xf32>
    %cst_341 = arith.constant 2.000000e-01 : f32
    %370 = vector.broadcast %cst_341 : f32 to vector<16x128xf32>
    %371 = arith.mulf %370, %367 : vector<16x128xf32>
    %372 = arith.select %369, %367, %371 : vector<16x128xi1>, vector<16x128xf32>
    %373 = arith.truncf %372 : vector<16x128xf32> to vector<16x128xbf16>
    %c0_342 = arith.constant 0 : index
    %c3_343 = arith.constant 3 : index
    %c0_344 = arith.constant 0 : index
    %c0_345 = arith.constant 0 : index
    %374 = vector.load %arg5[%c0_342, %c3_343, %c0_344, %c0_345] : memref<1x8x16x128xbf16, #tpu.memory_space<vmem>>, vector<1x1x16x128xbf16>
    %375 = vector.shape_cast %374 : vector<1x1x16x128xbf16> to vector<16x128xbf16>
    %376 = vector.shape_cast %373 : vector<16x128xbf16> to vector<1x1x16x128xbf16>
    tpu.vector_store %arg5[%c0_342, %c3_343, %c0_344, %c0_345], %376 {strides = array<i32>} : memref<1x8x16x128xbf16, #tpu.memory_space<vmem>>, vector<1x1x16x128xbf16>,
    %cst_346 = arith.constant 0.000000e+00 : f32
    %377 = vector.broadcast %cst_346 : f32 to vector<16x128xf32>
    %c4_i32 = arith.constant 4 : i32
    %378 = arith.addi %0, %c4_i32 : i32
    %c0_i32_347 = arith.constant 0 : i32
    %379 = arith.addi %378, %c0_i32_347 : i32
    %c0_348 = arith.constant 0 : index
    %380 = arith.index_cast %379 : i32 to index
    %c0_349 = arith.constant 0 : index
    %c0_350 = arith.constant 0 : index
    %381 = vector.load %arg2[%c0_348, %380, %c0_349, %c0_350] : memref<1x18x18x8xbf16, #tpu.memory_space<vmem>>, vector<1x1x16x8xbf16>
    %382 = vector.shape_cast %381 : vector<1x1x16x8xbf16> to vector<16x8xbf16>
    %c0_351 = arith.constant 0 : index
    %c0_352 = arith.constant 0 : index
    %c0_353 = arith.constant 0 : index
    %383 = vector.load %arg3[%c0_351, %c0_352, %c0_353] : memref<9x8x128xbf16, #tpu.memory_space<vmem>>, vector<1x8x128xbf16>
    %384 = vector.shape_cast %383 : vector<1x8x128xbf16> to vector<8x128xbf16>
    %cst_354 = arith.constant dense<0.000000e+00> : vector<16x128xf32>
    %385 = tpu.matmul %382, %384, %cst_354 {dimension_numbers = #tpu.dot_dimension_numbers<[1], [0], [0], [1], [0, 0, 1, 1], [], []>} : vector<16x8xbf16>, vector<8x128xbf16>, vector<16x128xf32> -> vector<16x128xf32>
    %386 = arith.addf %377, %385 : vector<16x128xf32>
    %c4_i32_355 = arith.constant 4 : i32
    %387 = arith.addi %0, %c4_i32_355 : i32
    %c0_i32_356 = arith.constant 0 : i32
    %388 = arith.addi %387, %c0_i32_356 : i32
    %c0_357 = arith.constant 0 : index
    %389 = arith.index_cast %388 : i32 to index
    %c1_358 = arith.constant 1 : index
    %c0_359 = arith.constant 0 : index
    %390 = vector.load %arg2[%c0_357, %389, %c1_358, %c0_359] : memref<1x18x18x8xbf16, #tpu.memory_space<vmem>>, vector<1x1x16x8xbf16>
    %391 = vector.shape_cast %390 : vector<1x1x16x8xbf16> to vector<16x8xbf16>
    %c1_360 = arith.constant 1 : index
    %c0_361 = arith.constant 0 : index
    %c0_362 = arith.constant 0 : index
    %392 = vector.load %arg3[%c1_360, %c0_361, %c0_362] : memref<9x8x128xbf16, #tpu.memory_space<vmem>>, vector<1x8x128xbf16>
    %393 = vector.shape_cast %392 : vector<1x8x128xbf16> to vector<8x128xbf16>
    %cst_363 = arith.constant dense<0.000000e+00> : vector<16x128xf32>
    %394 = tpu.matmul %391, %393, %cst_363 {dimension_numbers = #tpu.dot_dimension_numbers<[1], [0], [0], [1], [0, 0, 1, 1], [], []>} : vector<16x8xbf16>, vector<8x128xbf16>, vector<16x128xf32> -> vector<16x128xf32>
    %395 = arith.addf %386, %394 : vector<16x128xf32>
    %c4_i32_364 = arith.constant 4 : i32
    %396 = arith.addi %0, %c4_i32_364 : i32
    %c0_i32_365 = arith.constant 0 : i32
    %397 = arith.addi %396, %c0_i32_365 : i32
    %c0_366 = arith.constant 0 : index
    %398 = arith.index_cast %397 : i32 to index
    %c2_367 = arith.constant 2 : index
    %c0_368 = arith.constant 0 : index
    %399 = vector.load %arg2[%c0_366, %398, %c2_367, %c0_368] : memref<1x18x18x8xbf16, #tpu.memory_space<vmem>>, vector<1x1x16x8xbf16>
    %400 = vector.shape_cast %399 : vector<1x1x16x8xbf16> to vector<16x8xbf16>
    %c2_369 = arith.constant 2 : index
    %c0_370 = arith.constant 0 : index
    %c0_371 = arith.constant 0 : index
    %401 = vector.load %arg3[%c2_369, %c0_370, %c0_371] : memref<9x8x128xbf16, #tpu.memory_space<vmem>>, vector<1x8x128xbf16>
    %402 = vector.shape_cast %401 : vector<1x8x128xbf16> to vector<8x128xbf16>
    %cst_372 = arith.constant dense<0.000000e+00> : vector<16x128xf32>
    %403 = tpu.matmul %400, %402, %cst_372 {dimension_numbers = #tpu.dot_dimension_numbers<[1], [0], [0], [1], [0, 0, 1, 1], [], []>} : vector<16x8xbf16>, vector<8x128xbf16>, vector<16x128xf32> -> vector<16x128xf32>
    %404 = arith.addf %395, %403 : vector<16x128xf32>
    %c4_i32_373 = arith.constant 4 : i32
    %405 = arith.addi %0, %c4_i32_373 : i32
    %c1_i32_374 = arith.constant 1 : i32
    %406 = arith.addi %405, %c1_i32_374 : i32
    %c0_375 = arith.constant 0 : index
    %407 = arith.index_cast %406 : i32 to index
    %c0_376 = arith.constant 0 : index
    %c0_377 = arith.constant 0 : index
    %408 = vector.load %arg2[%c0_375, %407, %c0_376, %c0_377] : memref<1x18x18x8xbf16, #tpu.memory_space<vmem>>, vector<1x1x16x8xbf16>
    %409 = vector.shape_cast %408 : vector<1x1x16x8xbf16> to vector<16x8xbf16>
    %c3_378 = arith.constant 3 : index
    %c0_379 = arith.constant 0 : index
    %c0_380 = arith.constant 0 : index
    %410 = vector.load %arg3[%c3_378, %c0_379, %c0_380] : memref<9x8x128xbf16, #tpu.memory_space<vmem>>, vector<1x8x128xbf16>
    %411 = vector.shape_cast %410 : vector<1x8x128xbf16> to vector<8x128xbf16>
    %cst_381 = arith.constant dense<0.000000e+00> : vector<16x128xf32>
    %412 = tpu.matmul %409, %411, %cst_381 {dimension_numbers = #tpu.dot_dimension_numbers<[1], [0], [0], [1], [0, 0, 1, 1], [], []>} : vector<16x8xbf16>, vector<8x128xbf16>, vector<16x128xf32> -> vector<16x128xf32>
    %413 = arith.addf %404, %412 : vector<16x128xf32>
    %c4_i32_382 = arith.constant 4 : i32
    %414 = arith.addi %0, %c4_i32_382 : i32
    %c1_i32_383 = arith.constant 1 : i32
    %415 = arith.addi %414, %c1_i32_383 : i32
    %c0_384 = arith.constant 0 : index
    %416 = arith.index_cast %415 : i32 to index
    %c1_385 = arith.constant 1 : index
    %c0_386 = arith.constant 0 : index
    %417 = vector.load %arg2[%c0_384, %416, %c1_385, %c0_386] : memref<1x18x18x8xbf16, #tpu.memory_space<vmem>>, vector<1x1x16x8xbf16>
    %418 = vector.shape_cast %417 : vector<1x1x16x8xbf16> to vector<16x8xbf16>
    %c4_387 = arith.constant 4 : index
    %c0_388 = arith.constant 0 : index
    %c0_389 = arith.constant 0 : index
    %419 = vector.load %arg3[%c4_387, %c0_388, %c0_389] : memref<9x8x128xbf16, #tpu.memory_space<vmem>>, vector<1x8x128xbf16>
    %420 = vector.shape_cast %419 : vector<1x8x128xbf16> to vector<8x128xbf16>
    %cst_390 = arith.constant dense<0.000000e+00> : vector<16x128xf32>
    %421 = tpu.matmul %418, %420, %cst_390 {dimension_numbers = #tpu.dot_dimension_numbers<[1], [0], [0], [1], [0, 0, 1, 1], [], []>} : vector<16x8xbf16>, vector<8x128xbf16>, vector<16x128xf32> -> vector<16x128xf32>
    %422 = arith.addf %413, %421 : vector<16x128xf32>
    %c4_i32_391 = arith.constant 4 : i32
    %423 = arith.addi %0, %c4_i32_391 : i32
    %c1_i32_392 = arith.constant 1 : i32
    %424 = arith.addi %423, %c1_i32_392 : i32
    %c0_393 = arith.constant 0 : index
    %425 = arith.index_cast %424 : i32 to index
    %c2_394 = arith.constant 2 : index
    %c0_395 = arith.constant 0 : index
    %426 = vector.load %arg2[%c0_393, %425, %c2_394, %c0_395] : memref<1x18x18x8xbf16, #tpu.memory_space<vmem>>, vector<1x1x16x8xbf16>
    %427 = vector.shape_cast %426 : vector<1x1x16x8xbf16> to vector<16x8xbf16>
    %c5_396 = arith.constant 5 : index
    %c0_397 = arith.constant 0 : index
    %c0_398 = arith.constant 0 : index
    %428 = vector.load %arg3[%c5_396, %c0_397, %c0_398] : memref<9x8x128xbf16, #tpu.memory_space<vmem>>, vector<1x8x128xbf16>
    %429 = vector.shape_cast %428 : vector<1x8x128xbf16> to vector<8x128xbf16>
    %cst_399 = arith.constant dense<0.000000e+00> : vector<16x128xf32>
    %430 = tpu.matmul %427, %429, %cst_399 {dimension_numbers = #tpu.dot_dimension_numbers<[1], [0], [0], [1], [0, 0, 1, 1], [], []>} : vector<16x8xbf16>, vector<8x128xbf16>, vector<16x128xf32> -> vector<16x128xf32>
    %431 = arith.addf %422, %430 : vector<16x128xf32>
    %c4_i32_400 = arith.constant 4 : i32
    %432 = arith.addi %0, %c4_i32_400 : i32
    %c2_i32_401 = arith.constant 2 : i32
    %433 = arith.addi %432, %c2_i32_401 : i32
    %c0_402 = arith.constant 0 : index
    %434 = arith.index_cast %433 : i32 to index
    %c0_403 = arith.constant 0 : index
    %c0_404 = arith.constant 0 : index
    %435 = vector.load %arg2[%c0_402, %434, %c0_403, %c0_404] : memref<1x18x18x8xbf16, #tpu.memory_space<vmem>>, vector<1x1x16x8xbf16>
    %436 = vector.shape_cast %435 : vector<1x1x16x8xbf16> to vector<16x8xbf16>
    %c6_405 = arith.constant 6 : index
    %c0_406 = arith.constant 0 : index
    %c0_407 = arith.constant 0 : index
    %437 = vector.load %arg3[%c6_405, %c0_406, %c0_407] : memref<9x8x128xbf16, #tpu.memory_space<vmem>>, vector<1x8x128xbf16>
    %438 = vector.shape_cast %437 : vector<1x8x128xbf16> to vector<8x128xbf16>
    %cst_408 = arith.constant dense<0.000000e+00> : vector<16x128xf32>
    %439 = tpu.matmul %436, %438, %cst_408 {dimension_numbers = #tpu.dot_dimension_numbers<[1], [0], [0], [1], [0, 0, 1, 1], [], []>} : vector<16x8xbf16>, vector<8x128xbf16>, vector<16x128xf32> -> vector<16x128xf32>
    %440 = arith.addf %431, %439 : vector<16x128xf32>
    %c4_i32_409 = arith.constant 4 : i32
    %441 = arith.addi %0, %c4_i32_409 : i32
    %c2_i32_410 = arith.constant 2 : i32
    %442 = arith.addi %441, %c2_i32_410 : i32
    %c0_411 = arith.constant 0 : index
    %443 = arith.index_cast %442 : i32 to index
    %c1_412 = arith.constant 1 : index
    %c0_413 = arith.constant 0 : index
    %444 = vector.load %arg2[%c0_411, %443, %c1_412, %c0_413] : memref<1x18x18x8xbf16, #tpu.memory_space<vmem>>, vector<1x1x16x8xbf16>
    %445 = vector.shape_cast %444 : vector<1x1x16x8xbf16> to vector<16x8xbf16>
    %c7_414 = arith.constant 7 : index
    %c0_415 = arith.constant 0 : index
    %c0_416 = arith.constant 0 : index
    %446 = vector.load %arg3[%c7_414, %c0_415, %c0_416] : memref<9x8x128xbf16, #tpu.memory_space<vmem>>, vector<1x8x128xbf16>
    %447 = vector.shape_cast %446 : vector<1x8x128xbf16> to vector<8x128xbf16>
    %cst_417 = arith.constant dense<0.000000e+00> : vector<16x128xf32>
    %448 = tpu.matmul %445, %447, %cst_417 {dimension_numbers = #tpu.dot_dimension_numbers<[1], [0], [0], [1], [0, 0, 1, 1], [], []>} : vector<16x8xbf16>, vector<8x128xbf16>, vector<16x128xf32> -> vector<16x128xf32>
    %449 = arith.addf %440, %448 : vector<16x128xf32>
    %c4_i32_418 = arith.constant 4 : i32
    %450 = arith.addi %0, %c4_i32_418 : i32
    %c2_i32_419 = arith.constant 2 : i32
    %451 = arith.addi %450, %c2_i32_419 : i32
    %c0_420 = arith.constant 0 : index
    %452 = arith.index_cast %451 : i32 to index
    %c2_421 = arith.constant 2 : index
    %c0_422 = arith.constant 0 : index
    %453 = vector.load %arg2[%c0_420, %452, %c2_421, %c0_422] : memref<1x18x18x8xbf16, #tpu.memory_space<vmem>>, vector<1x1x16x8xbf16>
    %454 = vector.shape_cast %453 : vector<1x1x16x8xbf16> to vector<16x8xbf16>
    %c8_423 = arith.constant 8 : index
    %c0_424 = arith.constant 0 : index
    %c0_425 = arith.constant 0 : index
    %455 = vector.load %arg3[%c8_423, %c0_424, %c0_425] : memref<9x8x128xbf16, #tpu.memory_space<vmem>>, vector<1x8x128xbf16>
    %456 = vector.shape_cast %455 : vector<1x8x128xbf16> to vector<8x128xbf16>
    %cst_426 = arith.constant dense<0.000000e+00> : vector<16x128xf32>
    %457 = tpu.matmul %454, %456, %cst_426 {dimension_numbers = #tpu.dot_dimension_numbers<[1], [0], [0], [1], [0, 0, 1, 1], [], []>} : vector<16x8xbf16>, vector<8x128xbf16>, vector<16x128xf32> -> vector<16x128xf32>
    %458 = arith.addf %449, %457 : vector<16x128xf32>
    %c0_427 = arith.constant 0 : index
    %c0_428 = arith.constant 0 : index
    %459 = vector.load %arg4[%c0_427, %c0_428] : memref<1x128xf32, #tpu.memory_space<vmem>>, vector<1x128xf32>
    %460 = vector.broadcast %459 : vector<1x128xf32> to vector<16x128xf32>
    %461 = arith.addf %458, %460 : vector<16x128xf32>
    %cst_429 = arith.constant 0.000000e+00 : f32
    %462 = vector.broadcast %cst_429 : f32 to vector<16x128xf32>
    %463 = arith.cmpf oge, %461, %462 : vector<16x128xf32>
    %cst_430 = arith.constant 2.000000e-01 : f32
    %464 = vector.broadcast %cst_430 : f32 to vector<16x128xf32>
    %465 = arith.mulf %464, %461 : vector<16x128xf32>
    %466 = arith.select %463, %461, %465 : vector<16x128xi1>, vector<16x128xf32>
    %467 = arith.truncf %466 : vector<16x128xf32> to vector<16x128xbf16>
    %c0_431 = arith.constant 0 : index
    %c4_432 = arith.constant 4 : index
    %c0_433 = arith.constant 0 : index
    %c0_434 = arith.constant 0 : index
    %468 = vector.load %arg5[%c0_431, %c4_432, %c0_433, %c0_434] : memref<1x8x16x128xbf16, #tpu.memory_space<vmem>>, vector<1x1x16x128xbf16>
    %469 = vector.shape_cast %468 : vector<1x1x16x128xbf16> to vector<16x128xbf16>
    %470 = vector.shape_cast %467 : vector<16x128xbf16> to vector<1x1x16x128xbf16>
    tpu.vector_store %arg5[%c0_431, %c4_432, %c0_433, %c0_434], %470 {strides = array<i32>} : memref<1x8x16x128xbf16, #tpu.memory_space<vmem>>, vector<1x1x16x128xbf16>,
    %cst_435 = arith.constant 0.000000e+00 : f32
    %471 = vector.broadcast %cst_435 : f32 to vector<16x128xf32>
    %c5_i32 = arith.constant 5 : i32
    %472 = arith.addi %0, %c5_i32 : i32
    %c0_i32_436 = arith.constant 0 : i32
    %473 = arith.addi %472, %c0_i32_436 : i32
    %c0_437 = arith.constant 0 : index
    %474 = arith.index_cast %473 : i32 to index
    %c0_438 = arith.constant 0 : index
    %c0_439 = arith.constant 0 : index
    %475 = vector.load %arg2[%c0_437, %474, %c0_438, %c0_439] : memref<1x18x18x8xbf16, #tpu.memory_space<vmem>>, vector<1x1x16x8xbf16>
    %476 = vector.shape_cast %475 : vector<1x1x16x8xbf16> to vector<16x8xbf16>
    %c0_440 = arith.constant 0 : index
    %c0_441 = arith.constant 0 : index
    %c0_442 = arith.constant 0 : index
    %477 = vector.load %arg3[%c0_440, %c0_441, %c0_442] : memref<9x8x128xbf16, #tpu.memory_space<vmem>>, vector<1x8x128xbf16>
    %478 = vector.shape_cast %477 : vector<1x8x128xbf16> to vector<8x128xbf16>
    %cst_443 = arith.constant dense<0.000000e+00> : vector<16x128xf32>
    %479 = tpu.matmul %476, %478, %cst_443 {dimension_numbers = #tpu.dot_dimension_numbers<[1], [0], [0], [1], [0, 0, 1, 1], [], []>} : vector<16x8xbf16>, vector<8x128xbf16>, vector<16x128xf32> -> vector<16x128xf32>
    %480 = arith.addf %471, %479 : vector<16x128xf32>
    %c5_i32_444 = arith.constant 5 : i32
    %481 = arith.addi %0, %c5_i32_444 : i32
    %c0_i32_445 = arith.constant 0 : i32
    %482 = arith.addi %481, %c0_i32_445 : i32
    %c0_446 = arith.constant 0 : index
    %483 = arith.index_cast %482 : i32 to index
    %c1_447 = arith.constant 1 : index
    %c0_448 = arith.constant 0 : index
    %484 = vector.load %arg2[%c0_446, %483, %c1_447, %c0_448] : memref<1x18x18x8xbf16, #tpu.memory_space<vmem>>, vector<1x1x16x8xbf16>
    %485 = vector.shape_cast %484 : vector<1x1x16x8xbf16> to vector<16x8xbf16>
    %c1_449 = arith.constant 1 : index
    %c0_450 = arith.constant 0 : index
    %c0_451 = arith.constant 0 : index
    %486 = vector.load %arg3[%c1_449, %c0_450, %c0_451] : memref<9x8x128xbf16, #tpu.memory_space<vmem>>, vector<1x8x128xbf16>
    %487 = vector.shape_cast %486 : vector<1x8x128xbf16> to vector<8x128xbf16>
    %cst_452 = arith.constant dense<0.000000e+00> : vector<16x128xf32>
    %488 = tpu.matmul %485, %487, %cst_452 {dimension_numbers = #tpu.dot_dimension_numbers<[1], [0], [0], [1], [0, 0, 1, 1], [], []>} : vector<16x8xbf16>, vector<8x128xbf16>, vector<16x128xf32> -> vector<16x128xf32>
    %489 = arith.addf %480, %488 : vector<16x128xf32>
    %c5_i32_453 = arith.constant 5 : i32
    %490 = arith.addi %0, %c5_i32_453 : i32
    %c0_i32_454 = arith.constant 0 : i32
    %491 = arith.addi %490, %c0_i32_454 : i32
    %c0_455 = arith.constant 0 : index
    %492 = arith.index_cast %491 : i32 to index
    %c2_456 = arith.constant 2 : index
    %c0_457 = arith.constant 0 : index
    %493 = vector.load %arg2[%c0_455, %492, %c2_456, %c0_457] : memref<1x18x18x8xbf16, #tpu.memory_space<vmem>>, vector<1x1x16x8xbf16>
    %494 = vector.shape_cast %493 : vector<1x1x16x8xbf16> to vector<16x8xbf16>
    %c2_458 = arith.constant 2 : index
    %c0_459 = arith.constant 0 : index
    %c0_460 = arith.constant 0 : index
    %495 = vector.load %arg3[%c2_458, %c0_459, %c0_460] : memref<9x8x128xbf16, #tpu.memory_space<vmem>>, vector<1x8x128xbf16>
    %496 = vector.shape_cast %495 : vector<1x8x128xbf16> to vector<8x128xbf16>
    %cst_461 = arith.constant dense<0.000000e+00> : vector<16x128xf32>
    %497 = tpu.matmul %494, %496, %cst_461 {dimension_numbers = #tpu.dot_dimension_numbers<[1], [0], [0], [1], [0, 0, 1, 1], [], []>} : vector<16x8xbf16>, vector<8x128xbf16>, vector<16x128xf32> -> vector<16x128xf32>
    %498 = arith.addf %489, %497 : vector<16x128xf32>
    %c5_i32_462 = arith.constant 5 : i32
    %499 = arith.addi %0, %c5_i32_462 : i32
    %c1_i32_463 = arith.constant 1 : i32
    %500 = arith.addi %499, %c1_i32_463 : i32
    %c0_464 = arith.constant 0 : index
    %501 = arith.index_cast %500 : i32 to index
    %c0_465 = arith.constant 0 : index
    %c0_466 = arith.constant 0 : index
    %502 = vector.load %arg2[%c0_464, %501, %c0_465, %c0_466] : memref<1x18x18x8xbf16, #tpu.memory_space<vmem>>, vector<1x1x16x8xbf16>
    %503 = vector.shape_cast %502 : vector<1x1x16x8xbf16> to vector<16x8xbf16>
    %c3_467 = arith.constant 3 : index
    %c0_468 = arith.constant 0 : index
    %c0_469 = arith.constant 0 : index
    %504 = vector.load %arg3[%c3_467, %c0_468, %c0_469] : memref<9x8x128xbf16, #tpu.memory_space<vmem>>, vector<1x8x128xbf16>
    %505 = vector.shape_cast %504 : vector<1x8x128xbf16> to vector<8x128xbf16>
    %cst_470 = arith.constant dense<0.000000e+00> : vector<16x128xf32>
    %506 = tpu.matmul %503, %505, %cst_470 {dimension_numbers = #tpu.dot_dimension_numbers<[1], [0], [0], [1], [0, 0, 1, 1], [], []>} : vector<16x8xbf16>, vector<8x128xbf16>, vector<16x128xf32> -> vector<16x128xf32>
    %507 = arith.addf %498, %506 : vector<16x128xf32>
    %c5_i32_471 = arith.constant 5 : i32
    %508 = arith.addi %0, %c5_i32_471 : i32
    %c1_i32_472 = arith.constant 1 : i32
    %509 = arith.addi %508, %c1_i32_472 : i32
    %c0_473 = arith.constant 0 : index
    %510 = arith.index_cast %509 : i32 to index
    %c1_474 = arith.constant 1 : index
    %c0_475 = arith.constant 0 : index
    %511 = vector.load %arg2[%c0_473, %510, %c1_474, %c0_475] : memref<1x18x18x8xbf16, #tpu.memory_space<vmem>>, vector<1x1x16x8xbf16>
    %512 = vector.shape_cast %511 : vector<1x1x16x8xbf16> to vector<16x8xbf16>
    %c4_476 = arith.constant 4 : index
    %c0_477 = arith.constant 0 : index
    %c0_478 = arith.constant 0 : index
    %513 = vector.load %arg3[%c4_476, %c0_477, %c0_478] : memref<9x8x128xbf16, #tpu.memory_space<vmem>>, vector<1x8x128xbf16>
    %514 = vector.shape_cast %513 : vector<1x8x128xbf16> to vector<8x128xbf16>
    %cst_479 = arith.constant dense<0.000000e+00> : vector<16x128xf32>
    %515 = tpu.matmul %512, %514, %cst_479 {dimension_numbers = #tpu.dot_dimension_numbers<[1], [0], [0], [1], [0, 0, 1, 1], [], []>} : vector<16x8xbf16>, vector<8x128xbf16>, vector<16x128xf32> -> vector<16x128xf32>
    %516 = arith.addf %507, %515 : vector<16x128xf32>
    %c5_i32_480 = arith.constant 5 : i32
    %517 = arith.addi %0, %c5_i32_480 : i32
    %c1_i32_481 = arith.constant 1 : i32
    %518 = arith.addi %517, %c1_i32_481 : i32
    %c0_482 = arith.constant 0 : index
    %519 = arith.index_cast %518 : i32 to index
    %c2_483 = arith.constant 2 : index
    %c0_484 = arith.constant 0 : index
    %520 = vector.load %arg2[%c0_482, %519, %c2_483, %c0_484] : memref<1x18x18x8xbf16, #tpu.memory_space<vmem>>, vector<1x1x16x8xbf16>
    %521 = vector.shape_cast %520 : vector<1x1x16x8xbf16> to vector<16x8xbf16>
    %c5_485 = arith.constant 5 : index
    %c0_486 = arith.constant 0 : index
    %c0_487 = arith.constant 0 : index
    %522 = vector.load %arg3[%c5_485, %c0_486, %c0_487] : memref<9x8x128xbf16, #tpu.memory_space<vmem>>, vector<1x8x128xbf16>
    %523 = vector.shape_cast %522 : vector<1x8x128xbf16> to vector<8x128xbf16>
    %cst_488 = arith.constant dense<0.000000e+00> : vector<16x128xf32>
    %524 = tpu.matmul %521, %523, %cst_488 {dimension_numbers = #tpu.dot_dimension_numbers<[1], [0], [0], [1], [0, 0, 1, 1], [], []>} : vector<16x8xbf16>, vector<8x128xbf16>, vector<16x128xf32> -> vector<16x128xf32>
    %525 = arith.addf %516, %524 : vector<16x128xf32>
    %c5_i32_489 = arith.constant 5 : i32
    %526 = arith.addi %0, %c5_i32_489 : i32
    %c2_i32_490 = arith.constant 2 : i32
    %527 = arith.addi %526, %c2_i32_490 : i32
    %c0_491 = arith.constant 0 : index
    %528 = arith.index_cast %527 : i32 to index
    %c0_492 = arith.constant 0 : index
    %c0_493 = arith.constant 0 : index
    %529 = vector.load %arg2[%c0_491, %528, %c0_492, %c0_493] : memref<1x18x18x8xbf16, #tpu.memory_space<vmem>>, vector<1x1x16x8xbf16>
    %530 = vector.shape_cast %529 : vector<1x1x16x8xbf16> to vector<16x8xbf16>
    %c6_494 = arith.constant 6 : index
    %c0_495 = arith.constant 0 : index
    %c0_496 = arith.constant 0 : index
    %531 = vector.load %arg3[%c6_494, %c0_495, %c0_496] : memref<9x8x128xbf16, #tpu.memory_space<vmem>>, vector<1x8x128xbf16>
    %532 = vector.shape_cast %531 : vector<1x8x128xbf16> to vector<8x128xbf16>
    %cst_497 = arith.constant dense<0.000000e+00> : vector<16x128xf32>
    %533 = tpu.matmul %530, %532, %cst_497 {dimension_numbers = #tpu.dot_dimension_numbers<[1], [0], [0], [1], [0, 0, 1, 1], [], []>} : vector<16x8xbf16>, vector<8x128xbf16>, vector<16x128xf32> -> vector<16x128xf32>
    %534 = arith.addf %525, %533 : vector<16x128xf32>
    %c5_i32_498 = arith.constant 5 : i32
    %535 = arith.addi %0, %c5_i32_498 : i32
    %c2_i32_499 = arith.constant 2 : i32
    %536 = arith.addi %535, %c2_i32_499 : i32
    %c0_500 = arith.constant 0 : index
    %537 = arith.index_cast %536 : i32 to index
    %c1_501 = arith.constant 1 : index
    %c0_502 = arith.constant 0 : index
    %538 = vector.load %arg2[%c0_500, %537, %c1_501, %c0_502] : memref<1x18x18x8xbf16, #tpu.memory_space<vmem>>, vector<1x1x16x8xbf16>
    %539 = vector.shape_cast %538 : vector<1x1x16x8xbf16> to vector<16x8xbf16>
    %c7_503 = arith.constant 7 : index
    %c0_504 = arith.constant 0 : index
    %c0_505 = arith.constant 0 : index
    %540 = vector.load %arg3[%c7_503, %c0_504, %c0_505] : memref<9x8x128xbf16, #tpu.memory_space<vmem>>, vector<1x8x128xbf16>
    %541 = vector.shape_cast %540 : vector<1x8x128xbf16> to vector<8x128xbf16>
    %cst_506 = arith.constant dense<0.000000e+00> : vector<16x128xf32>
    %542 = tpu.matmul %539, %541, %cst_506 {dimension_numbers = #tpu.dot_dimension_numbers<[1], [0], [0], [1], [0, 0, 1, 1], [], []>} : vector<16x8xbf16>, vector<8x128xbf16>, vector<16x128xf32> -> vector<16x128xf32>
    %543 = arith.addf %534, %542 : vector<16x128xf32>
    %c5_i32_507 = arith.constant 5 : i32
    %544 = arith.addi %0, %c5_i32_507 : i32
    %c2_i32_508 = arith.constant 2 : i32
    %545 = arith.addi %544, %c2_i32_508 : i32
    %c0_509 = arith.constant 0 : index
    %546 = arith.index_cast %545 : i32 to index
    %c2_510 = arith.constant 2 : index
    %c0_511 = arith.constant 0 : index
    %547 = vector.load %arg2[%c0_509, %546, %c2_510, %c0_511] : memref<1x18x18x8xbf16, #tpu.memory_space<vmem>>, vector<1x1x16x8xbf16>
    %548 = vector.shape_cast %547 : vector<1x1x16x8xbf16> to vector<16x8xbf16>
    %c8_512 = arith.constant 8 : index
    %c0_513 = arith.constant 0 : index
    %c0_514 = arith.constant 0 : index
    %549 = vector.load %arg3[%c8_512, %c0_513, %c0_514] : memref<9x8x128xbf16, #tpu.memory_space<vmem>>, vector<1x8x128xbf16>
    %550 = vector.shape_cast %549 : vector<1x8x128xbf16> to vector<8x128xbf16>
    %cst_515 = arith.constant dense<0.000000e+00> : vector<16x128xf32>
    %551 = tpu.matmul %548, %550, %cst_515 {dimension_numbers = #tpu.dot_dimension_numbers<[1], [0], [0], [1], [0, 0, 1, 1], [], []>} : vector<16x8xbf16>, vector<8x128xbf16>, vector<16x128xf32> -> vector<16x128xf32>
    %552 = arith.addf %543, %551 : vector<16x128xf32>
    %c0_516 = arith.constant 0 : index
    %c0_517 = arith.constant 0 : index
    %553 = vector.load %arg4[%c0_516, %c0_517] : memref<1x128xf32, #tpu.memory_space<vmem>>, vector<1x128xf32>
    %554 = vector.broadcast %553 : vector<1x128xf32> to vector<16x128xf32>
    %555 = arith.addf %552, %554 : vector<16x128xf32>
    %cst_518 = arith.constant 0.000000e+00 : f32
    %556 = vector.broadcast %cst_518 : f32 to vector<16x128xf32>
    %557 = arith.cmpf oge, %555, %556 : vector<16x128xf32>
    %cst_519 = arith.constant 2.000000e-01 : f32
    %558 = vector.broadcast %cst_519 : f32 to vector<16x128xf32>
    %559 = arith.mulf %558, %555 : vector<16x128xf32>
    %560 = arith.select %557, %555, %559 : vector<16x128xi1>, vector<16x128xf32>
    %561 = arith.truncf %560 : vector<16x128xf32> to vector<16x128xbf16>
    %c0_520 = arith.constant 0 : index
    %c5_521 = arith.constant 5 : index
    %c0_522 = arith.constant 0 : index
    %c0_523 = arith.constant 0 : index
    %562 = vector.load %arg5[%c0_520, %c5_521, %c0_522, %c0_523] : memref<1x8x16x128xbf16, #tpu.memory_space<vmem>>, vector<1x1x16x128xbf16>
    %563 = vector.shape_cast %562 : vector<1x1x16x128xbf16> to vector<16x128xbf16>
    %564 = vector.shape_cast %561 : vector<16x128xbf16> to vector<1x1x16x128xbf16>
    tpu.vector_store %arg5[%c0_520, %c5_521, %c0_522, %c0_523], %564 {strides = array<i32>} : memref<1x8x16x128xbf16, #tpu.memory_space<vmem>>, vector<1x1x16x128xbf16>,
    %cst_524 = arith.constant 0.000000e+00 : f32
    %565 = vector.broadcast %cst_524 : f32 to vector<16x128xf32>
    %c6_i32 = arith.constant 6 : i32
    %566 = arith.addi %0, %c6_i32 : i32
    %c0_i32_525 = arith.constant 0 : i32
    %567 = arith.addi %566, %c0_i32_525 : i32
    %c0_526 = arith.constant 0 : index
    %568 = arith.index_cast %567 : i32 to index
    %c0_527 = arith.constant 0 : index
    %c0_528 = arith.constant 0 : index
    %569 = vector.load %arg2[%c0_526, %568, %c0_527, %c0_528] : memref<1x18x18x8xbf16, #tpu.memory_space<vmem>>, vector<1x1x16x8xbf16>
    %570 = vector.shape_cast %569 : vector<1x1x16x8xbf16> to vector<16x8xbf16>
    %c0_529 = arith.constant 0 : index
    %c0_530 = arith.constant 0 : index
    %c0_531 = arith.constant 0 : index
    %571 = vector.load %arg3[%c0_529, %c0_530, %c0_531] : memref<9x8x128xbf16, #tpu.memory_space<vmem>>, vector<1x8x128xbf16>
    %572 = vector.shape_cast %571 : vector<1x8x128xbf16> to vector<8x128xbf16>
    %cst_532 = arith.constant dense<0.000000e+00> : vector<16x128xf32>
    %573 = tpu.matmul %570, %572, %cst_532 {dimension_numbers = #tpu.dot_dimension_numbers<[1], [0], [0], [1], [0, 0, 1, 1], [], []>} : vector<16x8xbf16>, vector<8x128xbf16>, vector<16x128xf32> -> vector<16x128xf32>
    %574 = arith.addf %565, %573 : vector<16x128xf32>
    %c6_i32_533 = arith.constant 6 : i32
    %575 = arith.addi %0, %c6_i32_533 : i32
    %c0_i32_534 = arith.constant 0 : i32
    %576 = arith.addi %575, %c0_i32_534 : i32
    %c0_535 = arith.constant 0 : index
    %577 = arith.index_cast %576 : i32 to index
    %c1_536 = arith.constant 1 : index
    %c0_537 = arith.constant 0 : index
    %578 = vector.load %arg2[%c0_535, %577, %c1_536, %c0_537] : memref<1x18x18x8xbf16, #tpu.memory_space<vmem>>, vector<1x1x16x8xbf16>
    %579 = vector.shape_cast %578 : vector<1x1x16x8xbf16> to vector<16x8xbf16>
    %c1_538 = arith.constant 1 : index
    %c0_539 = arith.constant 0 : index
    %c0_540 = arith.constant 0 : index
    %580 = vector.load %arg3[%c1_538, %c0_539, %c0_540] : memref<9x8x128xbf16, #tpu.memory_space<vmem>>, vector<1x8x128xbf16>
    %581 = vector.shape_cast %580 : vector<1x8x128xbf16> to vector<8x128xbf16>
    %cst_541 = arith.constant dense<0.000000e+00> : vector<16x128xf32>
    %582 = tpu.matmul %579, %581, %cst_541 {dimension_numbers = #tpu.dot_dimension_numbers<[1], [0], [0], [1], [0, 0, 1, 1], [], []>} : vector<16x8xbf16>, vector<8x128xbf16>, vector<16x128xf32> -> vector<16x128xf32>
    %583 = arith.addf %574, %582 : vector<16x128xf32>
    %c6_i32_542 = arith.constant 6 : i32
    %584 = arith.addi %0, %c6_i32_542 : i32
    %c0_i32_543 = arith.constant 0 : i32
    %585 = arith.addi %584, %c0_i32_543 : i32
    %c0_544 = arith.constant 0 : index
    %586 = arith.index_cast %585 : i32 to index
    %c2_545 = arith.constant 2 : index
    %c0_546 = arith.constant 0 : index
    %587 = vector.load %arg2[%c0_544, %586, %c2_545, %c0_546] : memref<1x18x18x8xbf16, #tpu.memory_space<vmem>>, vector<1x1x16x8xbf16>
    %588 = vector.shape_cast %587 : vector<1x1x16x8xbf16> to vector<16x8xbf16>
    %c2_547 = arith.constant 2 : index
    %c0_548 = arith.constant 0 : index
    %c0_549 = arith.constant 0 : index
    %589 = vector.load %arg3[%c2_547, %c0_548, %c0_549] : memref<9x8x128xbf16, #tpu.memory_space<vmem>>, vector<1x8x128xbf16>
    %590 = vector.shape_cast %589 : vector<1x8x128xbf16> to vector<8x128xbf16>
    %cst_550 = arith.constant dense<0.000000e+00> : vector<16x128xf32>
    %591 = tpu.matmul %588, %590, %cst_550 {dimension_numbers = #tpu.dot_dimension_numbers<[1], [0], [0], [1], [0, 0, 1, 1], [], []>} : vector<16x8xbf16>, vector<8x128xbf16>, vector<16x128xf32> -> vector<16x128xf32>
    %592 = arith.addf %583, %591 : vector<16x128xf32>
    %c6_i32_551 = arith.constant 6 : i32
    %593 = arith.addi %0, %c6_i32_551 : i32
    %c1_i32_552 = arith.constant 1 : i32
    %594 = arith.addi %593, %c1_i32_552 : i32
    %c0_553 = arith.constant 0 : index
    %595 = arith.index_cast %594 : i32 to index
    %c0_554 = arith.constant 0 : index
    %c0_555 = arith.constant 0 : index
    %596 = vector.load %arg2[%c0_553, %595, %c0_554, %c0_555] : memref<1x18x18x8xbf16, #tpu.memory_space<vmem>>, vector<1x1x16x8xbf16>
    %597 = vector.shape_cast %596 : vector<1x1x16x8xbf16> to vector<16x8xbf16>
    %c3_556 = arith.constant 3 : index
    %c0_557 = arith.constant 0 : index
    %c0_558 = arith.constant 0 : index
    %598 = vector.load %arg3[%c3_556, %c0_557, %c0_558] : memref<9x8x128xbf16, #tpu.memory_space<vmem>>, vector<1x8x128xbf16>
    %599 = vector.shape_cast %598 : vector<1x8x128xbf16> to vector<8x128xbf16>
    %cst_559 = arith.constant dense<0.000000e+00> : vector<16x128xf32>
    %600 = tpu.matmul %597, %599, %cst_559 {dimension_numbers = #tpu.dot_dimension_numbers<[1], [0], [0], [1], [0, 0, 1, 1], [], []>} : vector<16x8xbf16>, vector<8x128xbf16>, vector<16x128xf32> -> vector<16x128xf32>
    %601 = arith.addf %592, %600 : vector<16x128xf32>
    %c6_i32_560 = arith.constant 6 : i32
    %602 = arith.addi %0, %c6_i32_560 : i32
    %c1_i32_561 = arith.constant 1 : i32
    %603 = arith.addi %602, %c1_i32_561 : i32
    %c0_562 = arith.constant 0 : index
    %604 = arith.index_cast %603 : i32 to index
    %c1_563 = arith.constant 1 : index
    %c0_564 = arith.constant 0 : index
    %605 = vector.load %arg2[%c0_562, %604, %c1_563, %c0_564] : memref<1x18x18x8xbf16, #tpu.memory_space<vmem>>, vector<1x1x16x8xbf16>
    %606 = vector.shape_cast %605 : vector<1x1x16x8xbf16> to vector<16x8xbf16>
    %c4_565 = arith.constant 4 : index
    %c0_566 = arith.constant 0 : index
    %c0_567 = arith.constant 0 : index
    %607 = vector.load %arg3[%c4_565, %c0_566, %c0_567] : memref<9x8x128xbf16, #tpu.memory_space<vmem>>, vector<1x8x128xbf16>
    %608 = vector.shape_cast %607 : vector<1x8x128xbf16> to vector<8x128xbf16>
    %cst_568 = arith.constant dense<0.000000e+00> : vector<16x128xf32>
    %609 = tpu.matmul %606, %608, %cst_568 {dimension_numbers = #tpu.dot_dimension_numbers<[1], [0], [0], [1], [0, 0, 1, 1], [], []>} : vector<16x8xbf16>, vector<8x128xbf16>, vector<16x128xf32> -> vector<16x128xf32>
    %610 = arith.addf %601, %609 : vector<16x128xf32>
    %c6_i32_569 = arith.constant 6 : i32
    %611 = arith.addi %0, %c6_i32_569 : i32
    %c1_i32_570 = arith.constant 1 : i32
    %612 = arith.addi %611, %c1_i32_570 : i32
    %c0_571 = arith.constant 0 : index
    %613 = arith.index_cast %612 : i32 to index
    %c2_572 = arith.constant 2 : index
    %c0_573 = arith.constant 0 : index
    %614 = vector.load %arg2[%c0_571, %613, %c2_572, %c0_573] : memref<1x18x18x8xbf16, #tpu.memory_space<vmem>>, vector<1x1x16x8xbf16>
    %615 = vector.shape_cast %614 : vector<1x1x16x8xbf16> to vector<16x8xbf16>
    %c5_574 = arith.constant 5 : index
    %c0_575 = arith.constant 0 : index
    %c0_576 = arith.constant 0 : index
    %616 = vector.load %arg3[%c5_574, %c0_575, %c0_576] : memref<9x8x128xbf16, #tpu.memory_space<vmem>>, vector<1x8x128xbf16>
    %617 = vector.shape_cast %616 : vector<1x8x128xbf16> to vector<8x128xbf16>
    %cst_577 = arith.constant dense<0.000000e+00> : vector<16x128xf32>
    %618 = tpu.matmul %615, %617, %cst_577 {dimension_numbers = #tpu.dot_dimension_numbers<[1], [0], [0], [1], [0, 0, 1, 1], [], []>} : vector<16x8xbf16>, vector<8x128xbf16>, vector<16x128xf32> -> vector<16x128xf32>
    %619 = arith.addf %610, %618 : vector<16x128xf32>
    %c6_i32_578 = arith.constant 6 : i32
    %620 = arith.addi %0, %c6_i32_578 : i32
    %c2_i32_579 = arith.constant 2 : i32
    %621 = arith.addi %620, %c2_i32_579 : i32
    %c0_580 = arith.constant 0 : index
    %622 = arith.index_cast %621 : i32 to index
    %c0_581 = arith.constant 0 : index
    %c0_582 = arith.constant 0 : index
    %623 = vector.load %arg2[%c0_580, %622, %c0_581, %c0_582] : memref<1x18x18x8xbf16, #tpu.memory_space<vmem>>, vector<1x1x16x8xbf16>
    %624 = vector.shape_cast %623 : vector<1x1x16x8xbf16> to vector<16x8xbf16>
    %c6_583 = arith.constant 6 : index
    %c0_584 = arith.constant 0 : index
    %c0_585 = arith.constant 0 : index
    %625 = vector.load %arg3[%c6_583, %c0_584, %c0_585] : memref<9x8x128xbf16, #tpu.memory_space<vmem>>, vector<1x8x128xbf16>
    %626 = vector.shape_cast %625 : vector<1x8x128xbf16> to vector<8x128xbf16>
    %cst_586 = arith.constant dense<0.000000e+00> : vector<16x128xf32>
    %627 = tpu.matmul %624, %626, %cst_586 {dimension_numbers = #tpu.dot_dimension_numbers<[1], [0], [0], [1], [0, 0, 1, 1], [], []>} : vector<16x8xbf16>, vector<8x128xbf16>, vector<16x128xf32> -> vector<16x128xf32>
    %628 = arith.addf %619, %627 : vector<16x128xf32>
    %c6_i32_587 = arith.constant 6 : i32
    %629 = arith.addi %0, %c6_i32_587 : i32
    %c2_i32_588 = arith.constant 2 : i32
    %630 = arith.addi %629, %c2_i32_588 : i32
    %c0_589 = arith.constant 0 : index
    %631 = arith.index_cast %630 : i32 to index
    %c1_590 = arith.constant 1 : index
    %c0_591 = arith.constant 0 : index
    %632 = vector.load %arg2[%c0_589, %631, %c1_590, %c0_591] : memref<1x18x18x8xbf16, #tpu.memory_space<vmem>>, vector<1x1x16x8xbf16>
    %633 = vector.shape_cast %632 : vector<1x1x16x8xbf16> to vector<16x8xbf16>
    %c7_592 = arith.constant 7 : index
    %c0_593 = arith.constant 0 : index
    %c0_594 = arith.constant 0 : index
    %634 = vector.load %arg3[%c7_592, %c0_593, %c0_594] : memref<9x8x128xbf16, #tpu.memory_space<vmem>>, vector<1x8x128xbf16>
    %635 = vector.shape_cast %634 : vector<1x8x128xbf16> to vector<8x128xbf16>
    %cst_595 = arith.constant dense<0.000000e+00> : vector<16x128xf32>
    %636 = tpu.matmul %633, %635, %cst_595 {dimension_numbers = #tpu.dot_dimension_numbers<[1], [0], [0], [1], [0, 0, 1, 1], [], []>} : vector<16x8xbf16>, vector<8x128xbf16>, vector<16x128xf32> -> vector<16x128xf32>
    %637 = arith.addf %628, %636 : vector<16x128xf32>
    %c6_i32_596 = arith.constant 6 : i32
    %638 = arith.addi %0, %c6_i32_596 : i32
    %c2_i32_597 = arith.constant 2 : i32
    %639 = arith.addi %638, %c2_i32_597 : i32
    %c0_598 = arith.constant 0 : index
    %640 = arith.index_cast %639 : i32 to index
    %c2_599 = arith.constant 2 : index
    %c0_600 = arith.constant 0 : index
    %641 = vector.load %arg2[%c0_598, %640, %c2_599, %c0_600] : memref<1x18x18x8xbf16, #tpu.memory_space<vmem>>, vector<1x1x16x8xbf16>
    %642 = vector.shape_cast %641 : vector<1x1x16x8xbf16> to vector<16x8xbf16>
    %c8_601 = arith.constant 8 : index
    %c0_602 = arith.constant 0 : index
    %c0_603 = arith.constant 0 : index
    %643 = vector.load %arg3[%c8_601, %c0_602, %c0_603] : memref<9x8x128xbf16, #tpu.memory_space<vmem>>, vector<1x8x128xbf16>
    %644 = vector.shape_cast %643 : vector<1x8x128xbf16> to vector<8x128xbf16>
    %cst_604 = arith.constant dense<0.000000e+00> : vector<16x128xf32>
    %645 = tpu.matmul %642, %644, %cst_604 {dimension_numbers = #tpu.dot_dimension_numbers<[1], [0], [0], [1], [0, 0, 1, 1], [], []>} : vector<16x8xbf16>, vector<8x128xbf16>, vector<16x128xf32> -> vector<16x128xf32>
    %646 = arith.addf %637, %645 : vector<16x128xf32>
    %c0_605 = arith.constant 0 : index
    %c0_606 = arith.constant 0 : index
    %647 = vector.load %arg4[%c0_605, %c0_606] : memref<1x128xf32, #tpu.memory_space<vmem>>, vector<1x128xf32>
    %648 = vector.broadcast %647 : vector<1x128xf32> to vector<16x128xf32>
    %649 = arith.addf %646, %648 : vector<16x128xf32>
    %cst_607 = arith.constant 0.000000e+00 : f32
    %650 = vector.broadcast %cst_607 : f32 to vector<16x128xf32>
    %651 = arith.cmpf oge, %649, %650 : vector<16x128xf32>
    %cst_608 = arith.constant 2.000000e-01 : f32
    %652 = vector.broadcast %cst_608 : f32 to vector<16x128xf32>
    %653 = arith.mulf %652, %649 : vector<16x128xf32>
    %654 = arith.select %651, %649, %653 : vector<16x128xi1>, vector<16x128xf32>
    %655 = arith.truncf %654 : vector<16x128xf32> to vector<16x128xbf16>
    %c0_609 = arith.constant 0 : index
    %c6_610 = arith.constant 6 : index
    %c0_611 = arith.constant 0 : index
    %c0_612 = arith.constant 0 : index
    %656 = vector.load %arg5[%c0_609, %c6_610, %c0_611, %c0_612] : memref<1x8x16x128xbf16, #tpu.memory_space<vmem>>, vector<1x1x16x128xbf16>
    %657 = vector.shape_cast %656 : vector<1x1x16x128xbf16> to vector<16x128xbf16>
    %658 = vector.shape_cast %655 : vector<16x128xbf16> to vector<1x1x16x128xbf16>
    tpu.vector_store %arg5[%c0_609, %c6_610, %c0_611, %c0_612], %658 {strides = array<i32>} : memref<1x8x16x128xbf16, #tpu.memory_space<vmem>>, vector<1x1x16x128xbf16>,
    %cst_613 = arith.constant 0.000000e+00 : f32
    %659 = vector.broadcast %cst_613 : f32 to vector<16x128xf32>
    %c7_i32 = arith.constant 7 : i32
    %660 = arith.addi %0, %c7_i32 : i32
    %c0_i32_614 = arith.constant 0 : i32
    %661 = arith.addi %660, %c0_i32_614 : i32
    %c0_615 = arith.constant 0 : index
    %662 = arith.index_cast %661 : i32 to index
    %c0_616 = arith.constant 0 : index
    %c0_617 = arith.constant 0 : index
    %663 = vector.load %arg2[%c0_615, %662, %c0_616, %c0_617] : memref<1x18x18x8xbf16, #tpu.memory_space<vmem>>, vector<1x1x16x8xbf16>
    %664 = vector.shape_cast %663 : vector<1x1x16x8xbf16> to vector<16x8xbf16>
    %c0_618 = arith.constant 0 : index
    %c0_619 = arith.constant 0 : index
    %c0_620 = arith.constant 0 : index
    %665 = vector.load %arg3[%c0_618, %c0_619, %c0_620] : memref<9x8x128xbf16, #tpu.memory_space<vmem>>, vector<1x8x128xbf16>
    %666 = vector.shape_cast %665 : vector<1x8x128xbf16> to vector<8x128xbf16>
    %cst_621 = arith.constant dense<0.000000e+00> : vector<16x128xf32>
    %667 = tpu.matmul %664, %666, %cst_621 {dimension_numbers = #tpu.dot_dimension_numbers<[1], [0], [0], [1], [0, 0, 1, 1], [], []>} : vector<16x8xbf16>, vector<8x128xbf16>, vector<16x128xf32> -> vector<16x128xf32>
    %668 = arith.addf %659, %667 : vector<16x128xf32>
    %c7_i32_622 = arith.constant 7 : i32
    %669 = arith.addi %0, %c7_i32_622 : i32
    %c0_i32_623 = arith.constant 0 : i32
    %670 = arith.addi %669, %c0_i32_623 : i32
    %c0_624 = arith.constant 0 : index
    %671 = arith.index_cast %670 : i32 to index
    %c1_625 = arith.constant 1 : index
    %c0_626 = arith.constant 0 : index
    %672 = vector.load %arg2[%c0_624, %671, %c1_625, %c0_626] : memref<1x18x18x8xbf16, #tpu.memory_space<vmem>>, vector<1x1x16x8xbf16>
    %673 = vector.shape_cast %672 : vector<1x1x16x8xbf16> to vector<16x8xbf16>
    %c1_627 = arith.constant 1 : index
    %c0_628 = arith.constant 0 : index
    %c0_629 = arith.constant 0 : index
    %674 = vector.load %arg3[%c1_627, %c0_628, %c0_629] : memref<9x8x128xbf16, #tpu.memory_space<vmem>>, vector<1x8x128xbf16>
    %675 = vector.shape_cast %674 : vector<1x8x128xbf16> to vector<8x128xbf16>
    %cst_630 = arith.constant dense<0.000000e+00> : vector<16x128xf32>
    %676 = tpu.matmul %673, %675, %cst_630 {dimension_numbers = #tpu.dot_dimension_numbers<[1], [0], [0], [1], [0, 0, 1, 1], [], []>} : vector<16x8xbf16>, vector<8x128xbf16>, vector<16x128xf32> -> vector<16x128xf32>
    %677 = arith.addf %668, %676 : vector<16x128xf32>
    %c7_i32_631 = arith.constant 7 : i32
    %678 = arith.addi %0, %c7_i32_631 : i32
    %c0_i32_632 = arith.constant 0 : i32
    %679 = arith.addi %678, %c0_i32_632 : i32
    %c0_633 = arith.constant 0 : index
    %680 = arith.index_cast %679 : i32 to index
    %c2_634 = arith.constant 2 : index
    %c0_635 = arith.constant 0 : index
    %681 = vector.load %arg2[%c0_633, %680, %c2_634, %c0_635] : memref<1x18x18x8xbf16, #tpu.memory_space<vmem>>, vector<1x1x16x8xbf16>
    %682 = vector.shape_cast %681 : vector<1x1x16x8xbf16> to vector<16x8xbf16>
    %c2_636 = arith.constant 2 : index
    %c0_637 = arith.constant 0 : index
    %c0_638 = arith.constant 0 : index
    %683 = vector.load %arg3[%c2_636, %c0_637, %c0_638] : memref<9x8x128xbf16, #tpu.memory_space<vmem>>, vector<1x8x128xbf16>
    %684 = vector.shape_cast %683 : vector<1x8x128xbf16> to vector<8x128xbf16>
    %cst_639 = arith.constant dense<0.000000e+00> : vector<16x128xf32>
    %685 = tpu.matmul %682, %684, %cst_639 {dimension_numbers = #tpu.dot_dimension_numbers<[1], [0], [0], [1], [0, 0, 1, 1], [], []>} : vector<16x8xbf16>, vector<8x128xbf16>, vector<16x128xf32> -> vector<16x128xf32>
    %686 = arith.addf %677, %685 : vector<16x128xf32>
    %c7_i32_640 = arith.constant 7 : i32
    %687 = arith.addi %0, %c7_i32_640 : i32
    %c1_i32_641 = arith.constant 1 : i32
    %688 = arith.addi %687, %c1_i32_641 : i32
    %c0_642 = arith.constant 0 : index
    %689 = arith.index_cast %688 : i32 to index
    %c0_643 = arith.constant 0 : index
    %c0_644 = arith.constant 0 : index
    %690 = vector.load %arg2[%c0_642, %689, %c0_643, %c0_644] : memref<1x18x18x8xbf16, #tpu.memory_space<vmem>>, vector<1x1x16x8xbf16>
    %691 = vector.shape_cast %690 : vector<1x1x16x8xbf16> to vector<16x8xbf16>
    %c3_645 = arith.constant 3 : index
    %c0_646 = arith.constant 0 : index
    %c0_647 = arith.constant 0 : index
    %692 = vector.load %arg3[%c3_645, %c0_646, %c0_647] : memref<9x8x128xbf16, #tpu.memory_space<vmem>>, vector<1x8x128xbf16>
    %693 = vector.shape_cast %692 : vector<1x8x128xbf16> to vector<8x128xbf16>
    %cst_648 = arith.constant dense<0.000000e+00> : vector<16x128xf32>
    %694 = tpu.matmul %691, %693, %cst_648 {dimension_numbers = #tpu.dot_dimension_numbers<[1], [0], [0], [1], [0, 0, 1, 1], [], []>} : vector<16x8xbf16>, vector<8x128xbf16>, vector<16x128xf32> -> vector<16x128xf32>
    %695 = arith.addf %686, %694 : vector<16x128xf32>
    %c7_i32_649 = arith.constant 7 : i32
    %696 = arith.addi %0, %c7_i32_649 : i32
    %c1_i32_650 = arith.constant 1 : i32
    %697 = arith.addi %696, %c1_i32_650 : i32
    %c0_651 = arith.constant 0 : index
    %698 = arith.index_cast %697 : i32 to index
    %c1_652 = arith.constant 1 : index
    %c0_653 = arith.constant 0 : index
    %699 = vector.load %arg2[%c0_651, %698, %c1_652, %c0_653] : memref<1x18x18x8xbf16, #tpu.memory_space<vmem>>, vector<1x1x16x8xbf16>
    %700 = vector.shape_cast %699 : vector<1x1x16x8xbf16> to vector<16x8xbf16>
    %c4_654 = arith.constant 4 : index
    %c0_655 = arith.constant 0 : index
    %c0_656 = arith.constant 0 : index
    %701 = vector.load %arg3[%c4_654, %c0_655, %c0_656] : memref<9x8x128xbf16, #tpu.memory_space<vmem>>, vector<1x8x128xbf16>
    %702 = vector.shape_cast %701 : vector<1x8x128xbf16> to vector<8x128xbf16>
    %cst_657 = arith.constant dense<0.000000e+00> : vector<16x128xf32>
    %703 = tpu.matmul %700, %702, %cst_657 {dimension_numbers = #tpu.dot_dimension_numbers<[1], [0], [0], [1], [0, 0, 1, 1], [], []>} : vector<16x8xbf16>, vector<8x128xbf16>, vector<16x128xf32> -> vector<16x128xf32>
    %704 = arith.addf %695, %703 : vector<16x128xf32>
    %c7_i32_658 = arith.constant 7 : i32
    %705 = arith.addi %0, %c7_i32_658 : i32
    %c1_i32_659 = arith.constant 1 : i32
    %706 = arith.addi %705, %c1_i32_659 : i32
    %c0_660 = arith.constant 0 : index
    %707 = arith.index_cast %706 : i32 to index
    %c2_661 = arith.constant 2 : index
    %c0_662 = arith.constant 0 : index
    %708 = vector.load %arg2[%c0_660, %707, %c2_661, %c0_662] : memref<1x18x18x8xbf16, #tpu.memory_space<vmem>>, vector<1x1x16x8xbf16>
    %709 = vector.shape_cast %708 : vector<1x1x16x8xbf16> to vector<16x8xbf16>
    %c5_663 = arith.constant 5 : index
    %c0_664 = arith.constant 0 : index
    %c0_665 = arith.constant 0 : index
    %710 = vector.load %arg3[%c5_663, %c0_664, %c0_665] : memref<9x8x128xbf16, #tpu.memory_space<vmem>>, vector<1x8x128xbf16>
    %711 = vector.shape_cast %710 : vector<1x8x128xbf16> to vector<8x128xbf16>
    %cst_666 = arith.constant dense<0.000000e+00> : vector<16x128xf32>
    %712 = tpu.matmul %709, %711, %cst_666 {dimension_numbers = #tpu.dot_dimension_numbers<[1], [0], [0], [1], [0, 0, 1, 1], [], []>} : vector<16x8xbf16>, vector<8x128xbf16>, vector<16x128xf32> -> vector<16x128xf32>
    %713 = arith.addf %704, %712 : vector<16x128xf32>
    %c7_i32_667 = arith.constant 7 : i32
    %714 = arith.addi %0, %c7_i32_667 : i32
    %c2_i32_668 = arith.constant 2 : i32
    %715 = arith.addi %714, %c2_i32_668 : i32
    %c0_669 = arith.constant 0 : index
    %716 = arith.index_cast %715 : i32 to index
    %c0_670 = arith.constant 0 : index
    %c0_671 = arith.constant 0 : index
    %717 = vector.load %arg2[%c0_669, %716, %c0_670, %c0_671] : memref<1x18x18x8xbf16, #tpu.memory_space<vmem>>, vector<1x1x16x8xbf16>
    %718 = vector.shape_cast %717 : vector<1x1x16x8xbf16> to vector<16x8xbf16>
    %c6_672 = arith.constant 6 : index
    %c0_673 = arith.constant 0 : index
    %c0_674 = arith.constant 0 : index
    %719 = vector.load %arg3[%c6_672, %c0_673, %c0_674] : memref<9x8x128xbf16, #tpu.memory_space<vmem>>, vector<1x8x128xbf16>
    %720 = vector.shape_cast %719 : vector<1x8x128xbf16> to vector<8x128xbf16>
    %cst_675 = arith.constant dense<0.000000e+00> : vector<16x128xf32>
    %721 = tpu.matmul %718, %720, %cst_675 {dimension_numbers = #tpu.dot_dimension_numbers<[1], [0], [0], [1], [0, 0, 1, 1], [], []>} : vector<16x8xbf16>, vector<8x128xbf16>, vector<16x128xf32> -> vector<16x128xf32>
    %722 = arith.addf %713, %721 : vector<16x128xf32>
    %c7_i32_676 = arith.constant 7 : i32
    %723 = arith.addi %0, %c7_i32_676 : i32
    %c2_i32_677 = arith.constant 2 : i32
    %724 = arith.addi %723, %c2_i32_677 : i32
    %c0_678 = arith.constant 0 : index
    %725 = arith.index_cast %724 : i32 to index
    %c1_679 = arith.constant 1 : index
    %c0_680 = arith.constant 0 : index
    %726 = vector.load %arg2[%c0_678, %725, %c1_679, %c0_680] : memref<1x18x18x8xbf16, #tpu.memory_space<vmem>>, vector<1x1x16x8xbf16>
    %727 = vector.shape_cast %726 : vector<1x1x16x8xbf16> to vector<16x8xbf16>
    %c7_681 = arith.constant 7 : index
    %c0_682 = arith.constant 0 : index
    %c0_683 = arith.constant 0 : index
    %728 = vector.load %arg3[%c7_681, %c0_682, %c0_683] : memref<9x8x128xbf16, #tpu.memory_space<vmem>>, vector<1x8x128xbf16>
    %729 = vector.shape_cast %728 : vector<1x8x128xbf16> to vector<8x128xbf16>
    %cst_684 = arith.constant dense<0.000000e+00> : vector<16x128xf32>
    %730 = tpu.matmul %727, %729, %cst_684 {dimension_numbers = #tpu.dot_dimension_numbers<[1], [0], [0], [1], [0, 0, 1, 1], [], []>} : vector<16x8xbf16>, vector<8x128xbf16>, vector<16x128xf32> -> vector<16x128xf32>
    %731 = arith.addf %722, %730 : vector<16x128xf32>
    %c7_i32_685 = arith.constant 7 : i32
    %732 = arith.addi %0, %c7_i32_685 : i32
    %c2_i32_686 = arith.constant 2 : i32
    %733 = arith.addi %732, %c2_i32_686 : i32
    %c0_687 = arith.constant 0 : index
    %734 = arith.index_cast %733 : i32 to index
    %c2_688 = arith.constant 2 : index
    %c0_689 = arith.constant 0 : index
    %735 = vector.load %arg2[%c0_687, %734, %c2_688, %c0_689] : memref<1x18x18x8xbf16, #tpu.memory_space<vmem>>, vector<1x1x16x8xbf16>
    %736 = vector.shape_cast %735 : vector<1x1x16x8xbf16> to vector<16x8xbf16>
    %c8_690 = arith.constant 8 : index
    %c0_691 = arith.constant 0 : index
    %c0_692 = arith.constant 0 : index
    %737 = vector.load %arg3[%c8_690, %c0_691, %c0_692] : memref<9x8x128xbf16, #tpu.memory_space<vmem>>, vector<1x8x128xbf16>
    %738 = vector.shape_cast %737 : vector<1x8x128xbf16> to vector<8x128xbf16>
    %cst_693 = arith.constant dense<0.000000e+00> : vector<16x128xf32>
    %739 = tpu.matmul %736, %738, %cst_693 {dimension_numbers = #tpu.dot_dimension_numbers<[1], [0], [0], [1], [0, 0, 1, 1], [], []>} : vector<16x8xbf16>, vector<8x128xbf16>, vector<16x128xf32> -> vector<16x128xf32>
    %740 = arith.addf %731, %739 : vector<16x128xf32>
    %c0_694 = arith.constant 0 : index
    %c0_695 = arith.constant 0 : index
    %741 = vector.load %arg4[%c0_694, %c0_695] : memref<1x128xf32, #tpu.memory_space<vmem>>, vector<1x128xf32>
    %742 = vector.broadcast %741 : vector<1x128xf32> to vector<16x128xf32>
    %743 = arith.addf %740, %742 : vector<16x128xf32>
    %cst_696 = arith.constant 0.000000e+00 : f32
    %744 = vector.broadcast %cst_696 : f32 to vector<16x128xf32>
    %745 = arith.cmpf oge, %743, %744 : vector<16x128xf32>
    %cst_697 = arith.constant 2.000000e-01 : f32
    %746 = vector.broadcast %cst_697 : f32 to vector<16x128xf32>
    %747 = arith.mulf %746, %743 : vector<16x128xf32>
    %748 = arith.select %745, %743, %747 : vector<16x128xi1>, vector<16x128xf32>
    %749 = arith.truncf %748 : vector<16x128xf32> to vector<16x128xbf16>
    %c0_698 = arith.constant 0 : index
    %c7_699 = arith.constant 7 : index
    %c0_700 = arith.constant 0 : index
    %c0_701 = arith.constant 0 : index
    %750 = vector.load %arg5[%c0_698, %c7_699, %c0_700, %c0_701] : memref<1x8x16x128xbf16, #tpu.memory_space<vmem>>, vector<1x1x16x128xbf16>
    %751 = vector.shape_cast %750 : vector<1x1x16x128xbf16> to vector<16x128xbf16>
    %752 = vector.shape_cast %749 : vector<16x128xbf16> to vector<1x1x16x128xbf16>
    tpu.vector_store %arg5[%c0_698, %c7_699, %c0_700, %c0_701], %752 {strides = array<i32>} : memref<1x8x16x128xbf16, #tpu.memory_space<vmem>>, vector<1x1x16x128xbf16>,
    return
  }
  func.func @transform_0(%arg0: i32, %arg1: i32) -> (i32, i32, i32, i32) {
    %c0_i32 = arith.constant 0 : i32
    %c0_i32_0 = arith.constant 0 : i32
    %c0_i32_1 = arith.constant 0 : i32
    %c0_i32_2 = arith.constant 0 : i32
    return %arg0, %c0_i32, %c0_i32_0, %c0_i32_1 : i32, i32, i32, i32
  }
  func.func @transform_1(%arg0: i32, %arg1: i32) -> (i32, i32, i32) {
    %c0_i32 = arith.constant 0 : i32
    %c0_i32_0 = arith.constant 0 : i32
    %c0_i32_1 = arith.constant 0 : i32
    %c0_i32_2 = arith.constant 0 : i32
    return %c0_i32, %c0_i32_0, %c0_i32_1 : i32, i32, i32
  }
  func.func @transform_2(%arg0: i32, %arg1: i32) -> (i32, i32) {
    %c0_i32 = arith.constant 0 : i32
    %c0_i32_0 = arith.constant 0 : i32
    %c0_i32_1 = arith.constant 0 : i32
    return %c0_i32, %c0_i32_0 : i32, i32
  }
  func.func @transform_3(%arg0: i32, %arg1: i32) -> (i32, i32, i32, i32) {
    %c0_i32 = arith.constant 0 : i32
    %c0_i32_0 = arith.constant 0 : i32
    %c0_i32_1 = arith.constant 0 : i32
    return %arg0, %arg1, %c0_i32, %c0_i32_0 : i32, i32, i32, i32
  }
}

</mosaic_0001>

<bundles_post_ra>
// kernel: tpu_custom_call.1
= control target key start
LH: loop header
LB: loop body
LE: loop exit
PB: predicated region body
PF: predicated region fallthrough
CT: control target
= control target key end

     0   :  { %8 = vsyncpa [#allocation3], 0  ;;  %s7358_s0 = inlined_call_operand.vmem [shape: bf16[2,18,18,8], index: 0, kind: input, shape index: {}]   ;;  %s7359_s1 = inlined_call_operand.vmem [shape: bf16[9,8,128], index: 1, kind: input, shape index: {}]   ;;  %s7360_s2 = inlined_call_operand.vmem [shape: f32[1,128], index: 2, kind: input, shape index: {}]   ;;  %s7361_s3 = inlined_call_operand.hbm [shape: bf16[2,16,16,128], index: 3, kind: output, shape index: {}]  }
   0x1   :  { %10 = vsyncpa [#allocation3 + $0x1], 0  ;;  %s6314_s12 = smov 0   ;;  %s6316_s13 = smov 0  }
   0x2   :  { %s6318_s14 = smov 0   ;;  %s6320_s15 = smov 0  }
   0x3   :  { %s6322_s16 = smov 0   ;;  %s6324_s17 = smov 0  }
   0x4   :  { %s6326_s18 = smov 0   ;;  %s6328_s19 = smov 0  }
   0x5 LB: > { %s4967_s20 = sadd.s32 4294967295, %s6287_s19   ;;  %s4968_s21 = sadd.s32 4294967294, %s6287_s19   ;;  %s6287_s19 = sphi %s6328_s19, %s16_s19   ;;  %s6283_s18 = sphi %s6326_s18, %s7370_s18   ;;  %s6279_s17 = sphi %s6324_s17, %s7369_s17   ;;  %s6275_s16 = sphi %s6322_s16, %s7368_s16   ;;  %s6271_s15 = sphi %s6320_s15, %s7367_s15   ;;  %s6267_s14 = sphi %s6318_s14, %s7366_s14   ;;  %s6263_s13 = sphi %s6316_s13, %s7365_s13   ;;  %s6259_s12 = sphi %s6314_s12, %s7364_s12  }
   0x6   : > { %s25_s22 = sadd.s32 1, %s6279_s17  ;;  %s28_s23 = sadd.s32 1, %s6283_s18 }
   0x7   : > { %p26_p0 = scmp.ge.s32.totalorder %s25_s22, 2  ;;  %p115_p1 = scmp.ne.s32.totalorder %s6267_s14, %s6263_s13 }
   0x8   : > { %p116_p2 = scmp.eq.s32.totalorder %s4967_s20, 3  ;;  %p121_p5 = scmp.ne.s32.totalorder %s6263_s13, %s6259_s12 }
   0x9   : > { %s7372_s22 = smov (%p26_p0, %s25_s22), 0  ;;  %s7374_s23 = smov (!%p26_p0, %s28_s23), %s6283_s18 }
   0xa   : > { %s101_s24 = ssub.s32 %s6279_s17, %s7372_s22  ;;  %p6365_p3 = por %p116_p2, %p115_p1 }
   0xb   : > { %p30_p4 = scmp.ge.s32.totalorder %s7374_s23, 2  ;;  %p122_p6 = scmp.eq.s32.totalorder %s4968_s21, 3 }
   0xc   : > { %p4971_p7 = scmp.ge.s32.totalorder %s6287_s19, 1  ;;  %p154_p9 = scmp.lt.s32.totalorder %s6287_s19, 5 }
   0xd   : > { %s7376_s23 = smov (%p30_p4, %s7374_s23), 0  ;;  %p6374_p8 = por %p122_p6, %p121_p5 }
   0xe   : > { %s100_s27 = ssub.s32 %s6283_s18, %s7376_s23  ;;  %s105_s28 = sadd.s32 1, %s6267_s14 }
   0xf   : > { %s102_s29 = sor.u32 %s101_s24, %s100_s27  ;;  %p155_p10 = pnand %p4971_p7, %p154_p9 }
  0x10   : > { %p103_p11 = scmp.eq.s32.totalorder %s102_s29, 0  ;;  %v4977_v0 = vld [vmem:[%s7359_s1 + $0x4] sm:$0xf] (!%p155_p10)  ;;  %vm220_vm0 = vcmask (!%p155_p10), 1043456   ;;  %v191_v1 = vld [vmem:[%s7359_s1] sm:$0xf] (!%p155_p10) }
  0x11   : > { %158 = sbr.rel (%p155_p10) target bundleno = 560 (0x230), region = 32  ;;  %v6289_v2 = vmov (!%p155_p10), 0.0   ;;  %v222_v3 = vsel (!%p155_p10), %vm220_vm0, %v4977_v0, 0  ;;  %v268_v4 = vsel (!%p155_p10), %vm220_vm0, %v191_v1, 0  ;;  %p178_p12 = scmp.lt.s32.totalorder (!%p155_p10), %s6275_s16, 1  ;;  %vm6290_vm1 = vmmov (!%p155_p10), 0  }
  0x12   : > { %s6383_s30 = scalar_select %p103_p11, %s6267_s14, %s105_s28  }
  0x13   : > { %5597 = vmatprep.subr.bf16.mxu0 (!%p155_p10), %v6289_v2  ;;  %5603 = vmatprep.subr.bf16.mxu1 (!%p155_p10), %v6289_v2  ;;  %s5388_s9 = smul.u32 (!%p155_p10), 96, %s6271_s15  ;;  %v4989_v5 = vld [vmem:[%s7359_s1 + $0xc] sm:$0xf] (!%p155_p10)  ;;  %vm216_vm2 = vcmask (!%p155_p10), 64512   ;;  %vm203_vm3 = vsmask.f32 (!%p155_p10), 7424 }
  0x14   : > { %5598 = vmatpush3.bf16.msra.mxu0 (!%p155_p10), %v222_v3  ;;  %5604 = vmatpush3.bf16.msra.mxu1 (!%p155_p10), %v268_v4  ;;  %v387_v10 = vsel (!%p155_p10), %vm220_vm0, %v4989_v5, 0  ;;  %v4982_v19 = vld [vmem:[%s7359_s1 + $0x8] sm:$0xf] (!%p155_p10)  ;;  %v5000_v25 = vld [vmem:[%s7359_s1 + $0x14] sm:$0xf] (!%p155_p10)  ;;  %vm317_vm4 = vcmask (!%p155_p10), 1046528  }
  0x15   : > { %5605 = vmatprep.mubr.msk.bf16.mxu1 (!%p155_p10), %vm6290_vm1, %v6289_v2  ;;  %5599 = vmatprep.mubr.msk.bf16.mxu0 (!%p155_p10), %vm6290_vm1, %v6289_v2  ;;  %v325_v27 = vsel (!%p155_p10), %vm220_vm0, %v4982_v19, 0  ;;  %v519_v33 = vsel (!%p155_p10), %vm220_vm0, %v5000_v25, 0  ;;  %v4995_v37 = vld [vmem:[%s7359_s1 + $0x10] sm:$0xf] (!%p155_p10)  ;;  %v5013_v48 = vld [vmem:[%s7359_s1 + $0x1c] sm:$0xf] (!%p155_p10) }
  0x16   : > { %5609 = vmatprep.subr.bf16.mxu0 (!%p155_p10), %v6289_v2  ;;  %5615 = vmatprep.subr.bf16.mxu1 (!%p155_p10), %v6289_v2  ;;  %v461_v49 = vsel (!%p155_p10), %vm220_vm0, %v4995_v37, 0  ;;  %v655_v55 = vsel (!%p155_p10), %vm220_vm0, %v5013_v48, 0  ;;  %v5007_v58 = vld [vmem:[%s7359_s1 + $0x18] sm:$0xf] (!%p155_p10)  ;;  %v5027_v0 = vld [vmem:[%s7359_s1 + $0x4] sm:$0xf] (!%p155_p10) }
  0x17   : > { %v581_v1 = vsel (!%p155_p10), %vm220_vm0, %v5007_v58, 0  ;;  %v785_v25 = vld [vmem:[%s7359_s1] sm:$0xf] (!%p155_p10)  ;;  %v5049_v48 = vld [vmem:[%s7359_s1 + $0x14] sm:$0xf] (!%p155_p10)  ;;  %s175_s29 = sand.u32 (!%p155_p10), 1, %s6263_s13  }
  0x18   : > { %s179_s8 = scalar_select %p178_p12, %s6275_s16, 1 }
  0x19   : > { %s4972_s4 = sshll.u32 %s175_s29, 6  ;;  %s5405_s5 = sshll.u32 %s6271_s15, 4 }
  0x1a   : > { %s6029_s10 = smul.u32 216, %s179_s8  ;;  %s5384_s6 = sshll.u32 %s6275_s16, 5 }
  0x1b   : > { %s4850_s7 = sadd.s32 %s5405_s5, %s5384_s6  ;;  %s7306_s20 = scalar_lea.sflag [#allocation3], %s175_s29 }
  0x1c   : > { %s182_s21 = scalar_lea.vmem %s7358_s0, %s6029_s10  ;;  %s5385_s8 = sshll.u32 %s4850_s7, 6 }
  0x1d   : > { %s6410_s28 = scalar_lea.vmem %s182_s21, %s5388_s9  ;;  %s7222_s9 = scalar_lea.vmem [#allocation2], %s4972_s4 }
  0x1e   : > { %v189_v6 = vld [vmem:[%s6410_s28] sm:$0xf]  ;;  %v190_v7 = vld [vmem:[%s6410_s28 + $0x4] sm:$0xf]  ;;  %v4992_v15 = vld [vmem:[%s6410_s28 + $0xc] sm:$0xf]  ;;  %s7299_s11 = scalar_lea.hbm %s7361_s3, %s5385_s8 }
  0x1f   : > { %v4978_v8 = vcombine.low %v189_v6, %v190_v7  ;;  %v6107_v9 = vld [vmem:[%s6410_s28 + $0x8] ss:$0 sps:$4 sm:$0x11]   ;;  %v311_v11 = vld [vmem:[%s6410_s28] sm:$0xe]  ;;  %v6108_v28 = vld [vmem:[%s6410_s28 + $0xc] sm:$0xff]  }
  0x20   : > { %v212_v14 = vshll.u32 %v6107_v9, 16  ;;  %v4993_v16 = vld [vmem:[%s6410_s28 + $0x10] sm:$0xf]  ;;  %v4999_v20 = vld [vmem:[%s6410_s28 + $0xc] sm:$0xe]  ;;  %v4983_v23 = vcombine.low %v311_v11, %v190_v7  ;;  %v319_v35 = vrot.slane %v6107_v9, 1 }
  0x21   : > { %5606 = vmatmul.mubr.msk.bf16.vlgmr.msra.gmra.mrb[0].mxu1 %vm216_vm2, %v4978_v8  ;;  %v205_v12 = vshrl.u32 %v4978_v8, 16  ;;  %v207_v13 = vshll.u32 %v4978_v8, 16  ;;  %v5010_v21 = vld [vmem:[%s6410_s28 + $0x18] sm:$0xf]  ;;  %v6429_v22 = vld [vmem:[%s6410_s28 + $0x1c] sm:$0xf]  ;;  %v4996_v26 = vcombine.low %v4992_v15, %v4993_v16  ;;  %v5001_v31 = vcombine.low %v4999_v20, %v4993_v16 }
  0x22   : > { %5616 = vmatpush3.bf16.msra.mxu1 %v387_v10  ;;  %5617 = vmatprep.mubr.msk.bf16.mxu1 %vm6290_vm1, %v6289_v2  ;;  %v214_v18 = vrot.slane %v212_v14, 1  ;;  %v6110_v30 = vld [vmem:[%s6410_s28 + $0x14] ss:$0 sps:$4 sm:$0x11]   ;;  %v5014_v32 = vcombine.low %v5010_v21, %v6429_v22  ;;  %v318_v34 = vrot.slane %v4983_v23, 1  ;;  %v812_v7 = vsel %vm220_vm0, %v5027_v0, 0 }
  0x23   : > { %v209_v17 = vrot.slane %v207_v13, 1  ;;  %5627 = vmatprep.subr.bf16.mxu1 %v6289_v2  ;;  %v448_v36 = vshll.u32 %v4996_v26, 16  ;;  %v512_v38 = vrot.slane %v5001_v31, 1  ;;  %v513_v39 = vrot.slane %v6110_v30, 1  ;;  %v5024_v42 = vld [vmem:[%s6410_s28 + $0xc] sm:$0xf] }
  0x24   : > { %v6451_v40 = vld [vmem:[%s6410_s28 + $0x20] ss:$0 sps:$4 sm:$0x11]   ;;  %v642_v41 = vshll.u32 %v5014_v32, 16  ;;  %v6456_v43 = vld [vmem:[%s6410_s28 + $0x10] sm:$0xf]  ;;  %v320_v44 = vsel %vm317_vm4, %v318_v34, %v319_v35 }
  0x25   : > { %v210_v24 = vor.u32 %v209_v17, %v205_v12  ;;  %v446_v45 = vshrl.u32 %v4996_v26, 16  ;;  %v450_v46 = vrot.slane %v448_v36, 1  ;;  %v453_v47 = vshll.u32 %v6110_v30, 16  ;;  %v6116_v61 = vld [vmem:[%s6410_s28 + $0x14] ss:$0 sps:$4 sm:$0x11]  }
  0x26   : > { %v640_v50 = vshrl.u32 %v5014_v32, 16  ;;  %v514_v51 = vsel %vm317_vm4, %v512_v38, %v513_v39  ;;  %v644_v52 = vrot.slane %v642_v41, 1  ;;  %v647_v53 = vshll.u32 %v6451_v40, 16  ;;  %v5017_v8 = vld [vmem:[%s6410_s28 + $0x18] sm:$0xe]  ;;  %s4853_s10 = sshll.u32 %s7222_s9, 4  ;;  %s7301_s10 = int_to_ptr.vmem [resolvable:$true] %s4853_s10 }
  0x27   : > { %v215_v29 = vsel %vm203_vm3, %v210_v24, %v214_v18  ;;  %v6466_v54 = vcombine.low %v5024_v42, %v6456_v43  ;;  %v451_v56 = vor.u32 %v450_v46, %v446_v45  ;;  %v455_v57 = vrot.slane %v453_v47, 1  ;;  %v6114_v9 = vld [vmem:[%s6410_s28 + $0x18] sm:$0xff]   ;;  %v5018_v10 = vld [vmem:[%s7359_s1 + $0x20] sm:$0xf]  ;;  %v5032_v13 = vld [vmem:[%s6410_s28 + $0xc] sm:$0xe] }
  0x28   : > { %5600 = vmatmul.mubr.msk.bf16.vlgmr.msra.gmra.mrb[0].mxu0 %vm216_vm2, %v215_v29  ;;  %v645_v59 = vor.u32 %v644_v52, %v640_v50  ;;  %v649_v60 = vrot.slane %v647_v53, 1  ;;  %v804_v6 = vshll.u32 %v6116_v61, 16  ;;  %v5041_v14 = vld [vmem:[%s6410_s28 + $0x18] sm:$0xf]  ;;  %v6506_v15 = vld [vmem:[%s6410_s28 + $0x1c] sm:$0xf]  ;;  %v5019_v16 = vcombine.low %v5017_v8, %v6429_v22 }
  0x29   : > { %5610 = vmatpush3.bf16.msra.mxu0 %v325_v27  ;;  %5611 = vmatprep.mubr.msk.bf16.mxu0 %vm6290_vm1, %v6289_v2  ;;  %v799_v62 = vshll.u32 %v6466_v54, 16  ;;  %v456_v63 = vsel %vm203_vm3, %v451_v56, %v455_v57  ;;  %v797_v4 = vshrl.u32 %v6466_v54, 16  ;;  %v5033_v17 = vld [vmem:[%s7359_s1 + $0x8] sm:$0xf]  ;;  %v713_v18 = vsel %vm220_vm0, %v5018_v10, 0  ;;  %s6193_s21 = scalar_lea.vmem %s7301_s10, 1024 }
  0x2a   : > { %5618 = vmatmul.mubr.msk.bf16.vlgmr.msra.gmra.mrb[4].mxu1 %vm216_vm2, %v6108_v28  ;;  %5621 = vmatprep.subr.bf16.mxu0 %v6289_v2  ;;  %v650_v3 = vsel %vm203_vm3, %v645_v59, %v649_v60  ;;  %v806_v12 = vrot.slane %v804_v6, 1  ;;  %v5034_v20 = vcombine.low %v5032_v13, %v6456_v43  ;;  %v5045_v21 = vcombine.low %v5041_v14, %v6506_v15  ;;  %v6529_v28 = vld [vmem:[%s6410_s28 + $0x20] ss:$0 sps:$4 sm:$0x11]   ;;  %v5044_v31 = vld [vmem:[%s7359_s1 + $0x10] sm:$0xf]  ;;  %p6194_p13 = scmp.ne.s32.totalorder %s7301_s10, %s6193_s21 }
  0x2b   : > { %5628 = vmatpush3.bf16.msra.mxu1 %v519_v33  ;;  %5629 = vmatprep.mubr.msk.bf16.mxu1 %vm6290_vm1, %v6289_v2  ;;  %v801_v5 = vrot.slane %v799_v62, 1  ;;  %v913_v23 = vsel %vm220_vm0, %v5033_v17, 0  ;;  %v706_v22 = vrot.slane %v5019_v16, 1  ;;  %v707_v24 = vrot.slane %v6451_v40, 1  ;;  %v5038_v38 = vld [vmem:[%s7359_s1 + $0xc] sm:$0xf] }
  0x2c   : > { %5639 = vmatprep.subr.bf16.mxu1 %v6289_v2  ;;  %v906_v26 = vrot.slane %v5034_v20, 1  ;;  %v907_v27 = vrot.slane %v6116_v61, 1  ;;  %v1030_v29 = vshll.u32 %v5045_v21, 16  ;;  %v858_v32 = vsel %vm220_vm0, %v785_v25, 0  ;;  %v5056_v41 = vld [vmem:[%s7359_s1 + $0x18] sm:$0xf]  ;;  %p6195_p0 = pnand %p6194_p13, %p6365_p3 }
  0x2d   : > { %v802_v11 = vor.u32 %v801_v5, %v797_v4  ;;  %v708_v30 = vsel %vm317_vm4, %v706_v22, %v707_v24  ;;  %v1028_v34 = vshrl.u32 %v5045_v21, 16  ;;  %v1035_v36 = vshll.u32 %v6529_v28, 16  ;;  %v5048_v45 = vld [vmem:[%s6410_s28 + $0x18] sm:$0xe]  ;;  %v5059_v46 = vld [vmem:[%s6410_s28 + $0x24] sm:$0xf] }
  0x2e   : > { %v908_v33 = vsel %vm317_vm4, %v906_v26, %v907_v27  ;;  %v1032_v35 = vrot.slane %v1030_v29, 1  ;;  %v1043_v37 = vsel %vm220_vm0, %v5044_v31, 0  ;;  %v970_v42 = vsel %vm220_vm0, %v5038_v38, 0  ;;  %v5060_v47 = vld [vmem:[%s6410_s28 + $0x28] sm:$0xf]  ;;  %p6196_p1 = pneg %p6195_p0 }
  0x2f   : > { %v807_v19 = vsel %vm203_vm3, %v802_v11, %v806_v12  ;;  %v1037_v40 = vrot.slane %v1035_v36, 1  ;;  %v5066_v50 = vld [vmem:[%s6410_s28 + $0x24] sm:$0xe]  ;;  %v5067_v52 = vld [vmem:[%s7359_s1 + $0x20] sm:$0xf]  ;;  %v5063_v53 = vcombine.low %v5059_v46, %v5060_v47  ;;  %v1094_v60 = vrot.slane %v6529_v28, 1 }
  0x30   : > { %5612 = vmatmul.mubr.msk.bf16.vlgmr.msra.gmra.mrb[4].mxu0 %vm216_vm2, %v320_v44  ;;  %v1033_v39 = vor.u32 %v1032_v35, %v1028_v34  ;;  %v1161_v44 = vsel %vm220_vm0, %v5056_v41, 0  ;;  %v6125_v56 = vld [vmem:[%s6410_s28 + $0x2c] ss:$0 sps:$4 sm:$0x11]   ;;  %v5068_v57 = vcombine.low %v5066_v50, %v5060_v47  ;;  %v1291_v58 = vsel %vm220_vm0, %v5067_v52, 0 }
  0x31   : > { %5622 = vmatpush3.bf16.msra.mxu0 %v461_v49  ;;  %5623 = vmatprep.mubr.msk.bf16.mxu0 %vm6290_vm1, %v6289_v2  ;;  %v6121_v49 = vld [vmem:[%s6410_s28 + $0x18] sm:$0xff]   ;;  %v1221_v61 = vshll.u32 %v5063_v53, 16  ;;  %v1226_v4 = vshll.u32 %v6125_v56, 16  ;;  %v1219_v6 = vshrl.u32 %v5063_v53, 16  ;;  %v1364_v8 = vld [vmem:[%s7359_s1] sm:$0xf] }
  0x32   : > { %5630 = vmatmul.mubr.msk.bf16.vlgmr.msra.gmra.mrb[8].mxu1 %vm216_vm2, %v514_v51  ;;  %5633 = vmatprep.subr.bf16.mxu0 %v6289_v2  ;;  %v1038_v43 = vsel %vm203_vm3, %v1033_v39, %v1037_v40  ;;  %v5050_v51 = vcombine.low %v5048_v45, %v6506_v15  ;;  %v5075_v62 = vld [vmem:[%s6410_s28 + $0x18] sm:$0xf]  ;;  %v5062_v0 = vld [vmem:[%s7359_s1 + $0x1c] sm:$0xf]  ;;  %v1437_v13 = vsel %vm220_vm0, %v1364_v8, 0  ;;  %v6129_v40 = vld [vmem:[%s6410_s28 + $0x24] sm:$0xff]  }
  0x33   : > { %5640 = vmatpush3.bf16.msra.mxu1 %v655_v55  ;;  %5641 = vmatprep.mubr.msk.bf16.mxu1 %vm6290_vm1, %v6289_v2  ;;  %v6122_v55 = vld [vmem:[%s6410_s28 + $0x24] sm:$0xff]   ;;  %v1234_v10 = vsel %vm220_vm0, %v5062_v0, 0  ;;  %v1228_v12 = vrot.slane %v1226_v4, 1  ;;  %v6610_v15 = vld [vmem:[%s6410_s28 + $0x20] ss:$0 sps:$4 sm:$0x11]  }
  0x34   : > { %5651 = vmatprep.subr.bf16.mxu1 %v6289_v2  ;;  %v1093_v59 = vrot.slane %v5050_v51, 1  ;;  %v5078_v17 = vld [vmem:[%s7359_s1 + $0x4] sm:$0xf]  ;;  %v1383_v21 = vshll.u32 %v6610_v15, 16  ;;  %v5093_v28 = vld [vmem:[%s6410_s28 + $0x28] sm:$0xf] }
  0x35   : > { %v1391_v22 = vsel %vm220_vm0, %v5078_v17, 0  ;;  %v5092_v27 = vld [vmem:[%s6410_s28 + $0x24] sm:$0xf]  ;;  %v5083_v29 = vld [vmem:[%s6410_s28 + $0x18] sm:$0xe]  ;;  %v1486_v46 = vrot.slane %v6610_v15, 1 }
  0x36   : > { %v1095_v5 = vsel %vm317_vm4, %v1093_v59, %v1094_v60  ;;  %v1385_v26 = vrot.slane %v1383_v21, 1  ;;  %v5099_v31 = vld [vmem:[%s6410_s28 + $0x24] sm:$0xe]  ;;  %v5110_v34 = vld [vmem:[%s6410_s28 + $0x30] sm:$0xf] }
  0x37   : > { %v6647_v35 = vld [vmem:[%s6410_s28 + $0x34] sm:$0xf]  ;;  %v6132_v38 = vld [vmem:[%s6410_s28 + $0x2c] ss:$0 sps:$4 sm:$0x11]   ;;  %v5101_v41 = vcombine.low %v5099_v31, %v5093_v28 }
  0x38   : > { %5624 = vmatmul.mubr.msk.bf16.vlgmr.msra.gmra.mrb[8].mxu0 %vm216_vm2, %v456_v63  ;;  %v6590_v63 = vld [vmem:[%s6410_s28 + $0x1c] sm:$0xf]  ;;  %v5095_v47 = vld [vmem:[%s7359_s1 + $0x10] sm:$0xf] }
  0x39   : > { %5634 = vmatpush3.bf16.msra.mxu0 %v581_v1  ;;  %5635 = vmatprep.mubr.msk.bf16.mxu0 %vm6290_vm1, %v6289_v2  ;;  %v1284_v1 = vrot.slane %v5068_v57, 1  ;;  %v5113_v51 = vld [vmem:[%s7359_s1 + $0x1c] sm:$0xf]  ;;  %v6671_v52 = vld [vmem:[%s6410_s28 + $0x38] ss:$0 sps:$4 sm:$0x11]  }
  0x3a   : > { %5642 = vmatmul.mubr.msk.bf16.vlgmr.msra.gmra.mrb[12].mxu1 %vm216_vm2, %v650_v3  ;;  %5645 = vmatprep.subr.bf16.mxu0 %v6289_v2  ;;  %v1285_v3 = vrot.slane %v6125_v56, 1  ;;  %v5126_v56 = vld [vmem:[%s6410_s28 + $0x24] sm:$0xf]  ;;  %v6676_v57 = vld [vmem:[%s6410_s28 + $0x28] sm:$0xf]  ;;  %v1622_v59 = vsel %vm220_vm0, %v5095_v47, 0 }
  0x3b   : > { %5652 = vmatpush3.bf16.msra.mxu1 %v812_v7  ;;  %5653 = vmatprep.mubr.msk.bf16.mxu1 %vm6290_vm1, %v6289_v2  ;;  %v1223_v7 = vrot.slane %v1221_v61, 1  ;;  %v6683_v0 = vcombine.low %v5126_v56, %v6676_v57  ;;  %v5161_v56 = vld [vmem:[%s6410_s28 + $0x3c] sm:$0xf] }
  0x3c   : > { %5663 = vmatprep.subr.bf16.mxu1 %v6289_v2  ;;  %v1286_v11 = vsel %vm317_vm4, %v1284_v1, %v1285_v3  ;;  %v1813_v1 = vsel %vm220_vm0, %v5113_v51, 0  ;;  %v5158_v51 = vld [vmem:[%s7359_s1 + $0x18] sm:$0xf] }
  0x3d   : > { %v1224_v14 = vor.u32 %v1223_v7, %v1219_v6  ;;  %v6138_v6 = vld [vmem:[%s6410_s28 + $0x2c] ss:$0 sps:$4 sm:$0x11]  }
  0x40   : > { %5636 = vmatmul.mubr.msk.bf16.vlgmr.msra.gmra.mrb[12].mxu0 %vm216_vm2, %v6114_v9  ;;  %v5079_v9 = vcombine.low %v5075_v62, %v6590_v63 }
  0x41   : > { %5646 = vmatpush3.bf16.msra.mxu0 %v713_v18  ;;  %5647 = vmatprep.mubr.msk.bf16.mxu0 %vm6290_vm1, %v6289_v2  ;;  %v1229_v18 = vsel %vm203_vm3, %v1224_v14, %v1228_v12  ;;  %v1955_v14 = vshrl.u32 %v6683_v0, 16 }
  0x42   : > { %5654 = vmatmul.mubr.msk.bf16.vlgmr.msra.gmra.mrb[16].mxu1 %vm216_vm2, %v807_v19  ;;  %5657 = vmatprep.subr.bf16.mxu0 %v6289_v2  ;;  %v1378_v16 = vshll.u32 %v5079_v9, 16  ;;  %v1376_v19 = vshrl.u32 %v5079_v9, 16 }
  0x43   : > { %5664 = vmatpush3.bf16.msra.mxu1 %v913_v23  ;;  %5665 = vmatprep.mubr.msk.bf16.mxu1 %vm6290_vm1, %v6289_v2  ;;  %v5089_v23 = vld [vmem:[%s7359_s1 + $0xc] sm:$0xf] }
  0x44   : > { %5675 = vmatprep.subr.bf16.mxu1 %v6289_v2  ;;  %v1380_v20 = vrot.slane %v1378_v16, 1  ;;  %v1549_v24 = vsel %vm220_vm0, %v5089_v23, 0  ;;  %v1962_v16 = vshll.u32 %v6138_v6, 16 }
  0x46   : > { %v1381_v25 = vor.u32 %v1380_v20, %v1376_v19  ;;  %v6136_v19 = vld [vmem:[%s6410_s28 + $0x30] sm:$0xff]   ;;  %v5118_v20 = vld [vmem:[%s7359_s1 + $0x20] sm:$0xf]  ;;  %v1964_v23 = vrot.slane %v1962_v16, 1 }
  0x48   : > { %5648 = vmatmul.mubr.msk.bf16.vlgmr.msra.gmra.mrb[16].mxu0 %vm216_vm2, %v708_v30  ;;  %v5084_v30 = vld [vmem:[%s7359_s1 + $0x8] sm:$0xf]  ;;  %v1386_v36 = vsel %vm203_vm3, %v1381_v25, %v1385_v26  ;;  %v6723_v25 = vld [vmem:[%s6410_s28 + $0x34] sm:$0xf] }
  0x49   : > { %5658 = vmatpush3.bf16.msra.mxu0 %v858_v32  ;;  %5659 = vmatprep.mubr.msk.bf16.mxu0 %vm6290_vm1, %v6289_v2  ;;  %v5100_v32 = vld [vmem:[%s7359_s1 + $0x14] sm:$0xf]  ;;  %v1492_v39 = vsel %vm220_vm0, %v5084_v30, 0 }
  0x4a   : > { %5666 = vmatmul.mubr.msk.bf16.vlgmr.msra.gmra.mrb[20].mxu1 %vm216_vm2, %v908_v33  ;;  %5669 = vmatprep.subr.bf16.mxu0 %v6289_v2  ;;  %v5096_v33 = vcombine.low %v5092_v27, %v5093_v28  ;;  %v5135_v27 = vld [vmem:[%s7359_s1 + $0x8] sm:$0xf]  ;;  %v1870_v28 = vsel %vm220_vm0, %v5118_v20, 0 }
  0x4b   : > { %5676 = vmatpush3.bf16.msra.mxu1 %v1043_v37  ;;  %5677 = vmatprep.mubr.msk.bf16.mxu1 %vm6290_vm1, %v6289_v2  ;;  %v5085_v37 = vcombine.low %v5083_v29, %v6590_v63  ;;  %v1805_v63 = vshll.u32 %v6671_v52, 16 }
  0x4c   : > { %5687 = vmatprep.subr.bf16.mxu1 %v6289_v2  ;;  %v1607_v50 = vshrl.u32 %v5096_v33, 16 }
  0x4d   : > { %v1485_v45 = vrot.slane %v5085_v37, 1  ;;  %v1807_v8 = vrot.slane %v1805_v63, 1  ;;  %v2065_v37 = vrot.slane %v6138_v6, 1 }
  0x50   : > { %5660 = vmatmul.mubr.msk.bf16.vlgmr.msra.gmra.mrb[20].mxu0 %vm216_vm2, %v6466_v54  ;;  %v1100_v54 = vsel %vm220_vm0, %v5049_v48, 0  ;;  %v1672_v48 = vrot.slane %v5101_v41, 1  ;;  %v5146_v41 = vld [vmem:[%s7359_s1 + $0x10] sm:$0xf] }
  0x51   : > { %5670 = vmatpush3.bf16.msra.mxu0 %v970_v42  ;;  %5671 = vmatprep.mubr.msk.bf16.mxu0 %vm6290_vm1, %v6289_v2  ;;  %v5114_v42 = vcombine.low %v5110_v34, %v6647_v35  ;;  %v1864_v34 = vrot.slane %v6671_v52, 1  ;;  %v2201_v47 = vsel %vm220_vm0, %v5146_v41, 0  ;;  %v5201_v41 = vld [vmem:[%s6410_s28 + $0x3c] sm:$0xe] }
  0x52   : > { %5678 = vmatmul.mubr.msk.bf16.vlgmr.msra.gmra.mrb[24].mxu1 %vm216_vm2, %v1038_v43  ;;  %5681 = vmatprep.subr.bf16.mxu0 %v6289_v2  ;;  %v1679_v43 = vsel %vm220_vm0, %v5100_v32, 0  ;;  %v2071_v32 = vsel %vm220_vm0, %v5135_v27, 0  ;;  %v5180_v27 = vld [vmem:[%s7359_s1 + $0x4] sm:$0xf] }
  0x53   : > { %5688 = vmatpush3.bf16.msra.mxu1 %v1161_v44  ;;  %5689 = vmatprep.mubr.msk.bf16.mxu1 %vm6290_vm1, %v6289_v2  ;;  %v1609_v44 = vshll.u32 %v5096_v33, 16  ;;  %v1800_v53 = vshll.u32 %v5114_v42, 16  ;;  %v1798_v61 = vshrl.u32 %v5114_v42, 16 }
  0x54   : > { %5699 = vmatprep.subr.bf16.mxu1 %v6289_v2 }
  0x55   : > { %v1802_v62 = vrot.slane %v1800_v53, 1 }
  0x57   : > { %v1803_v7 = vor.u32 %v1802_v62, %v1798_v61  ;;  %v5168_v61 = vld [vmem:[%s6410_s28 + $0x3c] sm:$0xe]  ;;  %v5169_v62 = vld [vmem:[%s7359_s1 + $0x20] sm:$0xf] }
  0x58   : > { %5672 = vmatmul.mubr.msk.bf16.vlgmr.msra.gmra.mrb[24].mxu0 %vm216_vm2, %v6121_v49  ;;  %v1673_v49 = vrot.slane %v6132_v38, 1 }
  0x59   : > { %5682 = vmatpush3.bf16.msra.mxu0 %v1100_v54  ;;  %5683 = vmatprep.mubr.msk.bf16.mxu0 %vm6290_vm1, %v6289_v2  ;;  %v1611_v54 = vrot.slane %v1609_v44, 1 }
  0x5a   : > { %5690 = vmatmul.mubr.msk.bf16.vlgmr.msra.gmra.mrb[28].mxu1 %vm216_vm2, %v6122_v55  ;;  %5693 = vmatprep.subr.bf16.mxu0 %v6289_v2  ;;  %v1614_v55 = vshll.u32 %v6132_v38, 16  ;;  %v1674_v60 = vsel %vm317_vm4, %v1672_v48, %v1673_v49  ;;  %v6746_v38 = vld [vmem:[%s6410_s28 + $0x38] ss:$0 sps:$4 sm:$0x11]   ;;  %v5140_v48 = vld [vmem:[%s7359_s1 + $0xc] sm:$0xf] }
  0x5b   : > { %5700 = vmatpush3.bf16.msra.mxu1 %v1291_v58  ;;  %5701 = vmatprep.mubr.msk.bf16.mxu1 %vm6290_vm1, %v6289_v2  ;;  %v1487_v58 = vsel %vm317_vm4, %v1485_v45, %v1486_v46  ;;  %v1612_v3 = vor.u32 %v1611_v54, %v1607_v50  ;;  %v2193_v46 = vshll.u32 %v6746_v38, 16  ;;  %v2128_v52 = vsel %vm220_vm0, %v5140_v48, 0 }
  0x5c   : > { %5711 = vmatprep.subr.bf16.mxu1 %v6289_v2  ;;  %v1616_v4 = vrot.slane %v1614_v55, 1  ;;  %v2319_v54 = vsel %vm220_vm0, %v5158_v51, 0  ;;  %v5150_v55 = vld [vmem:[%s6410_s28 + $0x30] sm:$0xe]  ;;  %v2252_v6 = vrot.slane %v6746_v38, 1 }
  0x5d   : > { %v2195_v50 = vrot.slane %v2193_v46, 1  ;;  %v5194_v38 = vld [vmem:[%s6410_s28 + $0x3c] sm:$0xf]  ;;  %v5202_v46 = vld [vmem:[%s7359_s1 + $0x14] sm:$0xf] }
  0x60   : > { %5684 = vmatmul.mubr.msk.bf16.vlgmr.msra.gmra.mrb[28].mxu0 %vm216_vm2, %v1095_v5  ;;  %v5107_v5 = vld [vmem:[%s7359_s1 + $0x18] sm:$0xf] }
  0x61   : > { %5694 = vmatpush3.bf16.msra.mxu0 %v1234_v10  ;;  %5695 = vmatprep.mubr.msk.bf16.mxu0 %vm6290_vm1, %v6289_v2  ;;  %v5129_v10 = vld [vmem:[%s7359_s1 + $0x4] sm:$0xf]  ;;  %v1740_v12 = vsel %vm220_vm0, %v5107_v5, 0 }
  0x62   : > { %5702 = vmatmul.mubr.msk.bf16.vlgmr.msra.gmra.mrb[32].mxu1 %vm216_vm2, %v1286_v11  ;;  %5705 = vmatprep.subr.bf16.mxu0 %v6289_v2  ;;  %v1617_v11 = vsel %vm203_vm3, %v1612_v3, %v1616_v4  ;;  %v1970_v17 = vsel %vm220_vm0, %v5129_v10, 0  ;;  %v6147_v3 = vld [vmem:[%s6410_s28 + $0x44] ss:$0 sps:$4 sm:$0x11]   ;;  %v6807_v10 = vld [vmem:[%s6410_s28 + $0x34] sm:$0xf] }
  0x63   : > { %5712 = vmatpush3.bf16.msra.mxu1 %v1437_v13  ;;  %5713 = vmatprep.mubr.msk.bf16.mxu1 %vm6290_vm1, %v6289_v2  ;;  %v1808_v13 = vsel %vm203_vm3, %v1803_v7, %v1807_v8  ;;  %v2449_v7 = vsel %vm220_vm0, %v5169_v62, 0  ;;  %v5228_v62 = vld [vmem:[%s6410_s28 + $0x3c] sm:$0xf] }
  0x64   : > { %5723 = vmatprep.subr.bf16.mxu1 %v6289_v2 }
  0x68   : > { %5696 = vmatmul.mubr.msk.bf16.vlgmr.msra.gmra.mrb[32].mxu0 %vm216_vm2, %v1229_v18  ;;  %v5117_v18 = vld [vmem:[%s6410_s28 + $0x30] sm:$0xe] }
  0x69   : > { %5706 = vmatpush3.bf16.msra.mxu0 %v1391_v22  ;;  %5707 = vmatprep.mubr.msk.bf16.mxu0 %vm6290_vm1, %v6289_v2  ;;  %v5134_v22 = vld [vmem:[%s6410_s28 + $0x24] sm:$0xe]  ;;  %v5119_v26 = vcombine.low %v5117_v18, %v6647_v35  ;;  %v1943_v35 = vld [vmem:[%s7359_s1] sm:$0xf] }
  0x6a   : > { %5714 = vmatmul.mubr.msk.bf16.vlgmr.msra.gmra.mrb[36].mxu1 %vm216_vm2, %v5079_v9  ;;  %5717 = vmatprep.subr.bf16.mxu0 %v6289_v2  ;;  %v1957_v9 = vshll.u32 %v6683_v0, 16  ;;  %v5136_v30 = vcombine.low %v5134_v22, %v6676_v57  ;;  %v2016_v42 = vsel %vm220_vm0, %v1943_v35, 0  ;;  %v5162_v57 = vld [vmem:[%s6410_s28 + $0x40] sm:$0xf] }
  0x6b   : > { %5724 = vmatpush3.bf16.msra.mxu1 %v1549_v24  ;;  %5725 = vmatprep.mubr.msk.bf16.mxu1 %vm6290_vm1, %v6289_v2  ;;  %v5143_v24 = vld [vmem:[%s6410_s28 + $0x30] sm:$0xf]  ;;  %v1863_v33 = vrot.slane %v5119_v26, 1  ;;  %v5165_v63 = vcombine.low %v5161_v56, %v5162_v57  ;;  %v5170_v4 = vcombine.low %v5168_v61, %v5162_v57  ;;  %v2522_v18 = vld [vmem:[%s7359_s1] sm:$0xf] }
  0x6c   : > { %5735 = vmatprep.subr.bf16.mxu1 %v6289_v2  ;;  %v1959_v15 = vrot.slane %v1957_v9, 1  ;;  %v5147_v31 = vcombine.low %v5143_v24, %v6723_v25  ;;  %v5177_v9 = vld [vmem:[%s6410_s28 + $0x30] sm:$0xf] }
  0x6d   : > { %v2379_v8 = vshll.u32 %v5165_v63, 16 }
  0x6e   : > { %v1960_v21 = vor.u32 %v1959_v15, %v1955_v14  ;;  %v2186_v44 = vshrl.u32 %v5147_v31, 16  ;;  %v2377_v15 = vshrl.u32 %v5165_v63, 16  ;;  %v6886_v63 = vld [vmem:[%s6410_s28 + $0x40] sm:$0xf] }
  0x6f   : > { %v2381_v16 = vrot.slane %v2379_v8, 1 }
  0x70   : > { %5708 = vmatmul.mubr.msk.bf16.vlgmr.msra.gmra.mrb[36].mxu0 %vm216_vm2, %v1386_v36  ;;  %v1965_v29 = vsel %vm203_vm3, %v1960_v21, %v1964_v23  ;;  %v2064_v36 = vrot.slane %v5136_v30, 1  ;;  %v2595_v23 = vsel %vm220_vm0, %v2522_v18, 0  ;;  %v6160_v18 = vld [vmem:[%s6410_s28 + $0x44] ss:$0 sps:$4 sm:$0x11]  }
  0x71   : > { %5718 = vmatpush3.bf16.msra.mxu0 %v1492_v39  ;;  %5719 = vmatprep.mubr.msk.bf16.mxu0 %vm6290_vm1, %v6289_v2  ;;  %v2188_v39 = vshll.u32 %v5147_v31, 16  ;;  %v2382_v22 = vor.u32 %v2381_v16, %v2377_v15  ;;  %v5209_v15 = vld [vmem:[%s7359_s1 + $0x18] sm:$0xf] }
  0x72   : > { %5726 = vmatmul.mubr.msk.bf16.vlgmr.msra.gmra.mrb[40].mxu1 %vm216_vm2, %v6129_v40  ;;  %5729 = vmatprep.subr.bf16.mxu0 %v6289_v2  ;;  %v1865_v40 = vsel %vm317_vm4, %v1863_v33, %v1864_v34  ;;  %v2549_v33 = vsel %vm220_vm0, %v5180_v27, 0 }
  0x73   : > { %5736 = vmatpush3.bf16.msra.mxu1 %v1679_v43  ;;  %5737 = vmatprep.mubr.msk.bf16.mxu1 %vm6290_vm1, %v6289_v2  ;;  %v2066_v43 = vsel %vm317_vm4, %v2064_v36, %v2065_v37  ;;  %v2190_v45 = vrot.slane %v2188_v39, 1  ;;  %v5185_v37 = vld [vmem:[%s6410_s28 + $0x30] sm:$0xe]  ;;  %v5195_v39 = vld [vmem:[%s6410_s28 + $0x40] sm:$0xf] }
  0x74   : > { %5747 = vmatprep.subr.bf16.mxu1 %v6289_v2  ;;  %v5203_v51 = vcombine.low %v5201_v41, %v5195_v39 }
  0x75   : > { %v2191_v49 = vor.u32 %v2190_v45, %v2186_v44  ;;  %v5187_v45 = vcombine.low %v5185_v37, %v6807_v10  ;;  %v5237_v37 = vld [vmem:[%s7359_s1 + $0x8] sm:$0xf] }
  0x76   : > { %v2830_v57 = vrot.slane %v5203_v51, 1  ;;  %v5248_v51 = vld [vmem:[%s7359_s1 + $0x10] sm:$0xf] }
  0x77   : > { %v2196_v53 = vsel %vm203_vm3, %v2191_v49, %v2195_v50  ;;  %v6151_v49 = vld [vmem:[%s6410_s28 + $0x3c] sm:$0xff]   ;;  %v6154_v50 = vld [vmem:[%s6410_s28 + $0x44] ss:$0 sps:$4 sm:$0x11]  }
  0x78   : > { %5720 = vmatmul.mubr.msk.bf16.vlgmr.msra.gmra.mrb[40].mxu0 %vm216_vm2, %v1487_v58  ;;  %v5151_v58 = vld [vmem:[%s7359_s1 + $0x14] sm:$0xf] }
  0x79   : > { %5730 = vmatpush3.bf16.msra.mxu0 %v1622_v59  ;;  %5731 = vmatprep.mubr.msk.bf16.mxu0 %vm6290_vm1, %v6289_v2  ;;  %v6143_v59 = vld [vmem:[%s6410_s28 + $0x30] sm:$0xff]  }
  0x7a   : > { %5738 = vmatmul.mubr.msk.bf16.vlgmr.msra.gmra.mrb[44].mxu1 %vm216_vm2, %v1674_v60  ;;  %5741 = vmatprep.subr.bf16.mxu0 %v6289_v2  ;;  %v5152_v60 = vcombine.low %v5150_v55, %v6723_v25  ;;  %v6150_v25 = vld [vmem:[%s6410_s28 + $0x38] ss:$0 sps:$4 sm:$0x11]  }
  0x7b   : > { %5748 = vmatpush3.bf16.msra.mxu1 %v1813_v1  ;;  %5749 = vmatprep.mubr.msk.bf16.mxu1 %vm6290_vm1, %v6289_v2  ;;  %v6144_v1 = vld [vmem:[%s6410_s28 + $0x3c] sm:$0xff]   ;;  %v2541_v31 = vshll.u32 %v6150_v25, 16  ;;  %v2644_v55 = vrot.slane %v6150_v25, 1 }
  0x7c   : > { %5759 = vmatprep.subr.bf16.mxu1 %v6289_v2  ;;  %v2251_v5 = vrot.slane %v5152_v60, 1  ;;  %v6881_v60 = vld [vmem:[%s6410_s28 + $0x50] ss:$0 sps:$4 sm:$0x11]  }
  0x7d   : > { %v2543_v36 = vrot.slane %v2541_v31, 1 }
  0x7e   : > { %v2253_v14 = vsel %vm317_vm4, %v2251_v5, %v2252_v6  ;;  %v5215_v5 = vld [vmem:[%s7359_s1 + $0x1c] sm:$0xf] }
  0x80   : > { %5732 = vmatmul.mubr.msk.bf16.vlgmr.msra.gmra.mrb[44].mxu0 %vm216_vm2, %v1617_v11  ;;  %v5164_v11 = vld [vmem:[%s7359_s1 + $0x1c] sm:$0xf] }
  0x81   : > { %5742 = vmatpush3.bf16.msra.mxu0 %v1740_v12  ;;  %5743 = vmatprep.mubr.msk.bf16.mxu0 %vm6290_vm1, %v6289_v2  ;;  %v2442_v12 = vrot.slane %v5170_v4, 1  ;;  %v2392_v20 = vsel %vm220_vm0, %v5164_v11, 0  ;;  %v2772_v4 = vshll.u32 %v6154_v50, 16  ;;  %v6896_v11 = vcombine.low %v5228_v62, %v6886_v63 }
  0x82   : > { %5750 = vmatmul.mubr.msk.bf16.vlgmr.msra.gmra.mrb[48].mxu1 %vm216_vm2, %v1808_v13  ;;  %5753 = vmatprep.subr.bf16.mxu0 %v6289_v2  ;;  %v2443_v13 = vrot.slane %v6147_v3, 1 }
  0x83   : > { %5760 = vmatpush3.bf16.msra.mxu1 %v1970_v17  ;;  %5761 = vmatprep.mubr.msk.bf16.mxu1 %vm6290_vm1, %v6289_v2  ;;  %v2384_v17 = vshll.u32 %v6147_v3, 16 }
  0x84   : > { %5771 = vmatprep.subr.bf16.mxu1 %v6289_v2  ;;  %v2444_v21 = vsel %vm317_vm4, %v2442_v12, %v2443_v13  ;;  %v2971_v12 = vsel %vm220_vm0, %v5215_v5, 0  ;;  %v5253_v5 = vld [vmem:[%s7359_s1 + $0x14] sm:$0xf] }
  0x85   : > { %v2386_v24 = vrot.slane %v2384_v17, 1 }
  0x88   : > { %5744 = vmatmul.mubr.msk.bf16.vlgmr.msra.gmra.mrb[48].mxu0 %vm216_vm2, %v6136_v19  ;;  %v5181_v19 = vcombine.low %v5177_v9, %v6807_v10  ;;  %v2963_v10 = vshll.u32 %v6881_v60, 16 }
  0x89   : > { %5754 = vmatpush3.bf16.msra.mxu0 %v1870_v28  ;;  %5755 = vmatprep.mubr.msk.bf16.mxu0 %vm6290_vm1, %v6289_v2  ;;  %v2387_v28 = vsel %vm203_vm3, %v2382_v22, %v2386_v24  ;;  %v3113_v24 = vshrl.u32 %v6896_v11, 16 }
  0x8a   : > { %5762 = vmatmul.mubr.msk.bf16.vlgmr.msra.gmra.mrb[52].mxu1 %vm216_vm2, %v1965_v29  ;;  %5765 = vmatprep.subr.bf16.mxu0 %v6289_v2  ;;  %v2536_v26 = vshll.u32 %v5181_v19, 16  ;;  %v2534_v29 = vshrl.u32 %v5181_v19, 16  ;;  %v2965_v17 = vrot.slane %v2963_v10, 1 }
  0x8b   : > { %5772 = vmatpush3.bf16.msra.mxu1 %v2071_v32  ;;  %5773 = vmatprep.mubr.msk.bf16.mxu1 %vm6290_vm1, %v6289_v2  ;;  %v5191_v32 = vld [vmem:[%s7359_s1 + $0xc] sm:$0xf] }
  0x8c   : > { %5783 = vmatprep.subr.bf16.mxu1 %v6289_v2  ;;  %v2538_v30 = vrot.slane %v2536_v26, 1  ;;  %v2707_v34 = vsel %vm220_vm0, %v5191_v32, 0  ;;  %v3120_v26 = vshll.u32 %v6160_v18, 16 }
  0x8e   : > { %v2539_v35 = vor.u32 %v2538_v30, %v2534_v29  ;;  %v6158_v29 = vld [vmem:[%s6410_s28 + $0x48] sm:$0xff]   ;;  %v5220_v30 = vld [vmem:[%s7359_s1 + $0x20] sm:$0xf]  ;;  %v3122_v32 = vrot.slane %v3120_v26, 1 }
  0x90   : > { %5756 = vmatmul.mubr.msk.bf16.vlgmr.msra.gmra.mrb[52].mxu0 %vm216_vm2, %v1865_v40  ;;  %v5186_v40 = vld [vmem:[%s7359_s1 + $0x8] sm:$0xf]  ;;  %v2544_v44 = vsel %vm203_vm3, %v2539_v35, %v2543_v36  ;;  %v6936_v35 = vld [vmem:[%s6410_s28 + $0x4c] sm:$0xf] }
  0x91   : > { %5766 = vmatpush3.bf16.msra.mxu0 %v2016_v42  ;;  %5767 = vmatprep.mubr.msk.bf16.mxu0 %vm6290_vm1, %v6289_v2  ;;  %v5212_v42 = vld [vmem:[%s6410_s28 + $0x48] sm:$0xf]  ;;  %v2650_v48 = vsel %vm220_vm0, %v5186_v40, 0 }
  0x92   : > { %5774 = vmatmul.mubr.msk.bf16.vlgmr.msra.gmra.mrb[56].mxu1 %vm216_vm2, %v2066_v43  ;;  %5777 = vmatprep.subr.bf16.mxu0 %v6289_v2  ;;  %v6858_v43 = vld [vmem:[%s6410_s28 + $0x4c] sm:$0xf] }
  0x93   : > { %5784 = vmatpush3.bf16.msra.mxu1 %v2201_v47  ;;  %5785 = vmatprep.mubr.msk.bf16.mxu1 %vm6290_vm1, %v6289_v2  ;;  %v5198_v47 = vcombine.low %v5194_v38, %v5195_v39  ;;  %v3028_v38 = vsel %vm220_vm0, %v5220_v30, 0 }
  0x94   : > { %5795 = vmatprep.subr.bf16.mxu1 %v6289_v2 }
  0x95   : > { %v2767_v56 = vshll.u32 %v5198_v47, 16 }
  0x97   : > { %v2769_v3 = vrot.slane %v2767_v56, 1 }
  0x98   : > { %5768 = vmatmul.mubr.msk.bf16.vlgmr.msra.gmra.mrb[56].mxu0 %vm216_vm2, %v6683_v0  ;;  %v2258_v0 = vsel %vm220_vm0, %v5151_v58, 0  ;;  %v2831_v58 = vrot.slane %v6154_v50, 1 }
  0x99   : > { %5778 = vmatpush3.bf16.msra.mxu0 %v2128_v52  ;;  %5779 = vmatprep.mubr.msk.bf16.mxu0 %vm6290_vm1, %v6289_v2  ;;  %v5216_v52 = vcombine.low %v5212_v42, %v6858_v43  ;;  %v3229_v42 = vsel %vm220_vm0, %v5237_v37, 0  ;;  %v5282_v37 = vld [vmem:[%s7359_s1 + $0x4] sm:$0xf] }
  0x9a   : > { %5786 = vmatmul.mubr.msk.bf16.vlgmr.msra.gmra.mrb[60].mxu1 %vm216_vm2, %v2196_v53  ;;  %5789 = vmatprep.subr.bf16.mxu0 %v6289_v2  ;;  %v2837_v53 = vsel %vm220_vm0, %v5202_v46, 0 }
  0x9b   : > { %5796 = vmatpush3.bf16.msra.mxu1 %v2319_v54  ;;  %5797 = vmatprep.mubr.msk.bf16.mxu1 %vm6290_vm1, %v6289_v2  ;;  %v2643_v54 = vrot.slane %v5187_v45, 1  ;;  %v2958_v61 = vshll.u32 %v5216_v52, 16  ;;  %v2956_v8 = vshrl.u32 %v5216_v52, 16  ;;  %v3101_v45 = vld [vmem:[%s7359_s1] sm:$0xf] }
  0x9c   : > { %5807 = vmatprep.subr.bf16.mxu1 %v6289_v2  ;;  %v3174_v52 = vsel %vm220_vm0, %v3101_v45, 0  ;;  %v3707_v45 = vsel %vm220_vm0, %v5282_v37, 0 }
  0x9d   : > { %v2960_v9 = vrot.slane %v2958_v61, 1  ;;  %v5260_v61 = vld [vmem:[%s7359_s1 + $0x18] sm:$0xf] }
  0x9f   : > { %v2961_v16 = vor.u32 %v2960_v9, %v2956_v8  ;;  %v5270_v8 = vld [vmem:[%s6410_s28 + $0x54] sm:$0xe]  ;;  %v5271_v9 = vld [vmem:[%s7359_s1 + $0x20] sm:$0xf] }
  0xa0   : > { %5780 = vmatmul.mubr.msk.bf16.vlgmr.msra.gmra.mrb[60].mxu0 %vm216_vm2, %v6143_v59  ;;  %v5197_v59 = vld [vmem:[%s7359_s1 + $0x10] sm:$0xf] }
  0xa1   : > { %5790 = vmatpush3.bf16.msra.mxu0 %v2258_v0  ;;  %5791 = vmatprep.mubr.msk.bf16.mxu0 %vm6290_vm1, %v6289_v2  ;;  %v2645_v0 = vsel %vm317_vm4, %v2643_v54, %v2644_v55  ;;  %v2780_v6 = vsel %vm220_vm0, %v5197_v59, 0  ;;  %v2966_v22 = vsel %vm203_vm3, %v2961_v16, %v2965_v17  ;;  %v3607_v17 = vsel %vm220_vm0, %v5271_v9, 0  ;;  %v6176_v9 = vld [vmem:[%s6410_s28 + $0x5c] ss:$0 sps:$4 sm:$0x11]  }
  0xa2   : > { %5798 = vmatmul.mubr.msk.bf16.vlgmr.msra.gmra.mrb[64].mxu1 %vm216_vm2, %v6144_v1  ;;  %5801 = vmatprep.subr.bf16.mxu0 %v6289_v2  ;;  %v2765_v1 = vshrl.u32 %v5198_v47, 16  ;;  %v3223_v47 = vrot.slane %v6160_v18, 1 }
  0xa3   : > { %5808 = vmatpush3.bf16.msra.mxu1 %v2449_v7  ;;  %5809 = vmatprep.mubr.msk.bf16.mxu1 %vm6290_vm1, %v6289_v2  ;;  %v2832_v7 = vsel %vm317_vm4, %v2830_v57, %v2831_v58  ;;  %v3359_v57 = vsel %vm220_vm0, %v5248_v51, 0  ;;  %v5242_v58 = vld [vmem:[%s7359_s1 + $0xc] sm:$0xf]  ;;  %v5288_v51 = vld [vmem:[%s7359_s1 + $0x8] sm:$0xf] }
  0xa4   : > { %5819 = vmatprep.subr.bf16.mxu1 %v6289_v2  ;;  %v2770_v13 = vor.u32 %v2769_v3, %v2765_v1  ;;  %v3286_v62 = vsel %vm220_vm0, %v5242_v58, 0  ;;  %v5252_v1 = vld [vmem:[%s6410_s28 + $0x48] sm:$0xe]  ;;  %v5263_v3 = vld [vmem:[%s6410_s28 + $0x54] sm:$0xf] }
  0xa8   : > { %5792 = vmatmul.mubr.msk.bf16.vlgmr.msra.gmra.mrb[64].mxu0 %vm216_vm2, %v2253_v14  ;;  %v2774_v14 = vrot.slane %v2772_v4, 1  ;;  %v5264_v4 = vld [vmem:[%s6410_s28 + $0x58] sm:$0xf] }
  0xa9   : > { %5802 = vmatpush3.bf16.msra.mxu0 %v2392_v20  ;;  %5803 = vmatprep.mubr.msk.bf16.mxu0 %vm6290_vm1, %v6289_v2  ;;  %v5267_v10 = vcombine.low %v5263_v3, %v5264_v4  ;;  %v5304_v3 = vld [vmem:[%s7359_s1 + $0x14] sm:$0xf] }
  0xaa   : > { %5810 = vmatmul.mubr.msk.bf16.vlgmr.msra.gmra.mrb[68].mxu1 %vm216_vm2, %v2444_v21  ;;  %5813 = vmatprep.subr.bf16.mxu0 %v6289_v2  ;;  %v2775_v20 = vsel %vm203_vm3, %v2770_v13, %v2774_v14  ;;  %v5231_v21 = vld [vmem:[%s7359_s1 + $0x4] sm:$0xf]  ;;  %v6169_v13 = vld [vmem:[%s6410_s28 + $0x5c] ss:$0 sps:$4 sm:$0x11]   ;;  %v5272_v14 = vcombine.low %v5270_v8, %v5264_v4  ;;  %v6173_v8 = vld [vmem:[%s6410_s28 + $0x54] sm:$0xff]  }
  0xab   : > { %5820 = vmatpush3.bf16.msra.mxu1 %v2595_v23  ;;  %5821 = vmatprep.mubr.msk.bf16.mxu1 %vm6290_vm1, %v6289_v2  ;;  %v2898_v23 = vsel %vm220_vm0, %v5209_v15, 0  ;;  %v3128_v27 = vsel %vm220_vm0, %v5231_v21, 0  ;;  %v3537_v18 = vshll.u32 %v5267_v10, 16  ;;  %v5266_v21 = vld [vmem:[%s7359_s1 + $0x1c] sm:$0xf] }
  0xac   : > { %5831 = vmatprep.subr.bf16.mxu1 %v6289_v2  ;;  %v3550_v30 = vsel %vm220_vm0, %v5266_v21, 0 }
  0xad   : > { %v3539_v26 = vrot.slane %v3537_v18, 1  ;;  %v5299_v18 = vld [vmem:[%s7359_s1 + $0x10] sm:$0xf] }
  0xae   : > { %v3938_v37 = vsel %vm220_vm0, %v5299_v18, 0 }
  0xb0   : > { %5804 = vmatmul.mubr.msk.bf16.vlgmr.msra.gmra.mrb[68].mxu0 %vm216_vm2, %v2387_v28  ;;  %v5219_v28 = vld [vmem:[%s6410_s28 + $0x48] sm:$0xe] }
  0xb1   : > { %5814 = vmatpush3.bf16.msra.mxu0 %v2549_v33  ;;  %5815 = vmatprep.mubr.msk.bf16.mxu0 %vm6290_vm1, %v6289_v2  ;;  %v5236_v33 = vld [vmem:[%s6410_s28 + $0x3c] sm:$0xe]  ;;  %v5221_v36 = vcombine.low %v5219_v28, %v6858_v43  ;;  %v3680_v28 = vld [vmem:[%s7359_s1] sm:$0xf] }
  0xb2   : > { %5822 = vmatmul.mubr.msk.bf16.vlgmr.msra.gmra.mrb[72].mxu1 %vm216_vm2, %v5181_v19  ;;  %5825 = vmatprep.subr.bf16.mxu0 %v6289_v2  ;;  %v3115_v19 = vshll.u32 %v6896_v11, 16  ;;  %v5238_v40 = vcombine.low %v5236_v33, %v6886_v63 }
  0xb3   : > { %5832 = vmatpush3.bf16.msra.mxu1 %v2707_v34  ;;  %5833 = vmatprep.mubr.msk.bf16.mxu1 %vm6290_vm1, %v6289_v2  ;;  %v5245_v34 = vld [vmem:[%s6410_s28 + $0x48] sm:$0xf]  ;;  %v3021_v43 = vrot.slane %v5221_v36, 1 }
  0xb4   : > { %5843 = vmatprep.subr.bf16.mxu1 %v6289_v2  ;;  %v3117_v25 = vrot.slane %v3115_v19, 1  ;;  %v5249_v41 = vcombine.low %v5245_v34, %v6936_v35  ;;  %v3222_v46 = vrot.slane %v5238_v40, 1  ;;  %v5279_v19 = vld [vmem:[%s6410_s28 + $0x48] sm:$0xf] }
  0xb6   : > { %v3118_v31 = vor.u32 %v3117_v25, %v3113_v24  ;;  %v3344_v54 = vshrl.u32 %v5249_v41, 16  ;;  %v3535_v25 = vshrl.u32 %v5267_v10, 16 }
  0xb8   : > { %5816 = vmatmul.mubr.msk.bf16.vlgmr.msra.gmra.mrb[72].mxu0 %vm216_vm2, %v2544_v44  ;;  %v3123_v39 = vsel %vm203_vm3, %v3118_v31, %v3122_v32  ;;  %v3022_v44 = vrot.slane %v6881_v60, 1  ;;  %v3753_v32 = vsel %vm220_vm0, %v3680_v28, 0  ;;  %v3540_v33 = vor.u32 %v3539_v26, %v3535_v25  ;;  %v7103_v28 = vld [vmem:[%s6410_s28 + $0x58] sm:$0xf] }
  0xb9   : > { %5826 = vmatpush3.bf16.msra.mxu0 %v2650_v48  ;;  %5827 = vmatprep.mubr.msk.bf16.mxu0 %vm6290_vm1, %v6289_v2  ;;  %v6959_v48 = vld [vmem:[%s6410_s28 + $0x50] ss:$0 sps:$4 sm:$0x11]  }
  0xba   : > { %5834 = vmatmul.mubr.msk.bf16.vlgmr.msra.gmra.mrb[76].mxu1 %vm216_vm2, %v6151_v49  ;;  %5837 = vmatprep.subr.bf16.mxu0 %v6289_v2  ;;  %v3346_v49 = vshll.u32 %v5249_v41, 16  ;;  %v3023_v50 = vsel %vm317_vm4, %v3021_v43, %v3022_v44  ;;  %v3351_v56 = vshll.u32 %v6959_v48, 16  ;;  %v3410_v16 = vrot.slane %v6959_v48, 1  ;;  %v5293_v44 = vld [vmem:[%s7359_s1 + $0xc] sm:$0xf] }
  0xbb   : > { %5844 = vmatpush3.bf16.msra.mxu1 %v2837_v53  ;;  %5845 = vmatprep.mubr.msk.bf16.mxu1 %vm6290_vm1, %v6289_v2  ;;  %v3224_v53 = vsel %vm317_vm4, %v3222_v46, %v3223_v47  ;;  %v3865_v48 = vsel %vm220_vm0, %v5293_v44, 0 }
  0xbc   : > { %5855 = vmatprep.subr.bf16.mxu1 %v6289_v2  ;;  %v3348_v55 = vrot.slane %v3346_v49, 1  ;;  %v3353_v60 = vrot.slane %v3351_v56, 1  ;;  %v5303_v56 = vld [vmem:[%s6410_s28 + $0x54] sm:$0xe] }
  0xbe   : > { %v3349_v59 = vor.u32 %v3348_v55, %v3344_v54  ;;  %v5297_v54 = vld [vmem:[%s6410_s28 + $0x58] sm:$0xf] }
  0xbf   : > { %v5305_v10 = vcombine.low %v5303_v56, %v5297_v54 }
  0xc0   : > { %5828 = vmatmul.mubr.msk.bf16.vlgmr.msra.gmra.mrb[76].mxu0 %vm216_vm2, %v2645_v0  ;;  %v3354_v63 = vsel %vm203_vm3, %v3349_v59, %v3353_v60  ;;  %v3477_v0 = vsel %vm220_vm0, %v5260_v61, 0  ;;  %v5314_v59 = vld [vmem:[%s6410_s28 + $0x60] sm:$0xf]  ;;  %v7074_v60 = vld [vmem:[%s6410_s28 + $0x64] sm:$0xf] }
  0xc1   : > { %5838 = vmatpush3.bf16.msra.mxu0 %v2780_v6  ;;  %5839 = vmatprep.mubr.msk.bf16.mxu0 %vm6290_vm1, %v6289_v2  ;;  %v6165_v6 = vld [vmem:[%s6410_s28 + $0x48] sm:$0xff]  }
  0xc2   : > { %5846 = vmatmul.mubr.msk.bf16.vlgmr.msra.gmra.mrb[80].mxu1 %vm216_vm2, %v2832_v7  ;;  %5849 = vmatprep.subr.bf16.mxu0 %v6289_v2  ;;  %v5254_v7 = vcombine.low %v5252_v1, %v6936_v35  ;;  %v7040_v35 = vld [vmem:[%s6410_s28 + $0x50] ss:$0 sps:$4 sm:$0x11]  }
  0xc3   : > { %5856 = vmatpush3.bf16.msra.mxu1 %v2971_v12  ;;  %5857 = vmatprep.mubr.msk.bf16.mxu1 %vm6290_vm1, %v6289_v2  ;;  %v6166_v12 = vld [vmem:[%s6410_s28 + $0x54] sm:$0xff]   ;;  %v3699_v43 = vshll.u32 %v7040_v35, 16 }
  0xc4   : > { %5867 = vmatprep.subr.bf16.mxu1 %v6289_v2  ;;  %v3409_v15 = vrot.slane %v5254_v7, 1 }
  0xc6   : > { %v3411_v24 = vsel %vm317_vm4, %v3409_v15, %v3410_v16  ;;  %v3802_v16 = vrot.slane %v7040_v35, 1 }
  0xc8   : > { %5840 = vmatmul.mubr.msk.bf16.vlgmr.msra.gmra.mrb[80].mxu0 %vm216_vm2, %v2775_v20  ;;  %v7020_v20 = vld [vmem:[%s6410_s28 + $0x4c] sm:$0xf] }
  0xc9   : > { %5850 = vmatpush3.bf16.msra.mxu0 %v2898_v23  ;;  %5851 = vmatprep.mubr.msk.bf16.mxu0 %vm6290_vm1, %v6289_v2  ;;  %v3600_v23 = vrot.slane %v5272_v14, 1  ;;  %v3995_v14 = vsel %vm220_vm0, %v5304_v3, 0 }
  0xca   : > { %5858 = vmatmul.mubr.msk.bf16.vlgmr.msra.gmra.mrb[84].mxu1 %vm216_vm2, %v2966_v22  ;;  %5861 = vmatprep.subr.bf16.mxu0 %v6289_v2  ;;  %v3601_v22 = vrot.slane %v6169_v13, 1 }
  0xcb   : > { %5868 = vmatpush3.bf16.msra.mxu1 %v3128_v27  ;;  %5869 = vmatprep.mubr.msk.bf16.mxu1 %vm6290_vm1, %v6289_v2  ;;  %v3542_v27 = vshll.u32 %v6169_v13, 16 }
  0xcc   : > { %5879 = vmatprep.subr.bf16.mxu1 %v6289_v2  ;;  %v3602_v31 = vsel %vm317_vm4, %v3600_v23, %v3601_v22  ;;  %v7098_v23 = vld [vmem:[%s6410_s28 + $0x68] ss:$0 sps:$4 sm:$0x11]  }
  0xcd   : > { %v3544_v34 = vrot.slane %v3542_v27, 1  ;;  %v5330_v27 = vld [vmem:[%s6410_s28 + $0x54] sm:$0xf]  ;;  %v4121_v44 = vshll.u32 %v7098_v23, 16 }
  0xd0   : > { %5852 = vmatmul.mubr.msk.bf16.vlgmr.msra.gmra.mrb[84].mxu0 %vm216_vm2, %v6158_v29  ;;  %v5283_v29 = vcombine.low %v5279_v19, %v7020_v20  ;;  %v3988_v19 = vrot.slane %v5305_v10, 1 }
  0xd1   : > { %5862 = vmatpush3.bf16.msra.mxu0 %v3028_v38  ;;  %5863 = vmatprep.mubr.msk.bf16.mxu0 %vm6290_vm1, %v6289_v2 }
  0xd2   : > { %5870 = vmatmul.mubr.msk.bf16.vlgmr.msra.gmra.mrb[88].mxu1 %vm216_vm2, %v3123_v39  ;;  %5873 = vmatprep.subr.bf16.mxu0 %v6289_v2  ;;  %v3694_v36 = vshll.u32 %v5283_v29, 16  ;;  %v3545_v39 = vsel %vm203_vm3, %v3540_v33, %v3544_v34  ;;  %v3692_v41 = vshrl.u32 %v5283_v29, 16  ;;  %v3930_v33 = vshll.u32 %v6176_v9, 16  ;;  %v5317_v34 = vld [vmem:[%s7359_s1 + $0x1c] sm:$0xf] }
  0xd3   : > { %5880 = vmatpush3.bf16.msra.mxu1 %v3229_v42  ;;  %5881 = vmatprep.mubr.msk.bf16.mxu1 %vm6290_vm1, %v6289_v2 }
  0xd4   : > { %5891 = vmatprep.subr.bf16.mxu1 %v6289_v2  ;;  %v3696_v42 = vrot.slane %v3694_v36, 1 }
  0xd6   : > { %v3697_v49 = vor.u32 %v3696_v42, %v3692_v41 }
  0xd8   : > { %5864 = vmatmul.mubr.msk.bf16.vlgmr.msra.gmra.mrb[88].mxu0 %vm216_vm2, %v3023_v50  ;;  %v3701_v50 = vrot.slane %v3699_v43, 1 }
  0xd9   : > { %5874 = vmatpush3.bf16.msra.mxu0 %v3174_v52  ;;  %5875 = vmatprep.mubr.msk.bf16.mxu0 %vm6290_vm1, %v6289_v2  ;;  %v5287_v52 = vld [vmem:[%s6410_s28 + $0x48] sm:$0xe] }
  0xda   : > { %5882 = vmatmul.mubr.msk.bf16.vlgmr.msra.gmra.mrb[92].mxu1 %vm216_vm2, %v3224_v53  ;;  %5885 = vmatprep.subr.bf16.mxu0 %v6289_v2  ;;  %v5296_v53 = vld [vmem:[%s6410_s28 + $0x54] sm:$0xf]  ;;  %v5289_v1 = vcombine.low %v5287_v52, %v7020_v20  ;;  %v3989_v20 = vrot.slane %v6176_v9, 1 }
  0xdb   : > { %5892 = vmatpush3.bf16.msra.mxu1 %v3359_v57  ;;  %5893 = vmatprep.mubr.msk.bf16.mxu1 %vm6290_vm1, %v6289_v2  ;;  %v5300_v4 = vcombine.low %v5296_v53, %v5297_v54  ;;  %v4123_v54 = vrot.slane %v4121_v44, 1  ;;  %v4259_v44 = vld [vmem:[%s7359_s1] sm:$0xf] }
  0xdc   : > { %5903 = vmatprep.subr.bf16.mxu1 %v6289_v2  ;;  %v3801_v15 = vrot.slane %v5289_v1, 1 }
  0xdd   : > { %v3923_v26 = vshrl.u32 %v5300_v4, 16 }
  0xe0   : > { %5876 = vmatmul.mubr.msk.bf16.vlgmr.msra.gmra.mrb[92].mxu0 %vm216_vm2, %v6896_v11  ;;  %v3416_v11 = vsel %vm220_vm0, %v5253_v5, 0 }
  0xe1   : > { %5886 = vmatpush3.bf16.msra.mxu0 %v3286_v62  ;;  %5887 = vmatprep.mubr.msk.bf16.mxu0 %vm6290_vm1, %v6289_v2  ;;  %v3702_v62 = vsel %vm203_vm3, %v3697_v49, %v3701_v50  ;;  %v3932_v50 = vrot.slane %v3930_v33, 1 }
  0xe2   : > { %5894 = vmatmul.mubr.msk.bf16.vlgmr.msra.gmra.mrb[96].mxu1 %vm216_vm2, %v3354_v63  ;;  %5897 = vmatprep.subr.bf16.mxu0 %v6289_v2  ;;  %v3808_v63 = vsel %vm220_vm0, %v5288_v51, 0  ;;  %v5311_v51 = vld [vmem:[%s7359_s1 + $0x18] sm:$0xf] }
  0xe3   : > { %5904 = vmatpush3.bf16.msra.mxu1 %v3477_v0  ;;  %5905 = vmatprep.mubr.msk.bf16.mxu1 %vm6290_vm1, %v6289_v2  ;;  %v4056_v3 = vsel %vm220_vm0, %v5311_v51, 0 }
  0xe4   : > { %5915 = vmatprep.subr.bf16.mxu1 %v6289_v2 }
  0xe8   : > { %5888 = vmatmul.mubr.msk.bf16.vlgmr.msra.gmra.mrb[96].mxu0 %vm216_vm2, %v6165_v6 }
  0xe9   : > { %5898 = vmatpush3.bf16.msra.mxu0 %v3416_v11  ;;  %5899 = vmatprep.mubr.msk.bf16.mxu0 %vm6290_vm1, %v6289_v2 }
  0xea   : > { %5906 = vmatmul.mubr.msk.bf16.vlgmr.msra.gmra.mrb[100].mxu1 %vm216_vm2, %v6166_v12  ;;  %5909 = vmatprep.subr.bf16.mxu0 %v6289_v2  ;;  %v5318_v12 = vcombine.low %v5314_v59, %v7074_v60 }
  0xeb   : > { %5916 = vmatpush3.bf16.msra.mxu1 %v3607_v17  ;;  %5917 = vmatprep.mubr.msk.bf16.mxu1 %vm6290_vm1, %v6289_v2  ;;  %v3925_v17 = vshll.u32 %v5300_v4, 16 }
  0xec   : > { %5927 = vmatprep.subr.bf16.mxu1 %v6289_v2  ;;  %v4116_v22 = vshll.u32 %v5318_v12, 16  ;;  %v4114_v42 = vshrl.u32 %v5318_v12, 16 }
  0xee   : > { %v4118_v43 = vrot.slane %v4116_v22, 1  ;;  %v6180_v22 = vld [vmem:[%s6410_s28 + $0x60] sm:$0xff]  }
  0xf0   : > { %5900 = vmatmul.mubr.msk.bf16.vlgmr.msra.gmra.mrb[100].mxu0 %vm216_vm2, %v3411_v24  ;;  %v4119_v53 = vor.u32 %v4118_v43, %v4114_v42  ;;  %v7178_v43 = vld [vmem:[%s7360_s2] ss:$0 sm:$0xff] }
  0xf1   : > { %5910 = vmatpush3.bf16.msra.mxu0 %v3550_v30  ;;  %5911 = vmatprep.mubr.msk.bf16.mxu0 %vm6290_vm1, %v6289_v2  ;;  %v3803_v30 = vsel %vm317_vm4, %v3801_v15, %v3802_v16  ;;  %v5322_v16 = vld [vmem:[%s7359_s1 + $0x20] sm:$0xf] }
  0xf2   : > { %5918 = vmatmul.mubr.msk.bf16.vlgmr.msra.gmra.mrb[104].mxu1 %vm216_vm2, %v3602_v31  ;;  %5921 = vmatprep.subr.bf16.mxu0 %v6289_v2  ;;  %v4186_v33 = vsel %vm220_vm0, %v5322_v16, 0 }
  0xf3   : > { %5928 = vmatpush3.bf16.msra.mxu1 %v3753_v32  ;;  %5929 = vmatprep.mubr.msk.bf16.mxu1 %vm6290_vm1, %v6289_v2  ;;  %v3927_v32 = vrot.slane %v3925_v17, 1 }
  0xf4   : > { %v304_v38 = vpop.f32.mrb[0].mxu1  ;;  %5939 = vmatprep.subr.bf16.mxu1 %v6289_v2 }
  0xf5   : > { %v5607_v40 = vpop.f32.mrb[1].mxu1  ;;  %v3928_v49 = vor.u32 %v3927_v32, %v3923_v26 }
  0xf6   : > { %v307_v46 = vpop.f32.mrb[2].mxu1  ;;  %v3990_v40 = vsel %vm317_vm4, %v3988_v19, %v3989_v20  ;;  %v5338_v19 = vld [vmem:[%s6410_s28 + $0x54] sm:$0xe] }
  0xf7   : > { %v5608_v47 = vpop.f32.mrb[3].mxu1 }
  0xf8   : > { %5912 = vmatmul.mubr.msk.bf16.vlgmr.msra.gmra.mrb[104].mxu0 %vm216_vm2, %v3545_v39 }
  0xf9   : > { %5922 = vmatpush3.bf16.msra.mxu0 %v3707_v45  ;;  %5923 = vmatprep.mubr.msk.bf16.mxu0 %vm6290_vm1, %v6289_v2  ;;  %v7113_v45 = vcombine.low %v5330_v27, %v7103_v28 }
  0xfa   : > { %5930 = vmatmul.mubr.msk.bf16.vlgmr.msra.gmra.mrb[108].mxu1 %vm216_vm2, %v5283_v29  ;;  %5933 = vmatprep.subr.bf16.mxu0 %v6289_v2 }
  0xfb   : > { %v258_v55 = vpop.f32.mrb[0].mxu0  ;;  %5940 = vmatpush3.bf16.msra.mxu1 %v3865_v48  ;;  %5941 = vmatprep.mubr.msk.bf16.mxu1 %vm6290_vm1, %v6289_v2  ;;  %v4129_v48 = vsel %vm220_vm0, %v5317_v34, 0  ;;  %v4273_v56 = vshll.u32 %v7113_v45, 16 }
  0xfc   : > { %v305_v57 = vadd.f32 %v304_v38, %v258_v55  ;;  %v5601_v58 = vpop.f32.mrb[1].mxu0  ;;  %5951 = vmatprep.subr.bf16.mxu1 %v6289_v2  ;;  %v7127_v55 = vld [vmem:[%s6410_s28 + $0x5c] ss:$0 sps:$4 sm:$0x11]  }
  0xfd   : > { %v261_v61 = vpop.f32.mrb[2].mxu0  ;;  %v423_v0 = vpop.f32.mrb[4].mxu1  ;;  %v4275_v9 = vrot.slane %v4273_v56, 1  ;;  %v4278_v10 = vshll.u32 %v7127_v55, 16  ;;  %v5350_v56 = vld [vmem:[%s7359_s1 + $0x10] sm:$0xf] }
  0xfe   : > { %v308_v5 = vadd.f32 %v307_v46, %v261_v61  ;;  %v5602_v6 = vpop.f32.mrb[3].mxu0  ;;  %v5619_v7 = vpop.f32.mrb[5].mxu1  ;;  %v3933_v61 = vsel %vm203_vm3, %v3928_v49, %v3932_v50 }
  0xff   : > { %v426_v11 = vpop.f32.mrb[6].mxu1  ;;  %v4124_v7 = vsel %vm203_vm3, %v4119_v53, %v4123_v54  ;;  %v4280_v18 = vrot.slane %v4278_v10, 1  ;;  %v5344_v10 = vld [vmem:[%s7359_s1 + $0xc] sm:$0xf] }
 0x100   : > { %5924 = vmatmul.mubr.msk.bf16.vlgmr.msra.gmra.mrb[108].mxu0 %vm216_vm2, %v3702_v62  ;;  %v5620_v13 = vpop.f32.mrb[7].mxu1 }
 0x101   : > { %5934 = vmatpush3.bf16.msra.mxu0 %v3808_v63  ;;  %5935 = vmatprep.mubr.msk.bf16.mxu0 %vm6290_vm1, %v6289_v2  ;;  %v5333_v63 = vld [vmem:[%s7359_s1 + $0x4] sm:$0xf] }
 0x102   : > { %5942 = vmatmul.mubr.msk.bf16.vlgmr.msra.gmra.mrb[112].mxu1 %vm216_vm2, %v6173_v8  ;;  %5945 = vmatprep.subr.bf16.mxu0 %v6289_v2  ;;  %v4271_v8 = vshrl.u32 %v7113_v45, 16  ;;  %v4286_v13 = vsel %vm220_vm0, %v5333_v63, 0 }
 0x103   : > { %v361_v21 = vpop.f32.mrb[4].mxu0  ;;  %5952 = vmatpush3.bf16.msra.mxu1 %v3995_v14  ;;  %5953 = vmatprep.mubr.msk.bf16.mxu1 %vm6290_vm1, %v6289_v2  ;;  %v5321_v14 = vld [vmem:[%s6410_s28 + $0x60] sm:$0xe] }
 0x104   : > { %v368_v24 = vadd.f32 %v361_v21, %v305_v57  ;;  %v5613_v25 = vpop.f32.mrb[5].mxu0  ;;  %5963 = vmatprep.subr.bf16.mxu1 %v6289_v2  ;;  %v4276_v17 = vor.u32 %v4275_v9, %v4271_v8 }
 0x105   : > { %v364_v29 = vpop.f32.mrb[6].mxu0  ;;  %v555_v31 = vpop.f32.mrb[8].mxu1  ;;  %v7156_v25 = vld [vmem:[%s6410_s28 + $0x64] sm:$0xf] }
 0x106   : > { %v369_v35 = vadd.f32 %v364_v29, %v308_v5  ;;  %v5614_v36 = vpop.f32.mrb[7].mxu0  ;;  %v430_v38 = vadd.f32 %v423_v0, %v368_v24  ;;  %v5631_v39 = vpop.f32.mrb[9].mxu1  ;;  %v5347_v24 = vld [vmem:[%s6410_s28 + $0x60] sm:$0xf]  ;;  %v5323_v29 = vcombine.low %v5321_v14, %v7074_v60 }
 0x107   : > { %v558_v41 = vpop.f32.mrb[10].mxu1  ;;  %v5340_v36 = vcombine.low %v5338_v19, %v7103_v28  ;;  %v5351_v39 = vcombine.low %v5347_v24, %v7156_v25  ;;  %v4180_v28 = vrot.slane %v7098_v23, 1  ;;  %v4381_v23 = vrot.slane %v7127_v55, 1 }
 0x108   : > { %5936 = vmatmul.mubr.msk.bf16.vlgmr.msra.gmra.mrb[112].mxu0 %vm216_vm2, %v3803_v30  ;;  %v431_v46 = vadd.f32 %v426_v11, %v369_v35  ;;  %v5632_v47 = vpop.f32.mrb[11].mxu1  ;;  %v5339_v30 = vld [vmem:[%s7359_s1 + $0x8] sm:$0xf]  ;;  %v4179_v42 = vrot.slane %v5323_v29, 1  ;;  %v4444_v24 = vsel %vm220_vm0, %v5344_v10, 0 }
 0x109   : > { %5946 = vmatpush3.bf16.msra.mxu0 %v3938_v37  ;;  %5947 = vmatprep.mubr.msk.bf16.mxu0 %vm6290_vm1, %v6289_v2  ;;  %v4504_v49 = vshll.u32 %v5351_v39, 16 }
 0x10a   : > { %5954 = vmatmul.mubr.msk.bf16.vlgmr.msra.gmra.mrb[116].mxu1 %vm216_vm2, %v3990_v40  ;;  %5957 = vmatprep.subr.bf16.mxu0 %v6289_v2  ;;  %v4181_v53 = vsel %vm317_vm4, %v4179_v42, %v4180_v28 }
 0x10b   : > { %v497_v52 = vpop.f32.mrb[8].mxu0  ;;  %5964 = vmatpush3.bf16.msra.mxu1 %v4129_v48  ;;  %5965 = vmatprep.mubr.msk.bf16.mxu1 %vm6290_vm1, %v6289_v2  ;;  %v7189_v48 = vld [vmem:[%s6410_s28 + $0x68] ss:$0 sps:$4 sm:$0x11]  }
 0x10c   : > { %v504_v57 = vadd.f32 %v497_v52, %v430_v38  ;;  %v5625_v58 = vpop.f32.mrb[9].mxu0  ;;  %5975 = vmatprep.subr.bf16.mxu1 %v6289_v2  ;;  %v4281_v38 = vsel %vm203_vm3, %v4276_v17, %v4280_v18 }
 0x10d   : > { %v500_v59 = vpop.f32.mrb[10].mxu0  ;;  %v691_v62 = vpop.f32.mrb[12].mxu1 }
 0x10e   : > { %v505_v0 = vadd.f32 %v500_v59, %v431_v46  ;;  %v5626_v1 = vpop.f32.mrb[11].mxu0  ;;  %v562_v4 = vadd.f32 %v555_v31, %v504_v57  ;;  %v5643_v5 = vpop.f32.mrb[13].mxu1  ;;  %v4380_v46 = vrot.slane %v5340_v36, 1  ;;  %v4332_v59 = vsel %vm220_vm0, %v4259_v44, 0  ;;  %v5366_v36 = vld [vmem:[%s6410_s28 + $0x70] sm:$0xf] }
 0x10f   : > { %v694_v6 = vpop.f32.mrb[14].mxu1  ;;  %v4506_v1 = vrot.slane %v4504_v49, 1  ;;  %v5373_v44 = vld [vmem:[%s7359_s1 + $0x20] sm:$0xf] }
 0x110   : > { %5948 = vmatmul.mubr.msk.bf16.vlgmr.msra.gmra.mrb[116].mxu0 %vm216_vm2, %v3933_v61  ;;  %v563_v11 = vadd.f32 %v558_v41, %v505_v0  ;;  %v5644_v12 = vpop.f32.mrb[15].mxu1  ;;  %v4387_v41 = vsel %vm220_vm0, %v5339_v30, 0  ;;  %v4382_v63 = vsel %vm317_vm4, %v4380_v46, %v4381_v23  ;;  %v4502_v0 = vshrl.u32 %v5351_v39, 16 }
 0x111   : > { %5958 = vmatpush3.bf16.msra.mxu0 %v4056_v3  ;;  %5959 = vmatprep.mubr.msk.bf16.mxu0 %vm6290_vm1, %v6289_v2  ;;  %v4509_v3 = vshll.u32 %v7189_v48, 16 }
 0x112   : > { %5966 = vmatmul.mubr.msk.bf16.vlgmr.msra.gmra.mrb[120].mxu1 %vm216_vm2, %v4124_v7  ;;  %5969 = vmatprep.subr.bf16.mxu0 %v6289_v2  ;;  %v4517_v7 = vsel %vm220_vm0, %v5350_v56, 0 }
 0x113   : > { %v617_v15 = vpop.f32.mrb[12].mxu0  ;;  %5976 = vmatpush3.bf16.msra.mxu1 %v4286_v13  ;;  %5977 = vmatprep.mubr.msk.bf16.mxu1 %vm6290_vm1, %v6289_v2  ;;  %v4511_v12 = vrot.slane %v4509_v3, 1 }
 0x114   : > { %v624_v20 = vadd.f32 %v617_v15, %v562_v4  ;;  %v5637_v21 = vpop.f32.mrb[13].mxu0  ;;  %5987 = vmatprep.subr.bf16.mxu1 %v6289_v2 }
 0x115   : > { %v620_v26 = vpop.f32.mrb[14].mxu0  ;;  %v7158_v27 = vpop.f32.mrb[16].mxu1 }
 0x116   : > { %v625_v31 = vadd.f32 %v620_v26, %v563_v11  ;;  %v5638_v32 = vpop.f32.mrb[15].mxu0  ;;  %v698_v34 = vadd.f32 %v691_v62, %v624_v20  ;;  %v5655_v35 = vpop.f32.mrb[17].mxu1  ;;  %v4507_v11 = vor.u32 %v4506_v1, %v4502_v0  ;;  %v5362_v20 = vld [vmem:[%s7359_s1 + $0x18] sm:$0xf] }
 0x117   : > { %v7166_v37 = vpop.f32.mrb[18].mxu1  ;;  %v5365_v35 = vld [vmem:[%s6410_s28 + $0x6c] sm:$0xf] }
 0x118   : > { %5960 = vmatmul.mubr.msk.bf16.vlgmr.msra.gmra.mrb[120].mxu0 %vm216_vm2, %v6180_v22  ;;  %v699_v60 = vadd.f32 %v694_v6, %v625_v31  ;;  %v5656_v40 = vpop.f32.mrb[19].mxu1  ;;  %v4512_v30 = vsel %vm203_vm3, %v4507_v11, %v4511_v12  ;;  %v5369_v46 = vcombine.low %v5365_v35, %v5366_v36 }
 0x119   : > { %5970 = vmatpush3.bf16.msra.mxu0 %v4186_v33  ;;  %5971 = vmatprep.mubr.msk.bf16.mxu0 %vm6290_vm1, %v6289_v2  ;;  %v4635_v33 = vsel %vm220_vm0, %v5362_v20, 0  ;;  %v5372_v40 = vld [vmem:[%s6410_s28 + $0x6c] sm:$0xe] }
 0x11a   : > { %5978 = vmatmul.mubr.msk.bf16.vlgmr.msra.gmra.mrb[124].mxu1 %vm216_vm2, %v4281_v38  ;;  %5981 = vmatprep.subr.bf16.mxu0 %v6289_v2  ;;  %v5374_v56 = vcombine.low %v5372_v40, %v5366_v36 }
 0x11b   : > { %v749_v47 = vpop.f32.mrb[16].mxu0  ;;  %5988 = vmatpush3.bf16.msra.mxu1 %v4387_v41  ;;  %5989 = vmatprep.mubr.msk.bf16.mxu1 %vm6290_vm1, %v6289_v2 }
 0x11c   : > { %v756_v50 = vadd.f32 %v749_v47, %v698_v34  ;;  %v5649_v51 = vpop.f32.mrb[17].mxu0  ;;  %5999 = vmatprep.subr.bf16.mxu1 %v6289_v2  ;;  %v5354_v34 = vld [vmem:[%s6410_s28 + $0x60] sm:$0xe]  ;;  %v4758_v0 = vrot.slane %v5374_v56, 1 }
 0x11d   : > { %v752_v52 = vpop.f32.mrb[18].mxu0  ;;  %v949_v54 = vpop.f32.mrb[20].mxu1  ;;  %v5356_v28 = vcombine.low %v5354_v34, %v7156_v25  ;;  %v4765_v25 = vsel %vm220_vm0, %v5373_v44, 0 }
 0x11e   : > { %v765_v57 = vadd.f32 %v7178_v43, %v756_v50  ;;  %v757_v55 = vadd.f32 %v752_v52, %v699_v60  ;;  %v5650_v58 = vpop.f32.mrb[19].mxu0  ;;  %v5667_v61 = vpop.f32.mrb[21].mxu1  ;;  %v6187_v60 = vld [vmem:[%s6410_s28 + $0x60] sm:$0xff]   ;;  %v6188_v52 = vld [vmem:[%s6410_s28 + $0x6c] sm:$0xff]  }
 0x11f   : > { %v952_v62 = vpop.f32.mrb[22].mxu1  ;;  %v4567_v58 = vrot.slane %v5356_v28, 1  ;;  %v4695_v61 = vshll.u32 %v5369_v46, 16 }
 0x120   : > { %v769_v4 = vmul.f32 0.2, %v765_v57  ;;  %v766_v5 = vadd.f32 %v7178_v43, %v757_v55  ;;  %5972 = vmatmul.mubr.msk.bf16.vlgmr.msra.gmra.mrb[124].mxu0 %vm216_vm2, %v4181_v53  ;;  %v5668_v6 = vpop.f32.mrb[23].mxu1  ;;  %vm767_vm5 = vcmp.ge.f32.partialorder %v765_v57, 0.0 }
 0x121   : > { %5982 = vmatpush3.bf16.msra.mxu0 %v4332_v59  ;;  %5983 = vmatprep.mubr.msk.bf16.mxu0 %vm6290_vm1, %v6289_v2  ;;  %v4568_v59 = vrot.slane %v7189_v48, 1 }
 0x122   : > { %vm768_vm6 = vcmp.ge.f32.partialorder %v766_v5, 0.0  ;;  %v770_v8 = vmul.f32 0.2, %v766_v5  ;;  %5990 = vmatmul.mubr.msk.bf16.vlgmr.msra.gmra.mrb[128].mxu1 %vm216_vm2, %v4382_v63  ;;  %5993 = vmatprep.subr.bf16.mxu0 %v6289_v2  ;;  %v771_v13 = vsel %vm767_vm5, %v765_v57, %v769_v4  ;;  %v5368_v63 = vld [vmem:[%s7359_s1 + $0x1c] sm:$0xf] }
 0x123   : > { %v894_v9 = vpop.f32.mrb[20].mxu0  ;;  %6000 = vmatpush3.bf16.msra.mxu1 %v4517_v7  ;;  %6001 = vmatprep.mubr.msk.bf16.mxu1 %vm6290_vm1, %v6289_v2  ;;  %v4569_v48 = vsel %vm317_vm4, %v4567_v58, %v4568_v59  ;;  %v4693_v7 = vshrl.u32 %v5369_v46, 16  ;;  %v4708_v12 = vsel %vm220_vm0, %v5368_v63, 0 }
 0x124   : > { %v772_v14 = vsel %vm768_vm6, %v766_v5, %v770_v8  ;;  %v895_v15 = vadd.f32 %v894_v9, %v7158_v27  ;;  %v5661_v16 = vpop.f32.mrb[21].mxu0  ;;  %6011 = vmatprep.subr.bf16.mxu1 %v6289_v2  ;;  %v4697_v8 = vrot.slane %v4695_v61, 1 }
 0x125   : > { %v5409_v17 = vpack.c.bf16 %v772_v14, %v771_v13  ;;  %v897_v18 = vpop.f32.mrb[22].mxu0  ;;  %v1079_v19 = vpop.f32.mrb[24].mxu1 }
 0x126   : > { %v898_v21 = vadd.f32 %v897_v18, %v7166_v37  ;;  %v5662_v22 = vpop.f32.mrb[23].mxu0  ;;  %v956_v26 = vadd.f32 %v949_v54, %v895_v15  ;;  %v5679_v27 = vpop.f32.mrb[25].mxu1  ;;  %v6191_v54 = vld [vmem:[%s6410_s28 + $0x74] ss:$0 sps:$4 sm:$0x11]   ;;  %s6291_s28 = smov [#allocation2]  }
 0x127   : > { %5410 = vst [vmem:[%s7222_s9] sm:$0xff] %v5409_v17   ;;  %v1082_v29 = vpop.f32.mrb[26].mxu1  ;;  %v4759_v1 = vrot.slane %v6191_v54, 1  ;;  %v4700_v9 = vshll.u32 %v6191_v54, 16  ;;  %s6197_s24 = sshll.u32 %s6291_s28, 4  ;;  %s6198_s24 = int_to_ptr.vmem [resolvable:$false] %s6197_s24 }
 0x128   : > { %5984 = vmatmul.mubr.msk.bf16.vlgmr.msra.gmra.mrb[128].mxu0 %vm216_vm2, %v7113_v45  ;;  %v957_v31 = vadd.f32 %v952_v62, %v898_v21  ;;  %v5680_v32 = vpop.f32.mrb[27].mxu1  ;;  %v5355_v45 = vld [vmem:[%s7359_s1 + $0x14] sm:$0xf]  ;;  %s6199_s27 = scalar_lea.vmem %s6198_s24, 2048  ;;  %p6200_p2 = scmp.lt.s32.totalorder %s7301_s10, %s6198_s24 }
 0x129   : > { %5994 = vmatpush3.bf16.msra.mxu0 %v4444_v24  ;;  %5995 = vmatprep.mubr.msk.bf16.mxu0 %vm6290_vm1, %v6289_v2  ;;  %v4574_v49 = vsel %vm220_vm0, %v5355_v45, 0  ;;  %v4760_v16 = vsel %vm317_vm4, %v4758_v0, %v4759_v1  ;;  %v4702_v20 = vrot.slane %v4700_v9, 1  ;;  %p6201_p4 = scmp.lt.s32.totalorder %s6199_s27, %s6193_s21 }
 0x12a   : > { %6002 = vmatmul.mubr.msk.bf16.vlgmr.msra.gmra.mrb[132].mxu1 %vm216_vm2, %v4512_v30  ;;  %6005 = vmatprep.subr.bf16.mxu0 %v6289_v2 }
 0x12b   : > { %v1006_v37 = vpop.f32.mrb[24].mxu0  ;;  %6012 = vmatpush3.bf16.msra.mxu1 %v4635_v33  ;;  %6013 = vmatprep.mubr.msk.bf16.mxu1 %vm6290_vm1, %v6289_v2  ;;  %p6202_p5 = por %p6201_p4, %p6200_p2 }
 0x12c   : > { %v1013_v38 = vadd.f32 %v1006_v37, %v956_v26  ;;  %v5673_v39 = vpop.f32.mrb[25].mxu0  ;;  %6023 = vmatprep.subr.bf16.mxu1 %v6289_v2 }
 0x12d   : > { %v1009_v41 = vpop.f32.mrb[26].mxu0  ;;  %v1197_v42 = vpop.f32.mrb[28].mxu1  ;;  %p6203_p6 = pnand %p6202_p5, %p6196_p1 }
 0x12e   : > { %v1014_v47 = vadd.f32 %v1009_v41, %v957_v31  ;;  %v5674_v23 = vpop.f32.mrb[27].mxu0  ;;  %v1086_v50 = vadd.f32 %v1079_v19, %v1013_v38  ;;  %v5691_v51 = vpop.f32.mrb[29].mxu1  ;;  %v4698_v19 = vor.u32 %v4697_v8, %v4693_v7 }
 0x12f   : > { %v1200_v53 = vpop.f32.mrb[30].mxu1 }
 0x130   : > { %5996 = vmatmul.mubr.msk.bf16.vlgmr.msra.gmra.mrb[132].mxu0 %vm216_vm2, %v6187_v60  ;;  %v1087_v57 = vadd.f32 %v1082_v29, %v1014_v47  ;;  %v5692_v55 = vpop.f32.mrb[31].mxu1  ;;  %v4703_v27 = vsel %vm203_vm3, %v4698_v19, %v4702_v20 }
 0x131   : > { %6006 = vmatpush3.bf16.msra.mxu0 %v4574_v49  ;;  %6007 = vmatprep.mubr.msk.bf16.mxu0 %vm6290_vm1, %v6289_v2 }
 0x132   : > { %6014 = vmatmul.mubr.msk.bf16.vlgmr.msra.gmra.mrb[136].mxu1 %vm216_vm2, %v6188_v52  ;;  %6017 = vmatprep.subr.bf16.mxu0 %v6289_v2 }
 0x133   : > { %v1136_v62 = vpop.f32.mrb[28].mxu0  ;;  %6024 = vmatpush3.bf16.msra.mxu1 %v4765_v25  ;;  %6025 = vmatprep.mubr.msk.bf16.mxu1 %vm6290_vm1, %v6289_v2 }
 0x134   : > { %v1143_v3 = vadd.f32 %v1136_v62, %v1086_v50  ;;  %v5685_v4 = vpop.f32.mrb[29].mxu0 }
 0x135   : > { %v1139_v5 = vpop.f32.mrb[30].mxu0  ;;  %v1327_v6 = vpop.f32.mrb[32].mxu1 }
 0x136   : > { %v1144_v10 = vadd.f32 %v1139_v5, %v1087_v57  ;;  %v5686_v11 = vpop.f32.mrb[31].mxu0  ;;  %v1204_v13 = vadd.f32 %v1197_v42, %v1143_v3  ;;  %v5703_v14 = vpop.f32.mrb[33].mxu1 }
 0x137   : > { %v1330_v15 = vpop.f32.mrb[34].mxu1 }
 0x138   : > { %6008 = vmatmul.mubr.msk.bf16.vlgmr.msra.gmra.mrb[136].mxu0 %vm216_vm2, %v4569_v48  ;;  %v1205_v17 = vadd.f32 %v1200_v53, %v1144_v10  ;;  %v5704_v18 = vpop.f32.mrb[35].mxu1 }
 0x139   : > { %6018 = vmatpush3.bf16.msra.mxu0 %v4708_v12  ;;  %6019 = vmatprep.mubr.msk.bf16.mxu0 %vm6290_vm1, %v6289_v2 }
 0x13a   : > { %6026 = vmatmul.mubr.msk.bf16.vlgmr.msra.gmra.mrb[140].mxu1 %vm216_vm2, %v4760_v16 }
 0x13b   : > { %v1270_v21 = vpop.f32.mrb[32].mxu0 }
 0x13c   : > { %v1277_v22 = vadd.f32 %v1270_v21, %v1204_v13  ;;  %v5697_v24 = vpop.f32.mrb[33].mxu0 }
 0x13d   : > { %v1273_v26 = vpop.f32.mrb[34].mxu0  ;;  %v1473_v29 = vpop.f32.mrb[36].mxu1 }
 0x13e   : > { %v1334_v30 = vadd.f32 %v1327_v6, %v1277_v22  ;;  %v1278_v31 = vadd.f32 %v1273_v26, %v1205_v17  ;;  %v5698_v32 = vpop.f32.mrb[35].mxu0  ;;  %v5715_v33 = vpop.f32.mrb[37].mxu1 }
 0x13f   : > { %v1476_v34 = vpop.f32.mrb[38].mxu1 }
 0x140   : > { %v1343_v35 = vadd.f32 %v7178_v43, %v1334_v30  ;;  %v1335_v36 = vadd.f32 %v1330_v15, %v1278_v31  ;;  %6020 = vmatmul.mubr.msk.bf16.vlgmr.msra.gmra.mrb[140].mxu0 %vm216_vm2, %v4703_v27  ;;  %v5716_v2 = vpop.f32.mrb[39].mxu1 }
 0x142   : > { %v1347_v37 = vmul.f32 0.2, %v1343_v35  ;;  %v1344_v45 = vadd.f32 %v7178_v43, %v1335_v36  ;;  %vm1345_vm7 = vcmp.ge.f32.partialorder %v1343_v35, 0.0 }
 0x143   : > { %v1427_v38 = vpop.f32.mrb[36].mxu0 }
 0x144   : > { %vm1346_vm8 = vcmp.ge.f32.partialorder %v1344_v45, 0.0  ;;  %v1348_v39 = vmul.f32 0.2, %v1344_v45  ;;  %v1474_v60 = vadd.f32 %v1473_v29, %v1427_v38  ;;  %v5709_v40 = vpop.f32.mrb[37].mxu0  ;;  %v1349_v28 = vsel %vm1345_vm7, %v1343_v35, %v1347_v37 }
 0x145   : > { %v1430_v41 = vpop.f32.mrb[38].mxu0  ;;  %v1585_v42 = vpop.f32.mrb[40].mxu1 }
 0x146   : > { %v1350_v44 = vsel %vm1346_vm8, %v1344_v45, %v1348_v39  ;;  %v1477_v46 = vadd.f32 %v1476_v34, %v1430_v41  ;;  %v5710_v47 = vpop.f32.mrb[39].mxu0  ;;  %v5727_v23 = vpop.f32.mrb[41].mxu1 }
 0x147   : > { %v5414_v49 = vpack.c.bf16 %v1350_v44, %v1349_v28  ;;  %v1588_v50 = vpop.f32.mrb[42].mxu1 }
 0x148   : > { %v5728_v51 = vpop.f32.mrb[43].mxu1 }
 0x149   : > { %5446 = vst [vmem:[%s7222_s9 + $0x8] sm:$0xff] %v5414_v49  }
 0x14b   : > { %v1528_v52 = vpop.f32.mrb[40].mxu0 }
 0x14c   : > { %v1535_v53 = vadd.f32 %v1528_v52, %v1474_v60  ;;  %v5721_v54 = vpop.f32.mrb[41].mxu0 }
 0x14d   : > { %v1531_v56 = vpop.f32.mrb[42].mxu0  ;;  %v1715_v57 = vpop.f32.mrb[44].mxu1 }
 0x14e   : > { %v1536_v55 = vadd.f32 %v1531_v56, %v1477_v46  ;;  %v5722_v25 = vpop.f32.mrb[43].mxu0  ;;  %v1592_v58 = vadd.f32 %v1585_v42, %v1535_v53  ;;  %v5739_v59 = vpop.f32.mrb[45].mxu1 }
 0x14f   : > { %v1718_v61 = vpop.f32.mrb[46].mxu1 }
 0x150   : > { %v1593_v62 = vadd.f32 %v1588_v50, %v1536_v55  ;;  %v5740_v63 = vpop.f32.mrb[47].mxu1 }
 0x153   : > { %v1658_v0 = vpop.f32.mrb[44].mxu0 }
 0x154   : > { %v1665_v1 = vadd.f32 %v1658_v0, %v1592_v58  ;;  %v5733_v3 = vpop.f32.mrb[45].mxu0 }
 0x155   : > { %v1661_v4 = vpop.f32.mrb[46].mxu0  ;;  %v1849_v5 = vpop.f32.mrb[48].mxu1 }
 0x156   : > { %v1666_v48 = vadd.f32 %v1661_v4, %v1593_v62  ;;  %v5734_v6 = vpop.f32.mrb[47].mxu0  ;;  %v1722_v7 = vadd.f32 %v1715_v57, %v1665_v1  ;;  %v5751_v8 = vpop.f32.mrb[49].mxu1 }
 0x157   : > { %v1852_v9 = vpop.f32.mrb[50].mxu1 }
 0x158   : > { %v1723_v10 = vadd.f32 %v1718_v61, %v1666_v48  ;;  %v5752_v11 = vpop.f32.mrb[51].mxu1 }
 0x15b   : > { %v1776_v12 = vpop.f32.mrb[48].mxu0 }
 0x15c   : > { %v1783_v13 = vadd.f32 %v1776_v12, %v1722_v7  ;;  %v5745_v14 = vpop.f32.mrb[49].mxu0 }
 0x15d   : > { %v1779_v15 = vpop.f32.mrb[50].mxu0  ;;  %v2006_v16 = vpop.f32.mrb[52].mxu1 }
 0x15e   : > { %v1784_v17 = vadd.f32 %v1779_v15, %v1723_v10  ;;  %v5746_v18 = vpop.f32.mrb[51].mxu0  ;;  %v1856_v19 = vadd.f32 %v1849_v5, %v1783_v13  ;;  %v5763_v20 = vpop.f32.mrb[53].mxu1 }
 0x15f   : > { %v2009_v21 = vpop.f32.mrb[54].mxu1 }
 0x160   : > { %v1857_v22 = vadd.f32 %v1852_v9, %v1784_v17  ;;  %v5764_v24 = vpop.f32.mrb[55].mxu1 }
 0x163   : > { %v1906_v26 = vpop.f32.mrb[52].mxu0 }
 0x164   : > { %v1913_v27 = vadd.f32 %v1906_v26, %v1856_v19  ;;  %v5757_v29 = vpop.f32.mrb[53].mxu0 }
 0x165   : > { %v1909_v30 = vpop.f32.mrb[54].mxu0  ;;  %v2107_v31 = vpop.f32.mrb[56].mxu1 }
 0x166   : > { %v1922_v32 = vadd.f32 %v7178_v43, %v1913_v27  ;;  %v1914_v33 = vadd.f32 %v1909_v30, %v1857_v22  ;;  %v5758_v34 = vpop.f32.mrb[55].mxu0  ;;  %v5775_v35 = vpop.f32.mrb[57].mxu1 }
 0x167   : > { %v2110_v36 = vpop.f32.mrb[58].mxu1 }
 0x168   : > { %v1926_v2 = vmul.f32 0.2, %v1922_v32  ;;  %v1923_v37 = vadd.f32 %v7178_v43, %v1914_v33  ;;  %v5776_v45 = vpop.f32.mrb[59].mxu1  ;;  %vm1924_vm9 = vcmp.ge.f32.partialorder %v1922_v32, 0.0 }
 0x16a   : > { %vm1925_vm10 = vcmp.ge.f32.partialorder %v1923_v37, 0.0  ;;  %v1927_v38 = vmul.f32 0.2, %v1923_v37  ;;  %v1928_v60 = vsel %vm1924_vm9, %v1922_v32, %v1926_v2 }
 0x16b   : > { %v2052_v39 = vpop.f32.mrb[56].mxu0 }
 0x16c   : > { %v1929_v40 = vsel %vm1925_vm10, %v1923_v37, %v1927_v38  ;;  %v2053_v41 = vadd.f32 %v2052_v39, %v2006_v16  ;;  %v5769_v42 = vpop.f32.mrb[57].mxu0 }
 0x16d   : > { %v5419_v28 = vpack.c.bf16 %v1929_v40, %v1928_v60  ;;  %v2055_v44 = vpop.f32.mrb[58].mxu0  ;;  %v2237_v46 = vpop.f32.mrb[60].mxu1 }
 0x16e   : > { %v2056_v47 = vadd.f32 %v2055_v44, %v2009_v21  ;;  %v5770_v23 = vpop.f32.mrb[59].mxu0  ;;  %v2114_v49 = vadd.f32 %v2107_v31, %v2053_v41  ;;  %v5787_v50 = vpop.f32.mrb[61].mxu1 }
 0x16f   : > { %5447 = vst [vmem:[%s7222_s9 + $0x10] sm:$0xff] %v5419_v28   ;;  %v2240_v51 = vpop.f32.mrb[62].mxu1 }
 0x170   : > { %v2115_v52 = vadd.f32 %v2110_v36, %v2056_v47  ;;  %v5788_v53 = vpop.f32.mrb[63].mxu1 }
 0x173   : > { %v2164_v54 = vpop.f32.mrb[60].mxu0 }
 0x174   : > { %v2171_v56 = vadd.f32 %v2164_v54, %v2114_v49  ;;  %v5781_v57 = vpop.f32.mrb[61].mxu0 }
 0x175   : > { %v2167_v55 = vpop.f32.mrb[62].mxu0  ;;  %v2355_v25 = vpop.f32.mrb[64].mxu1 }
 0x176   : > { %v2172_v58 = vadd.f32 %v2167_v55, %v2115_v52  ;;  %v5782_v59 = vpop.f32.mrb[63].mxu0  ;;  %v2244_v61 = vadd.f32 %v2237_v46, %v2171_v56  ;;  %v5799_v62 = vpop.f32.mrb[65].mxu1 }
 0x177   : > { %v2358_v63 = vpop.f32.mrb[66].mxu1 }
 0x178   : > { %v2245_v0 = vadd.f32 %v2240_v51, %v2172_v58  ;;  %v5800_v1 = vpop.f32.mrb[67].mxu1 }
 0x17b   : > { %v2294_v3 = vpop.f32.mrb[64].mxu0 }
 0x17c   : > { %v2301_v4 = vadd.f32 %v2294_v3, %v2244_v61  ;;  %v5793_v5 = vpop.f32.mrb[65].mxu0 }
 0x17d   : > { %v2297_v48 = vpop.f32.mrb[66].mxu0  ;;  %v2485_v6 = vpop.f32.mrb[68].mxu1 }
 0x17e   : > { %v2302_v7 = vadd.f32 %v2297_v48, %v2245_v0  ;;  %v5794_v8 = vpop.f32.mrb[67].mxu0  ;;  %v2362_v9 = vadd.f32 %v2355_v25, %v2301_v4  ;;  %v5811_v10 = vpop.f32.mrb[69].mxu1 }
 0x17f   : > { %v2488_v11 = vpop.f32.mrb[70].mxu1 }
 0x180   : > { %v2363_v12 = vadd.f32 %v2358_v63, %v2302_v7  ;;  %v5812_v13 = vpop.f32.mrb[71].mxu1 }
 0x183   : > { %v2428_v14 = vpop.f32.mrb[68].mxu0 }
 0x184   : > { %v2435_v15 = vadd.f32 %v2428_v14, %v2362_v9  ;;  %v5805_v16 = vpop.f32.mrb[69].mxu0 }
 0x185   : > { %v2431_v17 = vpop.f32.mrb[70].mxu0  ;;  %v2631_v18 = vpop.f32.mrb[72].mxu1 }
 0x186   : > { %v2492_v19 = vadd.f32 %v2485_v6, %v2435_v15  ;;  %v2436_v20 = vadd.f32 %v2431_v17, %v2363_v12  ;;  %v5806_v21 = vpop.f32.mrb[71].mxu0  ;;  %v5823_v22 = vpop.f32.mrb[73].mxu1 }
 0x187   : > { %v2634_v24 = vpop.f32.mrb[74].mxu1 }
 0x188   : > { %v2501_v26 = vadd.f32 %v7178_v43, %v2492_v19  ;;  %v2493_v27 = vadd.f32 %v2488_v11, %v2436_v20  ;;  %v5824_v29 = vpop.f32.mrb[75].mxu1 }
 0x18a   : > { %v2505_v30 = vmul.f32 0.2, %v2501_v26  ;;  %v2502_v31 = vadd.f32 %v7178_v43, %v2493_v27  ;;  %vm2503_vm11 = vcmp.ge.f32.partialorder %v2501_v26, 0.0 }
 0x18b   : > { %v2585_v32 = vpop.f32.mrb[72].mxu0 }
 0x18c   : > { %vm2504_vm12 = vcmp.ge.f32.partialorder %v2502_v31, 0.0  ;;  %v2506_v33 = vmul.f32 0.2, %v2502_v31  ;;  %v2632_v34 = vadd.f32 %v2631_v18, %v2585_v32  ;;  %v5817_v35 = vpop.f32.mrb[73].mxu0  ;;  %v2507_v37 = vsel %vm2503_vm11, %v2501_v26, %v2505_v30 }
 0x18d   : > { %v2588_v36 = vpop.f32.mrb[74].mxu0  ;;  %v2743_v2 = vpop.f32.mrb[76].mxu1 }
 0x18e   : > { %v2508_v45 = vsel %vm2504_vm12, %v2502_v31, %v2506_v33  ;;  %v2635_v38 = vadd.f32 %v2634_v24, %v2588_v36  ;;  %v5818_v39 = vpop.f32.mrb[75].mxu0  ;;  %v5835_v60 = vpop.f32.mrb[77].mxu1 }
 0x18f   : > { %v5424_v40 = vpack.c.bf16 %v2508_v45, %v2507_v37  ;;  %v2746_v41 = vpop.f32.mrb[78].mxu1 }
 0x190   : > { %v5836_v42 = vpop.f32.mrb[79].mxu1 }
 0x191   : > { %5448 = vst [vmem:[%s7222_s9 + $0x18] sm:$0xff] %v5424_v40  }
 0x193   : > { %v2686_v28 = vpop.f32.mrb[76].mxu0 }
 0x194   : > { %v2693_v44 = vadd.f32 %v2686_v28, %v2632_v34  ;;  %v5829_v46 = vpop.f32.mrb[77].mxu0 }
 0x195   : > { %v2689_v47 = vpop.f32.mrb[78].mxu0  ;;  %v2873_v23 = vpop.f32.mrb[80].mxu1 }
 0x196   : > { %v2694_v49 = vadd.f32 %v2689_v47, %v2635_v38  ;;  %v5830_v50 = vpop.f32.mrb[79].mxu0  ;;  %v2750_v51 = vadd.f32 %v2743_v2, %v2693_v44  ;;  %v5847_v52 = vpop.f32.mrb[81].mxu1 }
 0x197   : > { %v2876_v53 = vpop.f32.mrb[82].mxu1 }
 0x198   : > { %v2751_v54 = vadd.f32 %v2746_v41, %v2694_v49  ;;  %v5848_v56 = vpop.f32.mrb[83].mxu1 }
 0x19b   : > { %v2816_v57 = vpop.f32.mrb[80].mxu0 }
 0x19c   : > { %v2823_v55 = vadd.f32 %v2816_v57, %v2750_v51  ;;  %v5841_v25 = vpop.f32.mrb[81].mxu0 }
 0x19d   : > { %v2819_v58 = vpop.f32.mrb[82].mxu0  ;;  %v3007_v59 = vpop.f32.mrb[84].mxu1 }
 0x19e   : > { %v2824_v61 = vadd.f32 %v2819_v58, %v2751_v54  ;;  %v5842_v62 = vpop.f32.mrb[83].mxu0  ;;  %v2880_v63 = vadd.f32 %v2873_v23, %v2823_v55  ;;  %v5859_v0 = vpop.f32.mrb[85].mxu1 }
 0x19f   : > { %v3010_v1 = vpop.f32.mrb[86].mxu1 }
 0x1a0   : > { %v2881_v3 = vadd.f32 %v2876_v53, %v2824_v61  ;;  %v5860_v4 = vpop.f32.mrb[87].mxu1 }
 0x1a3   : > { %v2934_v5 = vpop.f32.mrb[84].mxu0 }
 0x1a4   : > { %v2941_v48 = vadd.f32 %v2934_v5, %v2880_v63  ;;  %v5853_v6 = vpop.f32.mrb[85].mxu0 }
 0x1a5   : > { %v2937_v7 = vpop.f32.mrb[86].mxu0  ;;  %v3164_v8 = vpop.f32.mrb[88].mxu1 }
 0x1a6   : > { %v2942_v9 = vadd.f32 %v2937_v7, %v2881_v3  ;;  %v5854_v10 = vpop.f32.mrb[87].mxu0  ;;  %v3014_v11 = vadd.f32 %v3007_v59, %v2941_v48  ;;  %v5871_v12 = vpop.f32.mrb[89].mxu1 }
 0x1a7   : > { %v3167_v13 = vpop.f32.mrb[90].mxu1 }
 0x1a8   : > { %v3015_v14 = vadd.f32 %v3010_v1, %v2942_v9  ;;  %v5872_v15 = vpop.f32.mrb[91].mxu1 }
 0x1ab   : > { %v3064_v16 = vpop.f32.mrb[88].mxu0 }
 0x1ac   : > { %v3071_v17 = vadd.f32 %v3064_v16, %v3014_v11  ;;  %v5865_v18 = vpop.f32.mrb[89].mxu0 }
 0x1ad   : > { %v3067_v19 = vpop.f32.mrb[90].mxu0  ;;  %v3265_v20 = vpop.f32.mrb[92].mxu1 }
 0x1ae   : > { %v3080_v21 = vadd.f32 %v7178_v43, %v3071_v17  ;;  %v3072_v22 = vadd.f32 %v3067_v19, %v3015_v14  ;;  %v5866_v24 = vpop.f32.mrb[91].mxu0  ;;  %v5883_v26 = vpop.f32.mrb[93].mxu1 }
 0x1af   : > { %v3268_v27 = vpop.f32.mrb[94].mxu1 }
 0x1b0   : > { %v3084_v29 = vmul.f32 0.2, %v3080_v21  ;;  %v3081_v30 = vadd.f32 %v7178_v43, %v3072_v22  ;;  %v5884_v31 = vpop.f32.mrb[95].mxu1  ;;  %vm3082_vm13 = vcmp.ge.f32.partialorder %v3080_v21, 0.0 }
 0x1b2   : > { %vm3083_vm14 = vcmp.ge.f32.partialorder %v3081_v30, 0.0  ;;  %v3085_v32 = vmul.f32 0.2, %v3081_v30  ;;  %v3086_v34 = vsel %vm3082_vm13, %v3080_v21, %v3084_v29 }
 0x1b3   : > { %v3210_v33 = vpop.f32.mrb[92].mxu0 }
 0x1b4   : > { %v3087_v35 = vsel %vm3083_vm14, %v3081_v30, %v3085_v32  ;;  %v3211_v36 = vadd.f32 %v3210_v33, %v3164_v8  ;;  %v5877_v2 = vpop.f32.mrb[93].mxu0 }
 0x1b5   : > { %v5429_v37 = vpack.c.bf16 %v3087_v35, %v3086_v34  ;;  %v3213_v45 = vpop.f32.mrb[94].mxu0  ;;  %v3395_v38 = vpop.f32.mrb[96].mxu1 }
 0x1b6   : > { %v3214_v39 = vadd.f32 %v3213_v45, %v3167_v13  ;;  %v5878_v60 = vpop.f32.mrb[95].mxu0  ;;  %v3272_v40 = vadd.f32 %v3265_v20, %v3211_v36  ;;  %v5895_v41 = vpop.f32.mrb[97].mxu1 }
 0x1b7   : > { %5449 = vst [vmem:[%s7222_s9 + $0x20] sm:$0xff] %v5429_v37   ;;  %v3398_v42 = vpop.f32.mrb[98].mxu1 }
 0x1b8   : > { %v3273_v28 = vadd.f32 %v3268_v27, %v3214_v39  ;;  %v5896_v44 = vpop.f32.mrb[99].mxu1 }
 0x1bb   : > { %v3322_v46 = vpop.f32.mrb[96].mxu0 }
 0x1bc   : > { %v3329_v47 = vadd.f32 %v3322_v46, %v3272_v40  ;;  %v5889_v23 = vpop.f32.mrb[97].mxu0 }
 0x1bd   : > { %v3325_v49 = vpop.f32.mrb[98].mxu0  ;;  %v3513_v50 = vpop.f32.mrb[100].mxu1 }
 0x1be   : > { %v3330_v51 = vadd.f32 %v3325_v49, %v3273_v28  ;;  %v5890_v52 = vpop.f32.mrb[99].mxu0  ;;  %v3402_v53 = vadd.f32 %v3395_v38, %v3329_v47  ;;  %v5907_v54 = vpop.f32.mrb[101].mxu1 }
 0x1bf   : > { %v3516_v56 = vpop.f32.mrb[102].mxu1 }
 0x1c0   : > { %v3403_v57 = vadd.f32 %v3398_v42, %v3330_v51  ;;  %v5908_v55 = vpop.f32.mrb[103].mxu1 }
 0x1c3   : > { %v3452_v25 = vpop.f32.mrb[100].mxu0 }
 0x1c4   : > { %v3459_v58 = vadd.f32 %v3452_v25, %v3402_v53  ;;  %v5901_v59 = vpop.f32.mrb[101].mxu0 }
 0x1c5   : > { %v3455_v61 = vpop.f32.mrb[102].mxu0  ;;  %v3643_v62 = vpop.f32.mrb[104].mxu1 }
 0x1c6   : > { %v3460_v63 = vadd.f32 %v3455_v61, %v3403_v57  ;;  %v5902_v0 = vpop.f32.mrb[103].mxu0  ;;  %v3520_v1 = vadd.f32 %v3513_v50, %v3459_v58  ;;  %v5919_v3 = vpop.f32.mrb[105].mxu1 }
 0x1c7   : > { %v3646_v4 = vpop.f32.mrb[106].mxu1 }
 0x1c8   : > { %v3521_v5 = vadd.f32 %v3516_v56, %v3460_v63  ;;  %v5920_v48 = vpop.f32.mrb[107].mxu1 }
 0x1cb   : > { %v3586_v6 = vpop.f32.mrb[104].mxu0 }
 0x1cc   : > { %v3593_v7 = vadd.f32 %v3586_v6, %v3520_v1  ;;  %v5913_v8 = vpop.f32.mrb[105].mxu0 }
 0x1cd   : > { %v3589_v9 = vpop.f32.mrb[106].mxu0  ;;  %v3789_v10 = vpop.f32.mrb[108].mxu1 }
 0x1ce   : > { %v3650_v11 = vadd.f32 %v3643_v62, %v3593_v7  ;;  %v3594_v12 = vadd.f32 %v3589_v9, %v3521_v5  ;;  %v5914_v13 = vpop.f32.mrb[107].mxu0  ;;  %v5931_v14 = vpop.f32.mrb[109].mxu1 }
 0x1cf   : > { %v3792_v15 = vpop.f32.mrb[110].mxu1 }
 0x1d0   : > { %v3659_v16 = vadd.f32 %v7178_v43, %v3650_v11  ;;  %v3651_v17 = vadd.f32 %v3646_v4, %v3594_v12  ;;  %v5932_v18 = vpop.f32.mrb[111].mxu1 }
 0x1d2   : > { %v3663_v19 = vmul.f32 0.2, %v3659_v16  ;;  %v3660_v20 = vadd.f32 %v7178_v43, %v3651_v17  ;;  %vm3661_vm15 = vcmp.ge.f32.partialorder %v3659_v16, 0.0 }
 0x1d3   : > { %v3743_v21 = vpop.f32.mrb[108].mxu0 }
 0x1d4   : > { %vm3662_vm0 = vcmp.ge.f32.partialorder %v3660_v20, 0.0  ;;  %v3664_v22 = vmul.f32 0.2, %v3660_v20  ;;  %v3790_v24 = vadd.f32 %v3789_v10, %v3743_v21  ;;  %v5925_v26 = vpop.f32.mrb[109].mxu0  ;;  %v3665_v30 = vsel %vm3661_vm15, %v3659_v16, %v3663_v19 }
 0x1d5   : > { %v3746_v27 = vpop.f32.mrb[110].mxu0  ;;  %v3901_v29 = vpop.f32.mrb[112].mxu1 }
 0x1d6   : > { %v3666_v31 = vsel %vm3662_vm0, %v3660_v20, %v3664_v22  ;;  %v3793_v32 = vadd.f32 %v3792_v15, %v3746_v27  ;;  %v5926_v33 = vpop.f32.mrb[111].mxu0  ;;  %v5943_v34 = vpop.f32.mrb[113].mxu1 }
 0x1d7   : > { %v5434_v35 = vpack.c.bf16 %v3666_v31, %v3665_v30  ;;  %v3904_v36 = vpop.f32.mrb[114].mxu1 }
 0x1d8   : > { %v5944_v2 = vpop.f32.mrb[115].mxu1 }
 0x1d9   : > { %5450 = vst [vmem:[%s7222_s9 + $0x28] sm:$0xff] %v5434_v35  }
 0x1db   : > { %v3844_v37 = vpop.f32.mrb[112].mxu0 }
 0x1dc   : > { %v3851_v45 = vadd.f32 %v3844_v37, %v3790_v24  ;;  %v5937_v38 = vpop.f32.mrb[113].mxu0 }
 0x1dd   : > { %v3847_v39 = vpop.f32.mrb[114].mxu0  ;;  %v4031_v60 = vpop.f32.mrb[116].mxu1 }
 0x1de   : > { %v3852_v40 = vadd.f32 %v3847_v39, %v3793_v32  ;;  %v5938_v41 = vpop.f32.mrb[115].mxu0  ;;  %v3908_v42 = vadd.f32 %v3901_v29, %v3851_v45  ;;  %v5955_v28 = vpop.f32.mrb[117].mxu1 }
 0x1df   : > { %v4034_v44 = vpop.f32.mrb[118].mxu1 }
 0x1e0   : > { %v3909_v46 = vadd.f32 %v3904_v36, %v3852_v40  ;;  %v5956_v47 = vpop.f32.mrb[119].mxu1 }
 0x1e3   : > { %v3974_v23 = vpop.f32.mrb[116].mxu0 }
 0x1e4   : > { %v3981_v49 = vadd.f32 %v3974_v23, %v3908_v42  ;;  %v5949_v50 = vpop.f32.mrb[117].mxu0 }
 0x1e5   : > { %v3977_v51 = vpop.f32.mrb[118].mxu0  ;;  %v4165_v52 = vpop.f32.mrb[120].mxu1 }
 0x1e6   : > { %v3982_v53 = vadd.f32 %v3977_v51, %v3909_v46  ;;  %v5950_v54 = vpop.f32.mrb[119].mxu0  ;;  %v4038_v56 = vadd.f32 %v4031_v60, %v3981_v49  ;;  %v5967_v57 = vpop.f32.mrb[121].mxu1 }
 0x1e7   : > { %v4168_v55 = vpop.f32.mrb[122].mxu1 }
 0x1e8   : > { %v4039_v25 = vadd.f32 %v4034_v44, %v3982_v53  ;;  %v5968_v58 = vpop.f32.mrb[123].mxu1 }
 0x1eb   : > { %v4092_v59 = vpop.f32.mrb[120].mxu0 }
 0x1ec   : > { %v4099_v61 = vadd.f32 %v4092_v59, %v4038_v56  ;;  %v5961_v62 = vpop.f32.mrb[121].mxu0 }
 0x1ed   : > { %v4095_v63 = vpop.f32.mrb[122].mxu0  ;;  %v4322_v0 = vpop.f32.mrb[124].mxu1 }
 0x1ee   : > { %v4100_v1 = vadd.f32 %v4095_v63, %v4039_v25  ;;  %v5962_v3 = vpop.f32.mrb[123].mxu0  ;;  %v4172_v4 = vadd.f32 %v4165_v52, %v4099_v61  ;;  %v5979_v5 = vpop.f32.mrb[125].mxu1 }
 0x1ef   : > { %v4325_v48 = vpop.f32.mrb[126].mxu1 }
 0x1f0   : > { %v4173_v6 = vadd.f32 %v4168_v55, %v4100_v1  ;;  %v5980_v7 = vpop.f32.mrb[127].mxu1 }
 0x1f3   : > { %v4222_v8 = vpop.f32.mrb[124].mxu0 }
 0x1f4   : > { %v4229_v9 = vadd.f32 %v4222_v8, %v4172_v4  ;;  %v5973_v10 = vpop.f32.mrb[125].mxu0 }
 0x1f5   : > { %v4225_v11 = vpop.f32.mrb[126].mxu0  ;;  %v4423_v12 = vpop.f32.mrb[128].mxu1 }
 0x1f6   : > { %v4238_v13 = vadd.f32 %v7178_v43, %v4229_v9  ;;  %v4230_v14 = vadd.f32 %v4225_v11, %v4173_v6  ;;  %v5974_v15 = vpop.f32.mrb[127].mxu0  ;;  %v5991_v16 = vpop.f32.mrb[129].mxu1 }
 0x1f7   : > { %v4426_v17 = vpop.f32.mrb[130].mxu1 }
 0x1f8   : > { %v4242_v18 = vmul.f32 0.2, %v4238_v13  ;;  %v4239_v19 = vadd.f32 %v7178_v43, %v4230_v14  ;;  %v5992_v20 = vpop.f32.mrb[131].mxu1  ;;  %vm4240_vm1 = vcmp.ge.f32.partialorder %v4238_v13, 0.0 }
 0x1fa   : > { %vm4241_vm2 = vcmp.ge.f32.partialorder %v4239_v19, 0.0  ;;  %v4243_v21 = vmul.f32 0.2, %v4239_v19  ;;  %v4244_v24 = vsel %vm4240_vm1, %v4238_v13, %v4242_v18 }
 0x1fb   : > { %v4368_v22 = vpop.f32.mrb[128].mxu0 }
 0x1fc   : > { %v4245_v26 = vsel %vm4241_vm2, %v4239_v19, %v4243_v21  ;;  %v4369_v27 = vadd.f32 %v4368_v22, %v4322_v0  ;;  %v5985_v29 = vpop.f32.mrb[129].mxu0  ;;  %v5376_v0 = vld [vmem:[%s7360_s2] ss:$0 sm:$0xff] }
 0x1fd   : > { %v5439_v30 = vpack.c.bf16 %v4245_v26, %v4244_v24  ;;  %v4371_v31 = vpop.f32.mrb[130].mxu0  ;;  %v4553_v32 = vpop.f32.mrb[132].mxu1 }
 0x1fe   : > { %v4372_v33 = vadd.f32 %v4371_v31, %v4325_v48  ;;  %v5986_v34 = vpop.f32.mrb[131].mxu0  ;;  %v4430_v35 = vadd.f32 %v4423_v12, %v4369_v27  ;;  %v6003_v36 = vpop.f32.mrb[133].mxu1 }
 0x1ff   : > { %5451 = vst [vmem:[%s7222_s9 + $0x30] sm:$0xff] %v5439_v30   ;;  %v4556_v2 = vpop.f32.mrb[134].mxu1 }
 0x200   : > { %v4431_v43 = vadd.f32 %v4426_v17, %v4372_v33  ;;  %v6004_v37 = vpop.f32.mrb[135].mxu1 }
 0x203   : > { %v4480_v45 = vpop.f32.mrb[132].mxu0 }
 0x204   : > { %v4487_v38 = vadd.f32 %v4480_v45, %v4430_v35  ;;  %v5997_v39 = vpop.f32.mrb[133].mxu0 }
 0x205   : > { %v4483_v60 = vpop.f32.mrb[134].mxu0  ;;  %v4671_v40 = vpop.f32.mrb[136].mxu1 }
 0x206   : > { %v4488_v41 = vadd.f32 %v4483_v60, %v4431_v43  ;;  %v5998_v42 = vpop.f32.mrb[135].mxu0  ;;  %v4560_v28 = vadd.f32 %v4553_v32, %v4487_v38  ;;  %v6015_v44 = vpop.f32.mrb[137].mxu1 }
 0x207   : > { %v4674_v46 = vpop.f32.mrb[138].mxu1 }
 0x208   : > { %v4561_v47 = vadd.f32 %v4556_v2, %v4488_v41  ;;  %v6016_v23 = vpop.f32.mrb[139].mxu1 }
 0x20b   : > { %v4610_v49 = vpop.f32.mrb[136].mxu0 }
 0x20c   : > { %v4617_v50 = vadd.f32 %v4610_v49, %v4560_v28  ;;  %v6009_v51 = vpop.f32.mrb[137].mxu0 }
 0x20d   : > { %v4613_v52 = vpop.f32.mrb[138].mxu0  ;;  %v4801_v53 = vpop.f32.mrb[140].mxu1 }
 0x20e   : > { %v4618_v54 = vadd.f32 %v4613_v52, %v4561_v47  ;;  %v6010_v56 = vpop.f32.mrb[139].mxu0  ;;  %v4678_v57 = vadd.f32 %v4671_v40, %v4617_v50  ;;  %v6027_v55 = vpop.f32.mrb[141].mxu1 }
 0x20f   : > { %v4804_v25 = vpop.f32.mrb[142].mxu1 }
 0x210   : > { %v4679_v58 = vadd.f32 %v4674_v46, %v4618_v54  ;;  %v6028_v59 = vpop.f32.mrb[143].mxu1 }
 0x213   : > { %v4744_v61 = vpop.f32.mrb[140].mxu0 }
 0x214   : > { %v4751_v62 = vadd.f32 %v4744_v61, %v4678_v57  ;;  %v6021_v63 = vpop.f32.mrb[141].mxu0 }
 0x215   : > { %v4747_v1 = vpop.f32.mrb[142].mxu0 }
 0x216   : > { %v4808_v3 = vadd.f32 %v4801_v53, %v4751_v62  ;;  %v4752_v4 = vadd.f32 %v4747_v1, %v4679_v58  ;;  %v6022_v5 = vpop.f32.mrb[143].mxu0 }
 0x218   : > { %v4817_v48 = vadd.f32 %v5376_v0, %v4808_v3  ;;  %v4809_v6 = vadd.f32 %v4804_v25, %v4752_v4 }
 0x21a   : > { %v4821_v7 = vmul.f32 0.2, %v4817_v48  ;;  %v4818_v8 = vadd.f32 %v5376_v0, %v4809_v6  ;;  %vm4819_vm3 = vcmp.ge.f32.partialorder %v4817_v48, 0.0 }
 0x21c   : > { %vm4820_vm4 = vcmp.ge.f32.partialorder %v4818_v8, 0.0  ;;  %v4822_v9 = vmul.f32 0.2, %v4818_v8  ;;  %v4823_v10 = vsel %vm4819_vm3, %v4817_v48, %v4821_v7 }
 0x21e   : > { %v4824_v11 = vsel %vm4820_vm4, %v4818_v8, %v4822_v9 }
 0x21f   : > { %v5444_v12 = vpack.c.bf16 %v4824_v11, %v4823_v10 }
 0x221   : > { %5452 = vst [vmem:[%s7222_s9 + $0x38] sm:$0xff] %v5444_v12  }
 0x222   : > { %6206 = shalt.err (!%p6203_p6)
}
 0x223   : > { %s6207_s29 = scalar_lea.hbm %s7299_s11, 1024  ;;  %s6211_s5 = scalar_lea.hbm %s7361_s3, 4096 }
 0x224   : > { %p6208_p7 = scmp.ne.s32.totalorder %s7299_s11, %s6207_s29  ;;  %p6212_p11 = scmp.lt.u32.totalorder %s7299_s11, %s7361_s3 }
 0x225   : > { %p6213_p12 = scmp.lt.u32.totalorder %s6211_s5, %s6207_s29  ;;  %p6215_p0 = scmp.lt.u32.totalorder %s6207_s29, %s7299_s11 }
 0x226   : > { %p6209_p9 = pnand %p6208_p7, %p6365_p3 }
 0x227   : > { %p6214_p13 = por %p6213_p12, %p6212_p11 }
 0x228   : > { %p6210_p10 = pneg %p6209_p9 }
 0x229   : > { %p6216_p1 = por %p6215_p0, %p6214_p13 }
 0x22b   : > { %p6217_p2 = pnand %p6216_p1, %p6210_p10 }
 0x22d   : > { %6220 = shalt.err (!%p6217_p2)
}
 0x22e   : > { %s6292_s8 = smov 64   ;;  %s6293_s15 = smov 4  }
 0x22f   : > { %6030 = dma.vmem_to_hbm [thread:$0]  (%p6365_p3), %s7301_s10, 1024, %s7299_s11, %s7306_s20, %s6292_s8, %s6292_s8, %s6293_s15  }
 0x230 PF: > { %p6036_p4 = scmp.ge.s32.totalorder %s6287_s19, 2  ;;  %s4868_s16 = sand.u32 1, %s6259_s12  }
 0x231   : > { %s4869_s21 = scalar_lea.sflag [#allocation3], %s4868_s16 }
 0x232   : > { %p6033_p5 = pnand %p6036_p4, %p6374_p8 }
 0x234   : > { %6254 = dma.done.wait (!%p6033_p5), %s4869_s21, 1024  }
 0x235   : > { %6256 = vsyncadd (!%p6033_p5), %s4869_s21, 4294966272  ;;  %s16_s19 = sadd.s32 1, %s6287_s19   ;;  %s7364_s12 = smov %s6263_s13 }
 0x236   : > { %p13_p6 = scmp.ge.s32.totalorder %s16_s19, 6   ;;  %s7365_s13 = smov %s6267_s14 }
 0x237   : > { %s7366_s14 = smov %s6383_s30  ;;  %s7367_s15 = smov %s6279_s17 }
 0x238   : > { %s7368_s16 = smov %s6283_s18  ;;  %s7369_s17 = smov %s7372_s22 }
 0x239   : > { %s7370_s18 = smov %s7376_s23  ;;  %15 = sbr.rel (!%p13_p6) target bundleno = 5 (0x5), region = 92 }
 0x240   :  { %4874 = vsyncpa [#allocation3], 1 }
 0x241   :  { %4876 = vsyncpa [#allocation3 + $0x1], 1 }

</bundles_post_ra>
